<compile_context>
chip_gen: v6e
topology: v6e:2x2x1
jax: 0.10.0
libtpu: 0.0.40
codegen_flags: <defaults>
</compile_context>

<pallas_src>
from functools import partial
from math import log2

import jax
import jax.numpy as jnp
from jax import lax
from jax.experimental import pallas as pl
from jax.experimental.pallas import tpu as pltpu


# -----------------------------------------------------------------------------
# Fused matmul + bias (+ LeakyReLU 0.2) kernel: bf16 operands, f32 accumulation
# -----------------------------------------------------------------------------
def _mm_bias_act_kernel(x_ref, w_ref, b_ref, o_ref, acc_ref, *, act, nk):
    @pl.when(pl.program_id(2) == 0)
    def _():
        acc_ref[...] = jnp.zeros_like(acc_ref)

    acc_ref[...] += jnp.dot(x_ref[...], w_ref[...],
                            preferred_element_type=jnp.float32)

    @pl.when(pl.program_id(2) == nk - 1)
    def _():
        y = acc_ref[...] + b_ref[...]
        if act:
            # LeakyReLU(0.2): one vmul + one vmax (no cmp/select)
            y = jnp.maximum(y, 0.2 * y)
        o_ref[...] = y.astype(o_ref.dtype)


def _pick_tile(dim, candidates):
    for c in candidates:
        if c <= dim and dim % c == 0:
            return c
    return dim  # fall back to the full dim ("block equals full dim" exception)


def _pick_k_tile(k):
    if k <= 512:
        return k
    for c in (1536, 1152, 768, 512, 384, 256, 128):  # multiples of 128
        if k % c == 0:
            return c
    return k


def matmul_bias_act(x, w, b, act, out_dtype=jnp.bfloat16):
    """(M, K) @ (K, N) + b, optional LeakyReLU(0.2).  bf16 in, f32 accumulate."""
    M, K = x.shape
    _, Nout = w.shape
    x = x.astype(jnp.bfloat16)
    w = w.astype(jnp.bfloat16)
    b2 = b.reshape(1, Nout).astype(jnp.float32)

    tm = _pick_tile(M, (512, 256, 128, 64, 32, 16, 8))
    tn = _pick_tile(Nout, (512, 256, 128))
    tk = _pick_k_tile(K)
    nk = K // tk

    cost = pl.CostEstimate(
        flops=2 * M * K * Nout,
        transcendentals=0,
        bytes_accessed=(M * K * 2 + K * Nout * 2 + Nout * 4
                        + M * Nout * jnp.dtype(out_dtype).itemsize),
    )

    return pl.pallas_call(
        partial(_mm_bias_act_kernel, act=act, nk=nk),
        out_shape=jax.ShapeDtypeStruct((M, Nout), out_dtype),
        grid=(M // tm, Nout // tn, nk),
        in_specs=[
            pl.BlockSpec((tm, tk), lambda i, j, k: (i, k)),
            pl.BlockSpec((tk, tn), lambda i, j, k: (k, j)),
            pl.BlockSpec((1, tn), lambda i, j, k: (0, j)),
        ],
        out_specs=pl.BlockSpec((tm, tn), lambda i, j, k: (i, j)),
        scratch_shapes=[pltpu.VMEM((tm, tn), jnp.float32)],
        compiler_params=pltpu.CompilerParams(
            dimension_semantics=("parallel", "parallel", "arbitrary"),
            vmem_limit_bytes=40 * 1024 * 1024,  # keeps double-buffering alive on v7x (64 MiB VMEM)
        ),
        cost_estimate=cost,
    )(x, w, b2)


# -----------------------------------------------------------------------------
# torch.lerp fade-in: grid-tiled, lane-dense elementwise kernel
# -----------------------------------------------------------------------------
def _lerp_kernel(a_ref, b_ref, alpha_ref, o_ref):
    alpha = alpha_ref[0, 0]
    a = a_ref[...].astype(jnp.float32)
    b = b_ref[...].astype(jnp.float32)
    o_ref[...] = (a + alpha * (b - a)).astype(o_ref.dtype)


def lerp_pallas(a, b, alpha):
    """torch.lerp(a, b, alpha) = a + alpha * (b - a), elementwise."""
    orig_shape = a.shape
    dtype = a.dtype
    total = a.size
    lane = 1024  # 8 sublanes x 128 lanes -> lane-dense, unmasked stores
    pad = (-total) % lane
    a_flat = a.reshape(-1)
    b_flat = b.reshape(-1)
    if pad:
        a_flat = jnp.pad(a_flat, (0, pad))
        b_flat = jnp.pad(b_flat, (0, pad))
    rows = (total + pad) // lane
    a2 = a_flat.reshape(rows, lane)
    b2 = b_flat.reshape(rows, lane)
    tr = _pick_tile(rows, (512, 256, 128, 64, 32, 16, 8))
    alpha_arr = jnp.asarray(alpha, jnp.float32).reshape(1, 1)

    out = pl.pallas_call(
        _lerp_kernel,
        out_shape=jax.ShapeDtypeStruct((rows, lane), dtype),
        grid=(rows // tr,),
        in_specs=[
            pl.BlockSpec((tr, lane), lambda i: (i, 0)),
            pl.BlockSpec((tr, lane), lambda i: (i, 0)),
            pl.BlockSpec((1, 1), lambda i: (0, 0)),
        ],
        out_specs=pl.BlockSpec((tr, lane), lambda i: (i, 0)),
        compiler_params=pltpu.CompilerParams(dimension_semantics=("parallel",)),
    )(a2, b2, alpha_arr)
    return out.reshape(-1)[:total].reshape(orig_shape)


# -----------------------------------------------------------------------------
# Conv / downsample building blocks (im2col glue in XLA, matmul in Pallas)
# -----------------------------------------------------------------------------
def conv3x3(x, wb, stride, act):
    """3x3 conv, padding=1, given stride, NHWC bf16 activations."""
    # TODO(synk): replace the XLA-side im2col with an in-kernel halo /
    #             tap-accumulation conv to cut the ~9x HBM traffic further.
    w, b = wb
    N, H, W, C = x.shape
    Cout = w.shape[-1]
    Ho = (H - 1) // stride + 1
    Wo = (W - 1) // stride + 1

    xp = jnp.pad(x, ((0, 0), (1, 1), (1, 1), (0, 0)))
    patches = []
    for kh in range(3):
        for kw in range(3):
            patches.append(
                lax.slice(
                    xp,
                    (0, kh, kw, 0),
                    (N, kh + (Ho - 1) * stride + 1, kw + (Wo - 1) * stride + 1, C),
                    (1, stride, stride, 1),
                )
            )
    cols = jnp.concatenate(patches, axis=-1).reshape(N * Ho * Wo, 9 * C)
    wm = w.reshape(9 * C, Cout)  # (kh, kw, ci) ordering matches patch concat order
    y = matmul_bias_act(cols, wm, b, act=act, out_dtype=jnp.bfloat16)
    return y.reshape(N, Ho, Wo, Cout)


def downsample_half(x):
    # F.interpolate(scale_factor=0.5, mode='bilinear', align_corners=False)
    # with an exact /2 ratio is identical to 2x2 average pooling.
    N, H, W, C = x.shape
    return x.reshape(N, H // 2, 2, W // 2, 2, C).mean(axis=(2, 4))


# -----------------------------------------------------------------------------
# Parameter construction (deterministic, mirrors Discriminator.__init__)
# -----------------------------------------------------------------------------
def _conv_init(key, cin, cout):
    kw_, kb_ = jax.random.split(key)
    scale = 1.0 / jnp.sqrt(9.0 * cin)
    w = (jax.random.normal(kw_, (3, 3, cin, cout), jnp.float32) * scale).astype(jnp.bfloat16)
    b = jax.random.normal(kb_, (cout,), jnp.float32) * 0.01
    return w, b


def _linear_init(key, cin, cout):
    kw_, kb_ = jax.random.split(key)
    scale = 1.0 / jnp.sqrt(float(cin))
    w = (jax.random.normal(kw_, (cin, cout), jnp.float32) * scale).astype(jnp.bfloat16)
    b = jax.random.normal(kb_, (cout,), jnp.float32) * 0.01
    return w, b


def init_discriminator_params(key, image_resolution, image_channels=3, max_channels=512):
    L = int(log2(image_resolution))
    channels = [min(64 * 2 ** i, max_channels) for i in range(L)]
    channels = [image_channels] + channels

    params = {"rgb": [], "pre": []}
    inner = channels[:-2]
    for cin, cout in zip(inner[:-1], inner[1:]):
        key, k1, k2, k3 = jax.random.split(key, 4)
        params["rgb"].append(_conv_init(k1, image_channels, cin))
        params["pre"].append((_conv_init(k2, cin, cout), _conv_init(k3, cout, cout)))

    cl = channels[-1]
    key, k4, k5, k6 = jax.random.split(key, 4)
    params["final_conv"] = _conv_init(k4, cl, cl)
    fc1_w, fc1_b = _linear_init(k5, cl * 4 * 4, cl)
    # Pre-permute fc1 rows (one-time) from NCHW-flatten to NHWC-flatten order,
    # removing the activation transpose before the flatten in the forward pass.
    fc1_w = fc1_w.reshape(cl, 4, 4, cl).transpose(1, 2, 0, 3).reshape(cl * 4 * 4, cl)
    params["fc1"] = (fc1_w, fc1_b)
    params["fc2"] = _linear_init(k6, cl, 1)
    return params


# -----------------------------------------------------------------------------
# Forward pass (mirrors Discriminator.forward)
# -----------------------------------------------------------------------------
@partial(jax.jit, static_argnames=("L", "resolution"))
def discriminator_forward(params, x_nchw, L, resolution, alpha):
    rlog2 = int(log2(resolution))
    assert rlog2 <= L, "resolution should be smaller than image_resolution"
    start = L - rlog2

    x = jnp.transpose(x_nchw, (0, 2, 3, 1)).astype(jnp.float32)  # NCHW -> NHWC
    half = downsample_half(x).astype(jnp.bfloat16)
    x = x.astype(jnp.bfloat16)

    half = conv3x3(half, params["rgb"][start + 1], stride=1, act=True)

    y = conv3x3(x, params["rgb"][start], stride=1, act=True)
    pd_a, pd_b = params["pre"][start]
    y = conv3x3(y, pd_a, stride=2, act=True)
    y = conv3x3(y, pd_b, stride=1, act=True)

    y = lerp_pallas(half, y, alpha)  # torch.lerp(half_x, x, alpha)

    for pd_a, pd_b in params["pre"][start + 1:]:
        y = conv3x3(y, pd_a, stride=2, act=True)
        y = conv3x3(y, pd_b, stride=1, act=True)

    # final: conv (no activation) -> Flatten (NHWC; fc1 rows pre-permuted)
    #        -> Linear -> LReLU -> Linear
    y = conv3x3(y, params["final_conv"], stride=1, act=False)
    N = y.shape[0]
    y = y.reshape(N, -1)
    y = matmul_bias_act(y, params["fc1"][0], params["fc1"][1], act=True,
                        out_dtype=jnp.bfloat16)
    y = matmul_bias_act(y, params["fc2"][0], params["fc2"][1], act=False,
                        out_dtype=jnp.float32)
    return y


# -----------------------------------------------------------------------------
if __name__ == "__main__":
    image_resolution = 16
    image_channels = 3
    max_channels = 64     # keep channel widths small for the test
    batch = 2

    key = jax.random.PRNGKey(0)
    kp, kx = jax.random.split(key)
    L = int(log2(image_resolution))
    params = init_discriminator_params(kp, image_resolution, image_channels, max_channels)
    x = jax.random.normal(
        kx, (batch, image_channels, image_resolution, image_resolution), jnp.float32
    )

    out = discriminator_forward(params, x, L=L, resolution=image_resolution, alpha=0.5)
    out = jax.block_until_ready(out)
    assert out.shape == (batch, 1)
    assert jnp.all(jnp.isfinite(out))
    print("KERNEL_OK")
</pallas_src>

<mosaic_0001>
module attributes {stable_mosaic.version = 11 : i64} {
  func.func @_mm_bias_act_kernel(%arg0: i32, %arg1: i32, %arg2: i32, %arg3: memref<512x27xbf16, #tpu.memory_space<vmem>>, %arg4: memref<27x3xbf16, #tpu.memory_space<vmem>>, %arg5: memref<1x3xf32, #tpu.memory_space<vmem>>, %arg6: memref<512x3xbf16, #tpu.memory_space<vmem>>, %arg7: memref<512x3xf32, #tpu.memory_space<vmem>>) attributes {dimension_semantics = [#tpu.dimension_semantics<parallel>, #tpu.dimension_semantics<parallel>, #tpu.dimension_semantics<arbitrary>], iteration_bounds = array<i64: 1, 1, 1>, scalar_prefetch = 0 : i64, scratch_operands = 1 : i64, tpu.core_type = #tpu.core_type<tc>, window_params = [{transform_indices = @transform_0, window_bounds = array<i64: 512, 27>}, {transform_indices = @transform_1, window_bounds = array<i64: 27, 3>}, {transform_indices = @transform_2, window_bounds = array<i64: 1, 3>}, {transform_indices = @transform_3, window_bounds = array<i64: 512, 3>}]} {
    %c0_i32 = arith.constant 0 : i32
    %0 = arith.cmpi eq, %arg2, %c0_i32 : i32
    %1 = arith.extui %0 : i1 to i32
    %c0_i32_0 = arith.constant 0 : i32
    %2 = arith.cmpi ne, %1, %c0_i32_0 : i32
    scf.if %2 {
      %cst_10 = arith.constant 0.000000e+00 : f32
      %12 = vector.broadcast %cst_10 : f32 to vector<512x3xf32>
      %c0_11 = arith.constant 0 : index
      %c0_12 = arith.constant 0 : index
      %13 = vector.load %arg7[%c0_11, %c0_12] : memref<512x3xf32, #tpu.memory_space<vmem>>, vector<512x3xf32>
      tpu.vector_store %arg7[%c0_11, %c0_12], %12 {strides = array<i32>} : memref<512x3xf32, #tpu.memory_space<vmem>>, vector<512x3xf32>,
    } else {
    }
    %c0 = arith.constant 0 : index
    %c0_1 = arith.constant 0 : index
    %3 = vector.load %arg7[%c0, %c0_1] : memref<512x3xf32, #tpu.memory_space<vmem>>, vector<512x3xf32>
    %c0_2 = arith.constant 0 : index
    %c0_3 = arith.constant 0 : index
    %4 = vector.load %arg3[%c0_2, %c0_3] : memref<512x27xbf16, #tpu.memory_space<vmem>>, vector<512x27xbf16>
    %c0_4 = arith.constant 0 : index
    %c0_5 = arith.constant 0 : index
    %5 = vector.load %arg4[%c0_4, %c0_5] : memref<27x3xbf16, #tpu.memory_space<vmem>>, vector<27x3xbf16>
    %cst = arith.constant dense<0.000000e+00> : vector<512x3xf32>
    %6 = tpu.matmul %4, %5, %cst {dimension_numbers = #tpu.dot_dimension_numbers<[1], [0], [0], [1], [0, 0, 1, 1], [], []>} : vector<512x27xbf16>, vector<27x3xbf16>, vector<512x3xf32> -> vector<512x3xf32>
    %7 = arith.addf %3, %6 : vector<512x3xf32>
    %c0_6 = arith.constant 0 : index
    %c0_7 = arith.constant 0 : index
    %8 = vector.load %arg7[%c0_6, %c0_7] : memref<512x3xf32, #tpu.memory_space<vmem>>, vector<512x3xf32>
    tpu.vector_store %arg7[%c0_6, %c0_7], %7 {strides = array<i32>} : memref<512x3xf32, #tpu.memory_space<vmem>>, vector<512x3xf32>,
    %c0_i32_8 = arith.constant 0 : i32
    %9 = arith.cmpi eq, %arg2, %c0_i32_8 : i32
    %10 = arith.extui %9 : i1 to i32
    %c0_i32_9 = arith.constant 0 : i32
    %11 = arith.cmpi ne, %10, %c0_i32_9 : i32
    scf.if %11 {
      %c0_10 = arith.constant 0 : index
      %c0_11 = arith.constant 0 : index
      %12 = vector.load %arg7[%c0_10, %c0_11] : memref<512x3xf32, #tpu.memory_space<vmem>>, vector<512x3xf32>
      %c0_12 = arith.constant 0 : index
      %c0_13 = arith.constant 0 : index
      %13 = vector.load %arg5[%c0_12, %c0_13] : memref<1x3xf32, #tpu.memory_space<vmem>>, vector<1x3xf32>
      %14 = vector.broadcast %13 : vector<1x3xf32> to vector<512x3xf32>
      %15 = arith.addf %12, %14 : vector<512x3xf32>
      %cst_14 = arith.constant 2.000000e-01 : f32
      %16 = vector.broadcast %cst_14 : f32 to vector<512x3xf32>
      %17 = arith.mulf %16, %15 : vector<512x3xf32>
      %18 = arith.maximumf %15, %17 : vector<512x3xf32>
      %19 = arith.truncf %18 : vector<512x3xf32> to vector<512x3xbf16>
      %c0_15 = arith.constant 0 : index
      %c0_16 = arith.constant 0 : index
      %20 = vector.load %arg6[%c0_15, %c0_16] : memref<512x3xbf16, #tpu.memory_space<vmem>>, vector<512x3xbf16>
      tpu.vector_store %arg6[%c0_15, %c0_16], %19 {strides = array<i32>} : memref<512x3xbf16, #tpu.memory_space<vmem>>, vector<512x3xbf16>,
    } else {
    }
    return
  }
  func.func @transform_0(%arg0: i32, %arg1: i32, %arg2: i32) -> (i32, i32) {
    %c0_i32 = arith.constant 0 : i32
    return %arg0, %arg2 : i32, i32
  }
  func.func @transform_1(%arg0: i32, %arg1: i32, %arg2: i32) -> (i32, i32) {
    %c0_i32 = arith.constant 0 : i32
    return %arg2, %arg1 : i32, i32
  }
  func.func @transform_2(%arg0: i32, %arg1: i32, %arg2: i32) -> (i32, i32) {
    %c0_i32 = arith.constant 0 : i32
    %c0_i32_0 = arith.constant 0 : i32
    return %c0_i32, %arg1 : i32, i32
  }
  func.func @transform_3(%arg0: i32, %arg1: i32, %arg2: i32) -> (i32, i32) {
    %c0_i32 = arith.constant 0 : i32
    return %arg0, %arg1 : i32, i32
  }
}

module attributes {stable_mosaic.version = 11 : i64} {
  func.func @_mm_bias_act_kernel(%arg0: i32, %arg1: i32, %arg2: i32, %arg3: memref<128x27xbf16, #tpu.memory_space<vmem>>, %arg4: memref<27x64xbf16, #tpu.memory_space<vmem>>, %arg5: memref<1x64xf32, #tpu.memory_space<vmem>>, %arg6: memref<128x64xbf16, #tpu.memory_space<vmem>>, %arg7: memref<128x64xf32, #tpu.memory_space<vmem>>) attributes {dimension_semantics = [#tpu.dimension_semantics<parallel>, #tpu.dimension_semantics<parallel>, #tpu.dimension_semantics<arbitrary>], iteration_bounds = array<i64: 1, 1, 1>, scalar_prefetch = 0 : i64, scratch_operands = 1 : i64, tpu.core_type = #tpu.core_type<tc>, window_params = [{transform_indices = @transform_0, window_bounds = array<i64: 128, 27>}, {transform_indices = @transform_1, window_bounds = array<i64: 27, 64>}, {transform_indices = @transform_2, window_bounds = array<i64: 1, 64>}, {transform_indices = @transform_3, window_bounds = array<i64: 128, 64>}]} {
    %c0_i32 = arith.constant 0 : i32
    %0 = arith.cmpi eq, %arg2, %c0_i32 : i32
    %1 = arith.extui %0 : i1 to i32
    %c0_i32_0 = arith.constant 0 : i32
    %2 = arith.cmpi ne, %1, %c0_i32_0 : i32
    scf.if %2 {
      %cst_10 = arith.constant 0.000000e+00 : f32
      %12 = vector.broadcast %cst_10 : f32 to vector<128x64xf32>
      %c0_11 = arith.constant 0 : index
      %c0_12 = arith.constant 0 : index
      %13 = vector.load %arg7[%c0_11, %c0_12] : memref<128x64xf32, #tpu.memory_space<vmem>>, vector<128x64xf32>
      tpu.vector_store %arg7[%c0_11, %c0_12], %12 {strides = array<i32>} : memref<128x64xf32, #tpu.memory_space<vmem>>, vector<128x64xf32>,
    } else {
    }
    %c0 = arith.constant 0 : index
    %c0_1 = arith.constant 0 : index
    %3 = vector.load %arg7[%c0, %c0_1] : memref<128x64xf32, #tpu.memory_space<vmem>>, vector<128x64xf32>
    %c0_2 = arith.constant 0 : index
    %c0_3 = arith.constant 0 : index
    %4 = vector.load %arg3[%c0_2, %c0_3] : memref<128x27xbf16, #tpu.memory_space<vmem>>, vector<128x27xbf16>
    %c0_4 = arith.constant 0 : index
    %c0_5 = arith.constant 0 : index
    %5 = vector.load %arg4[%c0_4, %c0_5] : memref<27x64xbf16, #tpu.memory_space<vmem>>, vector<27x64xbf16>
    %cst = arith.constant dense<0.000000e+00> : vector<128x64xf32>
    %6 = tpu.matmul %4, %5, %cst {dimension_numbers = #tpu.dot_dimension_numbers<[1], [0], [0], [1], [0, 0, 1, 1], [], []>} : vector<128x27xbf16>, vector<27x64xbf16>, vector<128x64xf32> -> vector<128x64xf32>
    %7 = arith.addf %3, %6 : vector<128x64xf32>
    %c0_6 = arith.constant 0 : index
    %c0_7 = arith.constant 0 : index
    %8 = vector.load %arg7[%c0_6, %c0_7] : memref<128x64xf32, #tpu.memory_space<vmem>>, vector<128x64xf32>
    tpu.vector_store %arg7[%c0_6, %c0_7], %7 {strides = array<i32>} : memref<128x64xf32, #tpu.memory_space<vmem>>, vector<128x64xf32>,
    %c0_i32_8 = arith.constant 0 : i32
    %9 = arith.cmpi eq, %arg2, %c0_i32_8 : i32
    %10 = arith.extui %9 : i1 to i32
    %c0_i32_9 = arith.constant 0 : i32
    %11 = arith.cmpi ne, %10, %c0_i32_9 : i32
    scf.if %11 {
      %c0_10 = arith.constant 0 : index
      %c0_11 = arith.constant 0 : index
      %12 = vector.load %arg7[%c0_10, %c0_11] : memref<128x64xf32, #tpu.memory_space<vmem>>, vector<128x64xf32>
      %c0_12 = arith.constant 0 : index
      %c0_13 = arith.constant 0 : index
      %13 = vector.load %arg5[%c0_12, %c0_13] : memref<1x64xf32, #tpu.memory_space<vmem>>, vector<1x64xf32>
      %14 = vector.broadcast %13 : vector<1x64xf32> to vector<128x64xf32>
      %15 = arith.addf %12, %14 : vector<128x64xf32>
      %cst_14 = arith.constant 2.000000e-01 : f32
      %16 = vector.broadcast %cst_14 : f32 to vector<128x64xf32>
      %17 = arith.mulf %16, %15 : vector<128x64xf32>
      %18 = arith.maximumf %15, %17 : vector<128x64xf32>
      %19 = arith.truncf %18 : vector<128x64xf32> to vector<128x64xbf16>
      %c0_15 = arith.constant 0 : index
      %c0_16 = arith.constant 0 : index
      %20 = vector.load %arg6[%c0_15, %c0_16] : memref<128x64xbf16, #tpu.memory_space<vmem>>, vector<128x64xbf16>
      tpu.vector_store %arg6[%c0_15, %c0_16], %19 {strides = array<i32>} : memref<128x64xbf16, #tpu.memory_space<vmem>>, vector<128x64xbf16>,
    } else {
    }
    return
  }
  func.func @transform_0(%arg0: i32, %arg1: i32, %arg2: i32) -> (i32, i32) {
    %c0_i32 = arith.constant 0 : i32
    return %arg0, %arg2 : i32, i32
  }
  func.func @transform_1(%arg0: i32, %arg1: i32, %arg2: i32) -> (i32, i32) {
    %c0_i32 = arith.constant 0 : i32
    return %arg2, %arg1 : i32, i32
  }
  func.func @transform_2(%arg0: i32, %arg1: i32, %arg2: i32) -> (i32, i32) {
    %c0_i32 = arith.constant 0 : i32
    %c0_i32_0 = arith.constant 0 : i32
    return %c0_i32, %arg1 : i32, i32
  }
  func.func @transform_3(%arg0: i32, %arg1: i32, %arg2: i32) -> (i32, i32) {
    %c0_i32 = arith.constant 0 : i32
    return %arg0, %arg1 : i32, i32
  }
}

module attributes {stable_mosaic.version = 11 : i64} {
  func.func @_mm_bias_act_kernel(%arg0: i32, %arg1: i32, %arg2: i32, %arg3: memref<128x576xbf16, #tpu.memory_space<vmem>>, %arg4: memref<576x64xbf16, #tpu.memory_space<vmem>>, %arg5: memref<1x64xf32, #tpu.memory_space<vmem>>, %arg6: memref<128x64xbf16, #tpu.memory_space<vmem>>, %arg7: memref<128x64xf32, #tpu.memory_space<vmem>>) attributes {dimension_semantics = [#tpu.dimension_semantics<parallel>, #tpu.dimension_semantics<parallel>, #tpu.dimension_semantics<arbitrary>], iteration_bounds = array<i64: 1, 1, 1>, scalar_prefetch = 0 : i64, scratch_operands = 1 : i64, tpu.core_type = #tpu.core_type<tc>, window_params = [{transform_indices = @transform_0, window_bounds = array<i64: 128, 576>}, {transform_indices = @transform_1, window_bounds = array<i64: 576, 64>}, {transform_indices = @transform_2, window_bounds = array<i64: 1, 64>}, {transform_indices = @transform_3, window_bounds = array<i64: 128, 64>}]} {
    %c0_i32 = arith.constant 0 : i32
    %0 = arith.cmpi eq, %arg2, %c0_i32 : i32
    %1 = arith.extui %0 : i1 to i32
    %c0_i32_0 = arith.constant 0 : i32
    %2 = arith.cmpi ne, %1, %c0_i32_0 : i32
    scf.if %2 {
      %cst_10 = arith.constant 0.000000e+00 : f32
      %12 = vector.broadcast %cst_10 : f32 to vector<128x64xf32>
      %c0_11 = arith.constant 0 : index
      %c0_12 = arith.constant 0 : index
      %13 = vector.load %arg7[%c0_11, %c0_12] : memref<128x64xf32, #tpu.memory_space<vmem>>, vector<128x64xf32>
      tpu.vector_store %arg7[%c0_11, %c0_12], %12 {strides = array<i32>} : memref<128x64xf32, #tpu.memory_space<vmem>>, vector<128x64xf32>,
    } else {
    }
    %c0 = arith.constant 0 : index
    %c0_1 = arith.constant 0 : index
    %3 = vector.load %arg7[%c0, %c0_1] : memref<128x64xf32, #tpu.memory_space<vmem>>, vector<128x64xf32>
    %c0_2 = arith.constant 0 : index
    %c0_3 = arith.constant 0 : index
    %4 = vector.load %arg3[%c0_2, %c0_3] : memref<128x576xbf16, #tpu.memory_space<vmem>>, vector<128x576xbf16>
    %c0_4 = arith.constant 0 : index
    %c0_5 = arith.constant 0 : index
    %5 = vector.load %arg4[%c0_4, %c0_5] : memref<576x64xbf16, #tpu.memory_space<vmem>>, vector<576x64xbf16>
    %cst = arith.constant dense<0.000000e+00> : vector<128x64xf32>
    %6 = tpu.matmul %4, %5, %cst {dimension_numbers = #tpu.dot_dimension_numbers<[1], [0], [0], [1], [0, 0, 1, 1], [], []>} : vector<128x576xbf16>, vector<576x64xbf16>, vector<128x64xf32> -> vector<128x64xf32>
    %7 = arith.addf %3, %6 : vector<128x64xf32>
    %c0_6 = arith.constant 0 : index
    %c0_7 = arith.constant 0 : index
    %8 = vector.load %arg7[%c0_6, %c0_7] : memref<128x64xf32, #tpu.memory_space<vmem>>, vector<128x64xf32>
    tpu.vector_store %arg7[%c0_6, %c0_7], %7 {strides = array<i32>} : memref<128x64xf32, #tpu.memory_space<vmem>>, vector<128x64xf32>,
    %c0_i32_8 = arith.constant 0 : i32
    %9 = arith.cmpi eq, %arg2, %c0_i32_8 : i32
    %10 = arith.extui %9 : i1 to i32
    %c0_i32_9 = arith.constant 0 : i32
    %11 = arith.cmpi ne, %10, %c0_i32_9 : i32
    scf.if %11 {
      %c0_10 = arith.constant 0 : index
      %c0_11 = arith.constant 0 : index
      %12 = vector.load %arg7[%c0_10, %c0_11] : memref<128x64xf32, #tpu.memory_space<vmem>>, vector<128x64xf32>
      %c0_12 = arith.constant 0 : index
      %c0_13 = arith.constant 0 : index
      %13 = vector.load %arg5[%c0_12, %c0_13] : memref<1x64xf32, #tpu.memory_space<vmem>>, vector<1x64xf32>
      %14 = vector.broadcast %13 : vector<1x64xf32> to vector<128x64xf32>
      %15 = arith.addf %12, %14 : vector<128x64xf32>
      %cst_14 = arith.constant 2.000000e-01 : f32
      %16 = vector.broadcast %cst_14 : f32 to vector<128x64xf32>
      %17 = arith.mulf %16, %15 : vector<128x64xf32>
      %18 = arith.maximumf %15, %17 : vector<128x64xf32>
      %19 = arith.truncf %18 : vector<128x64xf32> to vector<128x64xbf16>
      %c0_15 = arith.constant 0 : index
      %c0_16 = arith.constant 0 : index
      %20 = vector.load %arg6[%c0_15, %c0_16] : memref<128x64xbf16, #tpu.memory_space<vmem>>, vector<128x64xbf16>
      tpu.vector_store %arg6[%c0_15, %c0_16], %19 {strides = array<i32>} : memref<128x64xbf16, #tpu.memory_space<vmem>>, vector<128x64xbf16>,
    } else {
    }
    return
  }
  func.func @transform_0(%arg0: i32, %arg1: i32, %arg2: i32) -> (i32, i32) {
    %c0_i32 = arith.constant 0 : i32
    return %arg0, %arg2 : i32, i32
  }
  func.func @transform_1(%arg0: i32, %arg1: i32, %arg2: i32) -> (i32, i32) {
    %c0_i32 = arith.constant 0 : i32
    return %arg2, %arg1 : i32, i32
  }
  func.func @transform_2(%arg0: i32, %arg1: i32, %arg2: i32) -> (i32, i32) {
    %c0_i32 = arith.constant 0 : i32
    %c0_i32_0 = arith.constant 0 : i32
    return %c0_i32, %arg1 : i32, i32
  }
  func.func @transform_3(%arg0: i32, %arg1: i32, %arg2: i32) -> (i32, i32) {
    %c0_i32 = arith.constant 0 : i32
    return %arg0, %arg1 : i32, i32
  }
}

module attributes {stable_mosaic.version = 11 : i64} {
  func.func @_lerp_kernel(%arg0: i32, %arg1: memref<8x1024xbf16, #tpu.memory_space<vmem>>, %arg2: memref<8x1024xbf16, #tpu.memory_space<vmem>>, %arg3: memref<1x1xf32, #tpu.memory_space<vmem>>, %arg4: memref<8x1024xbf16, #tpu.memory_space<vmem>>) attributes {dimension_semantics = [#tpu.dimension_semantics<parallel>], iteration_bounds = array<i64: 1>, scalar_prefetch = 0 : i64, scratch_operands = 0 : i64, tpu.core_type = #tpu.core_type<tc>, window_params = [{transform_indices = @transform_0, window_bounds = array<i64: 8, 1024>}, {transform_indices = @transform_1, window_bounds = array<i64: 8, 1024>}, {pipeline_mode = #tpu.pipeline_mode<synchronous>, transform_indices = @transform_2, window_bounds = array<i64: 1, 1>}, {transform_indices = @transform_3, window_bounds = array<i64: 8, 1024>}]} {
    %c0 = arith.constant 0 : index
    %c0_0 = arith.constant 0 : index
    %0 = vector.load %arg3[%c0, %c0_0] : memref<1x1xf32, #tpu.memory_space<vmem>>, vector<1x1xf32>
    %1 = vector.extract %0[0, 0] : f32 from vector<1x1xf32>
    %c0_1 = arith.constant 0 : index
    %c0_2 = arith.constant 0 : index
    %2 = vector.load %arg1[%c0_1, %c0_2] : memref<8x1024xbf16, #tpu.memory_space<vmem>>, vector<8x1024xbf16>
    %3 = arith.extf %2 : vector<8x1024xbf16> to vector<8x1024xf32>
    %c0_3 = arith.constant 0 : index
    %c0_4 = arith.constant 0 : index
    %4 = vector.load %arg2[%c0_3, %c0_4] : memref<8x1024xbf16, #tpu.memory_space<vmem>>, vector<8x1024xbf16>
    %5 = arith.extf %4 : vector<8x1024xbf16> to vector<8x1024xf32>
    %6 = arith.subf %5, %3 : vector<8x1024xf32>
    %7 = vector.broadcast %1 : f32 to vector<8x1024xf32>
    %8 = arith.mulf %7, %6 : vector<8x1024xf32>
    %9 = arith.addf %3, %8 : vector<8x1024xf32>
    %10 = arith.truncf %9 : vector<8x1024xf32> to vector<8x1024xbf16>
    %c0_5 = arith.constant 0 : index
    %c0_6 = arith.constant 0 : index
    %11 = vector.load %arg4[%c0_5, %c0_6] : memref<8x1024xbf16, #tpu.memory_space<vmem>>, vector<8x1024xbf16>
    tpu.vector_store %arg4[%c0_5, %c0_6], %10 {strides = array<i32>} : memref<8x1024xbf16, #tpu.memory_space<vmem>>, vector<8x1024xbf16>,
    return
  }
  func.func @transform_0(%arg0: i32) -> (i32, i32) {
    %c0_i32 = arith.constant 0 : i32
    %c0_i32_0 = arith.constant 0 : i32
    return %arg0, %c0_i32 : i32, i32
  }
  func.func @transform_1(%arg0: i32) -> (i32, i32) {
    %c0_i32 = arith.constant 0 : i32
    %c0_i32_0 = arith.constant 0 : i32
    return %arg0, %c0_i32 : i32, i32
  }
  func.func @transform_2(%arg0: i32) -> (i32, i32) {
    %c0_i32 = arith.constant 0 : i32
    %c0_i32_0 = arith.constant 0 : i32
    %c0_i32_1 = arith.constant 0 : i32
    return %c0_i32, %c0_i32_0 : i32, i32
  }
  func.func @transform_3(%arg0: i32) -> (i32, i32) {
    %c0_i32 = arith.constant 0 : i32
    %c0_i32_0 = arith.constant 0 : i32
    return %arg0, %c0_i32 : i32, i32
  }
}

module attributes {stable_mosaic.version = 11 : i64} {
  func.func @_mm_bias_act_kernel(%arg0: i32, %arg1: i32, %arg2: i32, %arg3: memref<32x576xbf16, #tpu.memory_space<vmem>>, %arg4: memref<576x64xbf16, #tpu.memory_space<vmem>>, %arg5: memref<1x64xf32, #tpu.memory_space<vmem>>, %arg6: memref<32x64xbf16, #tpu.memory_space<vmem>>, %arg7: memref<32x64xf32, #tpu.memory_space<vmem>>) attributes {dimension_semantics = [#tpu.dimension_semantics<parallel>, #tpu.dimension_semantics<parallel>, #tpu.dimension_semantics<arbitrary>], iteration_bounds = array<i64: 1, 1, 1>, scalar_prefetch = 0 : i64, scratch_operands = 1 : i64, tpu.core_type = #tpu.core_type<tc>, window_params = [{transform_indices = @transform_0, window_bounds = array<i64: 32, 576>}, {transform_indices = @transform_1, window_bounds = array<i64: 576, 64>}, {transform_indices = @transform_2, window_bounds = array<i64: 1, 64>}, {transform_indices = @transform_3, window_bounds = array<i64: 32, 64>}]} {
    %c0_i32 = arith.constant 0 : i32
    %0 = arith.cmpi eq, %arg2, %c0_i32 : i32
    %1 = arith.extui %0 : i1 to i32
    %c0_i32_0 = arith.constant 0 : i32
    %2 = arith.cmpi ne, %1, %c0_i32_0 : i32
    scf.if %2 {
      %cst_10 = arith.constant 0.000000e+00 : f32
      %12 = vector.broadcast %cst_10 : f32 to vector<32x64xf32>
      %c0_11 = arith.constant 0 : index
      %c0_12 = arith.constant 0 : index
      %13 = vector.load %arg7[%c0_11, %c0_12] : memref<32x64xf32, #tpu.memory_space<vmem>>, vector<32x64xf32>
      tpu.vector_store %arg7[%c0_11, %c0_12], %12 {strides = array<i32>} : memref<32x64xf32, #tpu.memory_space<vmem>>, vector<32x64xf32>,
    } else {
    }
    %c0 = arith.constant 0 : index
    %c0_1 = arith.constant 0 : index
    %3 = vector.load %arg7[%c0, %c0_1] : memref<32x64xf32, #tpu.memory_space<vmem>>, vector<32x64xf32>
    %c0_2 = arith.constant 0 : index
    %c0_3 = arith.constant 0 : index
    %4 = vector.load %arg3[%c0_2, %c0_3] : memref<32x576xbf16, #tpu.memory_space<vmem>>, vector<32x576xbf16>
    %c0_4 = arith.constant 0 : index
    %c0_5 = arith.constant 0 : index
    %5 = vector.load %arg4[%c0_4, %c0_5] : memref<576x64xbf16, #tpu.memory_space<vmem>>, vector<576x64xbf16>
    %cst = arith.constant dense<0.000000e+00> : vector<32x64xf32>
    %6 = tpu.matmul %4, %5, %cst {dimension_numbers = #tpu.dot_dimension_numbers<[1], [0], [0], [1], [0, 0, 1, 1], [], []>} : vector<32x576xbf16>, vector<576x64xbf16>, vector<32x64xf32> -> vector<32x64xf32>
    %7 = arith.addf %3, %6 : vector<32x64xf32>
    %c0_6 = arith.constant 0 : index
    %c0_7 = arith.constant 0 : index
    %8 = vector.load %arg7[%c0_6, %c0_7] : memref<32x64xf32, #tpu.memory_space<vmem>>, vector<32x64xf32>
    tpu.vector_store %arg7[%c0_6, %c0_7], %7 {strides = array<i32>} : memref<32x64xf32, #tpu.memory_space<vmem>>, vector<32x64xf32>,
    %c0_i32_8 = arith.constant 0 : i32
    %9 = arith.cmpi eq, %arg2, %c0_i32_8 : i32
    %10 = arith.extui %9 : i1 to i32
    %c0_i32_9 = arith.constant 0 : i32
    %11 = arith.cmpi ne, %10, %c0_i32_9 : i32
    scf.if %11 {
      %c0_10 = arith.constant 0 : index
      %c0_11 = arith.constant 0 : index
      %12 = vector.load %arg7[%c0_10, %c0_11] : memref<32x64xf32, #tpu.memory_space<vmem>>, vector<32x64xf32>
      %c0_12 = arith.constant 0 : index
      %c0_13 = arith.constant 0 : index
      %13 = vector.load %arg5[%c0_12, %c0_13] : memref<1x64xf32, #tpu.memory_space<vmem>>, vector<1x64xf32>
      %14 = vector.broadcast %13 : vector<1x64xf32> to vector<32x64xf32>
      %15 = arith.addf %12, %14 : vector<32x64xf32>
      %cst_14 = arith.constant 2.000000e-01 : f32
      %16 = vector.broadcast %cst_14 : f32 to vector<32x64xf32>
      %17 = arith.mulf %16, %15 : vector<32x64xf32>
      %18 = arith.maximumf %15, %17 : vector<32x64xf32>
      %19 = arith.truncf %18 : vector<32x64xf32> to vector<32x64xbf16>
      %c0_15 = arith.constant 0 : index
      %c0_16 = arith.constant 0 : index
      %20 = vector.load %arg6[%c0_15, %c0_16] : memref<32x64xbf16, #tpu.memory_space<vmem>>, vector<32x64xbf16>
      tpu.vector_store %arg6[%c0_15, %c0_16], %19 {strides = array<i32>} : memref<32x64xbf16, #tpu.memory_space<vmem>>, vector<32x64xbf16>,
    } else {
    }
    return
  }
  func.func @transform_0(%arg0: i32, %arg1: i32, %arg2: i32) -> (i32, i32) {
    %c0_i32 = arith.constant 0 : i32
    return %arg0, %arg2 : i32, i32
  }
  func.func @transform_1(%arg0: i32, %arg1: i32, %arg2: i32) -> (i32, i32) {
    %c0_i32 = arith.constant 0 : i32
    return %arg2, %arg1 : i32, i32
  }
  func.func @transform_2(%arg0: i32, %arg1: i32, %arg2: i32) -> (i32, i32) {
    %c0_i32 = arith.constant 0 : i32
    %c0_i32_0 = arith.constant 0 : i32
    return %c0_i32, %arg1 : i32, i32
  }
  func.func @transform_3(%arg0: i32, %arg1: i32, %arg2: i32) -> (i32, i32) {
    %c0_i32 = arith.constant 0 : i32
    return %arg0, %arg1 : i32, i32
  }
}

module attributes {stable_mosaic.version = 11 : i64} {
  func.func @_mm_bias_act_kernel(%arg0: i32, %arg1: i32, %arg2: i32, %arg3: memref<2x512xbf16, #tpu.memory_space<vmem>>, %arg4: memref<512x64xbf16, #tpu.memory_space<vmem>>, %arg5: memref<1x64xf32, #tpu.memory_space<vmem>>, %arg6: memref<2x64xbf16, #tpu.memory_space<vmem>>, %arg7: memref<2x64xf32, #tpu.memory_space<vmem>>) attributes {dimension_semantics = [#tpu.dimension_semantics<parallel>, #tpu.dimension_semantics<parallel>, #tpu.dimension_semantics<arbitrary>], iteration_bounds = array<i64: 1, 1, 2>, scalar_prefetch = 0 : i64, scratch_operands = 1 : i64, tpu.core_type = #tpu.core_type<tc>, window_params = [{transform_indices = @transform_0, window_bounds = array<i64: 2, 512>}, {transform_indices = @transform_1, window_bounds = array<i64: 512, 64>}, {transform_indices = @transform_2, window_bounds = array<i64: 1, 64>}, {transform_indices = @transform_3, window_bounds = array<i64: 2, 64>}]} {
    %c0_i32 = arith.constant 0 : i32
    %0 = arith.cmpi eq, %arg2, %c0_i32 : i32
    %1 = arith.extui %0 : i1 to i32
    %c0_i32_0 = arith.constant 0 : i32
    %2 = arith.cmpi ne, %1, %c0_i32_0 : i32
    scf.if %2 {
      %cst_9 = arith.constant 0.000000e+00 : f32
      %12 = vector.broadcast %cst_9 : f32 to vector<2x64xf32>
      %c0_10 = arith.constant 0 : index
      %c0_11 = arith.constant 0 : index
      %13 = vector.load %arg7[%c0_10, %c0_11] : memref<2x64xf32, #tpu.memory_space<vmem>>, vector<2x64xf32>
      tpu.vector_store %arg7[%c0_10, %c0_11], %12 {strides = array<i32>} : memref<2x64xf32, #tpu.memory_space<vmem>>, vector<2x64xf32>,
    } else {
    }
    %c0 = arith.constant 0 : index
    %c0_1 = arith.constant 0 : index
    %3 = vector.load %arg7[%c0, %c0_1] : memref<2x64xf32, #tpu.memory_space<vmem>>, vector<2x64xf32>
    %c0_2 = arith.constant 0 : index
    %c0_3 = arith.constant 0 : index
    %4 = vector.load %arg3[%c0_2, %c0_3] : memref<2x512xbf16, #tpu.memory_space<vmem>>, vector<2x512xbf16>
    %c0_4 = arith.constant 0 : index
    %c0_5 = arith.constant 0 : index
    %5 = vector.load %arg4[%c0_4, %c0_5] : memref<512x64xbf16, #tpu.memory_space<vmem>>, vector<512x64xbf16>
    %cst = arith.constant dense<0.000000e+00> : vector<2x64xf32>
    %6 = tpu.matmul %4, %5, %cst {dimension_numbers = #tpu.dot_dimension_numbers<[1], [0], [0], [1], [0, 0, 1, 1], [], []>} : vector<2x512xbf16>, vector<512x64xbf16>, vector<2x64xf32> -> vector<2x64xf32>
    %7 = arith.addf %3, %6 : vector<2x64xf32>
    %c0_6 = arith.constant 0 : index
    %c0_7 = arith.constant 0 : index
    %8 = vector.load %arg7[%c0_6, %c0_7] : memref<2x64xf32, #tpu.memory_space<vmem>>, vector<2x64xf32>
    tpu.vector_store %arg7[%c0_6, %c0_7], %7 {strides = array<i32>} : memref<2x64xf32, #tpu.memory_space<vmem>>, vector<2x64xf32>,
    %c1_i32 = arith.constant 1 : i32
    %9 = arith.cmpi eq, %arg2, %c1_i32 : i32
    %10 = arith.extui %9 : i1 to i32
    %c0_i32_8 = arith.constant 0 : i32
    %11 = arith.cmpi ne, %10, %c0_i32_8 : i32
    scf.if %11 {
      %c0_9 = arith.constant 0 : index
      %c0_10 = arith.constant 0 : index
      %12 = vector.load %arg7[%c0_9, %c0_10] : memref<2x64xf32, #tpu.memory_space<vmem>>, vector<2x64xf32>
      %c0_11 = arith.constant 0 : index
      %c0_12 = arith.constant 0 : index
      %13 = vector.load %arg5[%c0_11, %c0_12] : memref<1x64xf32, #tpu.memory_space<vmem>>, vector<1x64xf32>
      %14 = vector.broadcast %13 : vector<1x64xf32> to vector<2x64xf32>
      %15 = arith.addf %12, %14 : vector<2x64xf32>
      %cst_13 = arith.constant 2.000000e-01 : f32
      %16 = vector.broadcast %cst_13 : f32 to vector<2x64xf32>
      %17 = arith.mulf %16, %15 : vector<2x64xf32>
      %18 = arith.maximumf %15, %17 : vector<2x64xf32>
      %19 = arith.truncf %18 : vector<2x64xf32> to vector<2x64xbf16>
      %c0_14 = arith.constant 0 : index
      %c0_15 = arith.constant 0 : index
      %20 = vector.load %arg6[%c0_14, %c0_15] : memref<2x64xbf16, #tpu.memory_space<vmem>>, vector<2x64xbf16>
      tpu.vector_store %arg6[%c0_14, %c0_15], %19 {strides = array<i32>} : memref<2x64xbf16, #tpu.memory_space<vmem>>, vector<2x64xbf16>,
    } else {
    }
    return
  }
  func.func @transform_0(%arg0: i32, %arg1: i32, %arg2: i32) -> (i32, i32) {
    %c0_i32 = arith.constant 0 : i32
    return %arg0, %arg2 : i32, i32
  }
  func.func @transform_1(%arg0: i32, %arg1: i32, %arg2: i32) -> (i32, i32) {
    %c0_i32 = arith.constant 0 : i32
    return %arg2, %arg1 : i32, i32
  }
  func.func @transform_2(%arg0: i32, %arg1: i32, %arg2: i32) -> (i32, i32) {
    %c0_i32 = arith.constant 0 : i32
    %c0_i32_0 = arith.constant 0 : i32
    return %c0_i32, %arg1 : i32, i32
  }
  func.func @transform_3(%arg0: i32, %arg1: i32, %arg2: i32) -> (i32, i32) {
    %c0_i32 = arith.constant 0 : i32
    return %arg0, %arg1 : i32, i32
  }
}

module attributes {stable_mosaic.version = 11 : i64} {
  func.func @_mm_bias_act_kernel(%arg0: i32, %arg1: i32, %arg2: i32, %arg3: memref<32x576xbf16, #tpu.memory_space<vmem>>, %arg4: memref<576x64xbf16, #tpu.memory_space<vmem>>, %arg5: memref<1x64xf32, #tpu.memory_space<vmem>>, %arg6: memref<32x64xbf16, #tpu.memory_space<vmem>>, %arg7: memref<32x64xf32, #tpu.memory_space<vmem>>) attributes {dimension_semantics = [#tpu.dimension_semantics<parallel>, #tpu.dimension_semantics<parallel>, #tpu.dimension_semantics<arbitrary>], iteration_bounds = array<i64: 1, 1, 1>, scalar_prefetch = 0 : i64, scratch_operands = 1 : i64, tpu.core_type = #tpu.core_type<tc>, window_params = [{transform_indices = @transform_0, window_bounds = array<i64: 32, 576>}, {transform_indices = @transform_1, window_bounds = array<i64: 576, 64>}, {transform_indices = @transform_2, window_bounds = array<i64: 1, 64>}, {transform_indices = @transform_3, window_bounds = array<i64: 32, 64>}]} {
    %c0_i32 = arith.constant 0 : i32
    %0 = arith.cmpi eq, %arg2, %c0_i32 : i32
    %1 = arith.extui %0 : i1 to i32
    %c0_i32_0 = arith.constant 0 : i32
    %2 = arith.cmpi ne, %1, %c0_i32_0 : i32
    scf.if %2 {
      %cst_10 = arith.constant 0.000000e+00 : f32
      %12 = vector.broadcast %cst_10 : f32 to vector<32x64xf32>
      %c0_11 = arith.constant 0 : index
      %c0_12 = arith.constant 0 : index
      %13 = vector.load %arg7[%c0_11, %c0_12] : memref<32x64xf32, #tpu.memory_space<vmem>>, vector<32x64xf32>
      tpu.vector_store %arg7[%c0_11, %c0_12], %12 {strides = array<i32>} : memref<32x64xf32, #tpu.memory_space<vmem>>, vector<32x64xf32>,
    } else {
    }
    %c0 = arith.constant 0 : index
    %c0_1 = arith.constant 0 : index
    %3 = vector.load %arg7[%c0, %c0_1] : memref<32x64xf32, #tpu.memory_space<vmem>>, vector<32x64xf32>
    %c0_2 = arith.constant 0 : index
    %c0_3 = arith.constant 0 : index
    %4 = vector.load %arg3[%c0_2, %c0_3] : memref<32x576xbf16, #tpu.memory_space<vmem>>, vector<32x576xbf16>
    %c0_4 = arith.constant 0 : index
    %c0_5 = arith.constant 0 : index
    %5 = vector.load %arg4[%c0_4, %c0_5] : memref<576x64xbf16, #tpu.memory_space<vmem>>, vector<576x64xbf16>
    %cst = arith.constant dense<0.000000e+00> : vector<32x64xf32>
    %6 = tpu.matmul %4, %5, %cst {dimension_numbers = #tpu.dot_dimension_numbers<[1], [0], [0], [1], [0, 0, 1, 1], [], []>} : vector<32x576xbf16>, vector<576x64xbf16>, vector<32x64xf32> -> vector<32x64xf32>
    %7 = arith.addf %3, %6 : vector<32x64xf32>
    %c0_6 = arith.constant 0 : index
    %c0_7 = arith.constant 0 : index
    %8 = vector.load %arg7[%c0_6, %c0_7] : memref<32x64xf32, #tpu.memory_space<vmem>>, vector<32x64xf32>
    tpu.vector_store %arg7[%c0_6, %c0_7], %7 {strides = array<i32>} : memref<32x64xf32, #tpu.memory_space<vmem>>, vector<32x64xf32>,
    %c0_i32_8 = arith.constant 0 : i32
    %9 = arith.cmpi eq, %arg2, %c0_i32_8 : i32
    %10 = arith.extui %9 : i1 to i32
    %c0_i32_9 = arith.constant 0 : i32
    %11 = arith.cmpi ne, %10, %c0_i32_9 : i32
    scf.if %11 {
      %c0_10 = arith.constant 0 : index
      %c0_11 = arith.constant 0 : index
      %12 = vector.load %arg7[%c0_10, %c0_11] : memref<32x64xf32, #tpu.memory_space<vmem>>, vector<32x64xf32>
      %c0_12 = arith.constant 0 : index
      %c0_13 = arith.constant 0 : index
      %13 = vector.load %arg5[%c0_12, %c0_13] : memref<1x64xf32, #tpu.memory_space<vmem>>, vector<1x64xf32>
      %14 = vector.broadcast %13 : vector<1x64xf32> to vector<32x64xf32>
      %15 = arith.addf %12, %14 : vector<32x64xf32>
      %16 = arith.truncf %15 : vector<32x64xf32> to vector<32x64xbf16>
      %c0_14 = arith.constant 0 : index
      %c0_15 = arith.constant 0 : index
      %17 = vector.load %arg6[%c0_14, %c0_15] : memref<32x64xbf16, #tpu.memory_space<vmem>>, vector<32x64xbf16>
      tpu.vector_store %arg6[%c0_14, %c0_15], %16 {strides = array<i32>} : memref<32x64xbf16, #tpu.memory_space<vmem>>, vector<32x64xbf16>,
    } else {
    }
    return
  }
  func.func @transform_0(%arg0: i32, %arg1: i32, %arg2: i32) -> (i32, i32) {
    %c0_i32 = arith.constant 0 : i32
    return %arg0, %arg2 : i32, i32
  }
  func.func @transform_1(%arg0: i32, %arg1: i32, %arg2: i32) -> (i32, i32) {
    %c0_i32 = arith.constant 0 : i32
    return %arg2, %arg1 : i32, i32
  }
  func.func @transform_2(%arg0: i32, %arg1: i32, %arg2: i32) -> (i32, i32) {
    %c0_i32 = arith.constant 0 : i32
    %c0_i32_0 = arith.constant 0 : i32
    return %c0_i32, %arg1 : i32, i32
  }
  func.func @transform_3(%arg0: i32, %arg1: i32, %arg2: i32) -> (i32, i32) {
    %c0_i32 = arith.constant 0 : i32
    return %arg0, %arg1 : i32, i32
  }
}

module attributes {stable_mosaic.version = 11 : i64} {
  func.func @_mm_bias_act_kernel(%arg0: i32, %arg1: i32, %arg2: i32, %arg3: memref<2x64xbf16, #tpu.memory_space<vmem>>, %arg4: memref<64x1xbf16, #tpu.memory_space<vmem>>, %arg5: memref<1x1xf32, #tpu.memory_space<vmem>>, %arg6: memref<2x1xf32, #tpu.memory_space<vmem>>, %arg7: memref<2x1xf32, #tpu.memory_space<vmem>>) attributes {dimension_semantics = [#tpu.dimension_semantics<parallel>, #tpu.dimension_semantics<parallel>, #tpu.dimension_semantics<arbitrary>], iteration_bounds = array<i64: 1, 1, 1>, scalar_prefetch = 0 : i64, scratch_operands = 1 : i64, tpu.core_type = #tpu.core_type<tc>, window_params = [{transform_indices = @transform_0, window_bounds = array<i64: 2, 64>}, {transform_indices = @transform_1, window_bounds = array<i64: 64, 1>}, {transform_indices = @transform_2, window_bounds = array<i64: 1, 1>}, {transform_indices = @transform_3, window_bounds = array<i64: 2, 1>}]} {
    %c0_i32 = arith.constant 0 : i32
    %0 = arith.cmpi eq, %arg2, %c0_i32 : i32
    %1 = arith.extui %0 : i1 to i32
    %c0_i32_0 = arith.constant 0 : i32
    %2 = arith.cmpi ne, %1, %c0_i32_0 : i32
    scf.if %2 {
      %cst_10 = arith.constant 0.000000e+00 : f32
      %12 = vector.broadcast %cst_10 : f32 to vector<2x1xf32>
      %c0_11 = arith.constant 0 : index
      %c0_12 = arith.constant 0 : index
      %13 = vector.load %arg7[%c0_11, %c0_12] : memref<2x1xf32, #tpu.memory_space<vmem>>, vector<2x1xf32>
      tpu.vector_store %arg7[%c0_11, %c0_12], %12 {strides = array<i32>} : memref<2x1xf32, #tpu.memory_space<vmem>>, vector<2x1xf32>,
    } else {
    }
    %c0 = arith.constant 0 : index
    %c0_1 = arith.constant 0 : index
    %3 = vector.load %arg7[%c0, %c0_1] : memref<2x1xf32, #tpu.memory_space<vmem>>, vector<2x1xf32>
    %c0_2 = arith.constant 0 : index
    %c0_3 = arith.constant 0 : index
    %4 = vector.load %arg3[%c0_2, %c0_3] : memref<2x64xbf16, #tpu.memory_space<vmem>>, vector<2x64xbf16>
    %c0_4 = arith.constant 0 : index
    %c0_5 = arith.constant 0 : index
    %5 = vector.load %arg4[%c0_4, %c0_5] : memref<64x1xbf16, #tpu.memory_space<vmem>>, vector<64x1xbf16>
    %cst = arith.constant dense<0.000000e+00> : vector<2x1xf32>
    %6 = tpu.matmul %4, %5, %cst {dimension_numbers = #tpu.dot_dimension_numbers<[1], [0], [0], [1], [0, 0, 1, 1], [], []>} : vector<2x64xbf16>, vector<64x1xbf16>, vector<2x1xf32> -> vector<2x1xf32>
    %7 = arith.addf %3, %6 : vector<2x1xf32>
    %c0_6 = arith.constant 0 : index
    %c0_7 = arith.constant 0 : index
    %8 = vector.load %arg7[%c0_6, %c0_7] : memref<2x1xf32, #tpu.memory_space<vmem>>, vector<2x1xf32>
    tpu.vector_store %arg7[%c0_6, %c0_7], %7 {strides = array<i32>} : memref<2x1xf32, #tpu.memory_space<vmem>>, vector<2x1xf32>,
    %c0_i32_8 = arith.constant 0 : i32
    %9 = arith.cmpi eq, %arg2, %c0_i32_8 : i32
    %10 = arith.extui %9 : i1 to i32
    %c0_i32_9 = arith.constant 0 : i32
    %11 = arith.cmpi ne, %10, %c0_i32_9 : i32
    scf.if %11 {
      %c0_10 = arith.constant 0 : index
      %c0_11 = arith.constant 0 : index
      %12 = vector.load %arg7[%c0_10, %c0_11] : memref<2x1xf32, #tpu.memory_space<vmem>>, vector<2x1xf32>
      %c0_12 = arith.constant 0 : index
      %c0_13 = arith.constant 0 : index
      %13 = vector.load %arg5[%c0_12, %c0_13] : memref<1x1xf32, #tpu.memory_space<vmem>>, vector<1x1xf32>
      %14 = vector.broadcast %13 : vector<1x1xf32> to vector<2x1xf32>
      %15 = arith.addf %12, %14 : vector<2x1xf32>
      %c0_14 = arith.constant 0 : index
      %c0_15 = arith.constant 0 : index
      %16 = vector.load %arg6[%c0_14, %c0_15] : memref<2x1xf32, #tpu.memory_space<vmem>>, vector<2x1xf32>
      tpu.vector_store %arg6[%c0_14, %c0_15], %15 {strides = array<i32>} : memref<2x1xf32, #tpu.memory_space<vmem>>, vector<2x1xf32>,
    } else {
    }
    return
  }
  func.func @transform_0(%arg0: i32, %arg1: i32, %arg2: i32) -> (i32, i32) {
    %c0_i32 = arith.constant 0 : i32
    return %arg0, %arg2 : i32, i32
  }
  func.func @transform_1(%arg0: i32, %arg1: i32, %arg2: i32) -> (i32, i32) {
    %c0_i32 = arith.constant 0 : i32
    return %arg2, %arg1 : i32, i32
  }
  func.func @transform_2(%arg0: i32, %arg1: i32, %arg2: i32) -> (i32, i32) {
    %c0_i32 = arith.constant 0 : i32
    %c0_i32_0 = arith.constant 0 : i32
    return %c0_i32, %arg1 : i32, i32
  }
  func.func @transform_3(%arg0: i32, %arg1: i32, %arg2: i32) -> (i32, i32) {
    %c0_i32 = arith.constant 0 : i32
    return %arg0, %arg1 : i32, i32
  }
}

</mosaic_0001>

<bundles_post_ra>
// kernel: discriminator_forward.12
= control target key start
LH: loop header
LB: loop body
LE: loop exit
PB: predicated region body
PF: predicated region fallthrough
CT: control target
= control target key end

     0   :  { %vm148_vm0 = vcmask 1044480   ;;  %vm149_vm1 = vcmask 1045504   ;;  %v541_v1 = vmov 65535   ;;  %vm123_vm2 = vcmask 220160   ;;  %s718_s1 = inlined_call_operand.vmem [shape: bf16[27,64], index: 1, kind: input, shape index: {}]   ;;  %s719_s0 = inlined_call_operand.vmem [shape: bf16[128,27], index: 0, kind: input, shape index: {}]   ;;  %s720_s2 = inlined_call_operand.vmem [shape: f32[1,64], index: 2, kind: input, shape index: {}]   ;;  %s721_s3 = inlined_call_operand.vmem [shape: bf16[128,64], index: 3, kind: output, shape index: {}]  }
   0x1   :  { %v531_v0 = vld [vmem:[%s718_s1 + $0x8] sm:$0x3f]   ;;  %v150_v2 = vsel %vm148_vm0, 4294967295, %v541_v1  ;;  %v533_v4 = vld [vmem:[%s719_s0] sm:$0xff]   ;;  %vm19_vm3 = vcmask 523264   ;;  %v542_v8 = vmov 0.0  }
   0x2   :  { %v151_v3 = vsel %vm149_vm1, %v150_v2, 0  ;;  %v532_v6 = vld [vmem:[%s718_s1] sm:$0xff]   ;;  %509 = vmatprep.mubr.msk.bf16.mxu0 %vm123_vm2, %v533_v4  ;;  %22 = vst.msk [vmem:[#allocation2 + $0x10] sm:$0xff] %vm19_vm3, %v542_v8  ;;  %20 = vst.msk [vmem:[#allocation2] sm:$0xff] %vm19_vm3, %v542_v8  ;;  %v535_v9 = vld [vmem:[%s719_s0 + $0x8] sm:$0xff]   ;;  %vm423_vm4 = vcmask 519168  }
   0x3   :  { %v153_v5 = vand.u32 %v531_v0, %v151_v3  ;;  %v534_v7 = vld [vmem:[%s719_s0 + $0x20] sm:$0xff]   ;;  %21 = vst.msk [vmem:[#allocation2 + $0x8] sm:$0xff] %vm19_vm3, %v542_v8  ;;  %23 = vst.msk [vmem:[#allocation2 + $0x18] sm:$0xff] %vm19_vm3, %v542_v8  ;;  %v536_v10 = vld [vmem:[%s719_s0 + $0x28] sm:$0xff]  }
   0x4   :  { %24 = vst.msk [vmem:[#allocation2 + $0x20] sm:$0xff] %vm19_vm3, %v542_v8  ;;  %25 = vst.msk [vmem:[#allocation2 + $0x28] sm:$0xff] %vm19_vm3, %v542_v8  ;;  %517 = vmatprep.mubr.msk.bf16.mxu1 %vm123_vm2, %v534_v7  ;;  %v537_v11 = vld [vmem:[%s719_s0 + $0x10] sm:$0xff]   ;;  %v539_v13 = vld [vmem:[%s719_s0 + $0x18] sm:$0xff]  }
   0x5   :  { %505 = vmatprep.subr.bf16.mxu0 %v153_v5  ;;  %525 = vmatprep.subr.bf16.mxu1 %v153_v5  ;;  %26 = vst.msk [vmem:[#allocation2 + $0x30] sm:$0xff] %vm19_vm3, %v542_v8  ;;  %27 = vst.msk [vmem:[#allocation2 + $0x38] sm:$0xff] %vm19_vm3, %v542_v8  ;;  %v538_v12 = vld [vmem:[%s719_s0 + $0x30] sm:$0xff]   ;;  %v540_v14 = vld [vmem:[%s719_s0 + $0x38] sm:$0xff]  }
   0x6   :  { %28 = vst.msk [vmem:[#allocation2 + $0x40] sm:$0xff] %vm19_vm3, %v542_v8  ;;  %29 = vst.msk [vmem:[#allocation2 + $0x48] sm:$0xff] %vm19_vm3, %v542_v8  ;;  %506 = vmatpush3.bf16.msra.mxu0 %v153_v5  ;;  %527 = vmatpush3.bf16.msra.mxu1 %v153_v5  ;;  %v626_v41 = vld [vmem:[%s720_s2] ss:$0 sm:$0xff] }
   0x7   :  { %30 = vst.msk [vmem:[#allocation2 + $0x50] sm:$0xff] %vm19_vm3, %v542_v8  ;;  %31 = vst.msk [vmem:[#allocation2 + $0x58] sm:$0xff] %vm19_vm3, %v542_v8  ;;  %507 = vmatprep.subr.bf16.mxu0 %v532_v6  ;;  %526 = vmatprep.subr.bf16.mxu1 %v532_v6 }
   0x8   :  { %32 = vst.msk [vmem:[#allocation2 + $0x60] sm:$0xff] %vm19_vm3, %v542_v8  ;;  %33 = vst.msk [vmem:[#allocation2 + $0x68] sm:$0xff] %vm19_vm3, %v542_v8 }
   0x9   :  { %34 = vst.msk [vmem:[#allocation2 + $0x70] sm:$0xff] %vm19_vm3, %v542_v8  ;;  %35 = vst.msk [vmem:[#allocation2 + $0x78] sm:$0xff] %vm19_vm3, %v542_v8  ;;  %v38_v15 = vld [vmem:[#allocation2 + $0x10] sm:$0xff]  ;;  %v36_v19 = vld [vmem:[#allocation2] sm:$0xff] }
   0xa   :  { %508 = vmatpush3.bf16.msra.mxu0 %v532_v6  ;;  %528 = vmatpush3.bf16.msra.mxu1 %v532_v6  ;;  %v39_v25 = vld [vmem:[#allocation2 + $0x18] sm:$0xff]  ;;  %v37_v31 = vld [vmem:[#allocation2 + $0x8] sm:$0xff] }
   0xb   :  { %v40_v44 = vld [vmem:[#allocation2 + $0x20] sm:$0xff]  ;;  %v41_v2 = vld [vmem:[#allocation2 + $0x28] sm:$0xff] }
   0xc   :  { %v42_v37 = vld [vmem:[#allocation2 + $0x30] sm:$0xff]  ;;  %v43_v56 = vld [vmem:[#allocation2 + $0x38] sm:$0xff] }
   0xd   :  { %510 = vmatmul.mubr.msk.bf16.vlgmr.msra.gmra.mxu0 %vm123_vm2, %v535_v9  ;;  %518 = vmatmul.mubr.msk.bf16.vlgmr.msra.gmra.mxu1 %vm123_vm2, %v536_v10  ;;  %v44_v20 = vld [vmem:[#allocation2 + $0x40] sm:$0xff]  ;;  %v45_v32 = vld [vmem:[#allocation2 + $0x48] sm:$0xff] }
   0xe   :  { %513 = vmatprep.mubr.msk.bf16.mxu0 %vm123_vm2, %v537_v11  ;;  %521 = vmatprep.mubr.msk.bf16.mxu1 %vm123_vm2, %v538_v12  ;;  %v46_v16 = vld [vmem:[#allocation2 + $0x50] sm:$0xff]  ;;  %v47_v26 = vld [vmem:[#allocation2 + $0x58] sm:$0xff] }
   0xf   :  { %v48_v45 = vld [vmem:[#allocation2 + $0x60] sm:$0xff]  ;;  %v49_v3 = vld [vmem:[#allocation2 + $0x68] sm:$0xff] }
  0x10   :  { %v50_v38 = vld [vmem:[#allocation2 + $0x70] sm:$0xff]  ;;  %v51_v57 = vld [vmem:[#allocation2 + $0x78] sm:$0xff] }
  0x15   :  { %514 = vmatmul.mubr.msk.bf16.gmra.mxu0 %vm123_vm2, %v539_v13  ;;  %522 = vmatmul.mubr.msk.bf16.gmra.mxu1 %vm123_vm2, %v540_v14 }
  0xcd   :  { %v511_v17 = vpop.f32.mrf.mxu0  ;;  %v519_v18 = vpop.f32.mrf.mxu1 }
  0xce   :  { %v254_v21 = vadd.f32 %v511_v17, %v38_v15  ;;  %v262_v22 = vadd.f32 %v519_v18, %v46_v16 }
  0xcf   :  { %v189_v23 = vpop.f32.mrf.mxu0  ;;  %v221_v24 = vpop.f32.mrf.mxu1 }
  0xd0   :  { %271 = vst.msk [vmem:[#allocation2 + $0x10] sm:$0xff] %vm19_vm3, %v254_v21  ;;  %279 = vst.msk [vmem:[#allocation2 + $0x50] sm:$0xff] %vm19_vm3, %v262_v22  ;;  %v252_v27 = vadd.f32 %v189_v23, %v36_v19  ;;  %v260_v28 = vadd.f32 %v221_v24, %v44_v20 }
  0xd1   :  { %v512_v29 = vpop.f32.mrf.mxu0  ;;  %v520_v30 = vpop.f32.mrf.mxu1 }
  0xd2   :  { %269 = vst.msk [vmem:[#allocation2] sm:$0xff] %vm19_vm3, %v252_v27  ;;  %277 = vst.msk [vmem:[#allocation2 + $0x40] sm:$0xff] %vm19_vm3, %v260_v28  ;;  %v255_v33 = vadd.f32 %v512_v29, %v39_v25  ;;  %v263_v34 = vadd.f32 %v520_v30, %v47_v26 }
  0xd3   :  { %v192_v35 = vpop.f32.mrf.mxu0  ;;  %v224_v36 = vpop.f32.mrf.mxu1 }
  0xd4   :  { %272 = vst.msk [vmem:[#allocation2 + $0x18] sm:$0xff] %vm19_vm3, %v255_v33  ;;  %280 = vst.msk [vmem:[#allocation2 + $0x58] sm:$0xff] %vm19_vm3, %v263_v34  ;;  %v253_v39 = vadd.f32 %v192_v35, %v37_v31  ;;  %v261_v40 = vadd.f32 %v224_v36, %v45_v32 }
  0xd5   :  { %v515_v42 = vpop.f32.mrf.mxu0  ;;  %v523_v43 = vpop.f32.mrf.mxu1 }
  0xd6   :  { %270 = vst.msk [vmem:[#allocation2 + $0x8] sm:$0xff] %vm19_vm3, %v253_v39  ;;  %278 = vst.msk [vmem:[#allocation2 + $0x48] sm:$0xff] %vm19_vm3, %v261_v40  ;;  %v258_v46 = vadd.f32 %v515_v42, %v42_v37  ;;  %v266_v47 = vadd.f32 %v523_v43, %v50_v38 }
  0xd7   :  { %v290_v48 = vld [vmem:[#allocation2 + $0x10] sm:$0xff]  ;;  %v205_v50 = vpop.f32.mrf.mxu0  ;;  %v237_v51 = vpop.f32.mrf.mxu1 }
  0xd8   :  { %v298_v49 = vld [vmem:[#allocation2 + $0x50] sm:$0xff]  ;;  %v313_v52 = vadd.f32 %v626_v41, %v290_v48  ;;  %275 = vst.msk [vmem:[#allocation2 + $0x30] sm:$0xff] %vm19_vm3, %v258_v46  ;;  %283 = vst.msk [vmem:[#allocation2 + $0x70] sm:$0xff] %vm19_vm3, %v266_v47  ;;  %v256_v54 = vadd.f32 %v205_v50, %v40_v44  ;;  %v264_v55 = vadd.f32 %v237_v51, %v48_v45 }
  0xd9   :  { %v321_v53 = vadd.f32 %v626_v41, %v298_v49  ;;  %v288_v58 = vld [vmem:[#allocation2] sm:$0xff]  ;;  %v516_v60 = vpop.f32.mrf.mxu0  ;;  %v524_v61 = vpop.f32.mrf.mxu1 }
  0xda   :  { %v296_v59 = vld [vmem:[#allocation2 + $0x40] sm:$0xff]  ;;  %v329_v62 = vmul.f32 0.2, %v313_v52  ;;  %v311_v0 = vadd.f32 %v626_v41, %v288_v58  ;;  %273 = vst.msk [vmem:[#allocation2 + $0x20] sm:$0xff] %vm19_vm3, %v256_v54  ;;  %281 = vst.msk [vmem:[#allocation2 + $0x60] sm:$0xff] %vm19_vm3, %v264_v55  ;;  %v259_v6 = vadd.f32 %v516_v60, %v43_v56  ;;  %v267_v7 = vadd.f32 %v524_v61, %v51_v57 }
  0xdb   :  { %v337_v63 = vmul.f32 0.2, %v321_v53  ;;  %v319_v1 = vadd.f32 %v626_v41, %v296_v59  ;;  %v291_v4 = vld [vmem:[#allocation2 + $0x18] sm:$0xff]  ;;  %v208_v8 = vpop.f32.mrf.mxu0  ;;  %v240_v9 = vpop.f32.mrf.mxu1 }
  0xdc   :  { %v299_v5 = vld [vmem:[#allocation2 + $0x58] sm:$0xff]  ;;  %v345_v10 = vmax.f32 %v313_v52, %v329_v62  ;;  %v327_v12 = vmul.f32 0.2, %v311_v0  ;;  %v314_v14 = vadd.f32 %v626_v41, %v291_v4  ;;  %276 = vst.msk [vmem:[#allocation2 + $0x38] sm:$0xff] %vm19_vm3, %v259_v6  ;;  %284 = vst.msk [vmem:[#allocation2 + $0x78] sm:$0xff] %vm19_vm3, %v267_v7  ;;  %v257_v18 = vadd.f32 %v208_v8, %v41_v2 }
  0xdd   :  { %v353_v11 = vmax.f32 %v321_v53, %v337_v63  ;;  %v335_v13 = vmul.f32 0.2, %v319_v1  ;;  %v322_v15 = vadd.f32 %v626_v41, %v299_v5  ;;  %v289_v16 = vld [vmem:[#allocation2 + $0x8] sm:$0xff]  ;;  %v265_v19 = vadd.f32 %v240_v9, %v49_v3 }
  0xde   :  { %v297_v17 = vld [vmem:[#allocation2 + $0x48] sm:$0xff]  ;;  %v481_v20 = vpack.c.bf16 %v345_v10, %v345_v10  ;;  %v343_v22 = vmax.f32 %v311_v0, %v327_v12  ;;  %v330_v24 = vmul.f32 0.2, %v314_v14  ;;  %v312_v26 = vadd.f32 %v626_v41, %v289_v16  ;;  %274 = vst.msk [vmem:[#allocation2 + $0x28] sm:$0xff] %vm19_vm3, %v257_v18 }
  0xdf   :  { %v489_v21 = vpack.c.bf16 %v353_v11, %v353_v11  ;;  %v351_v23 = vmax.f32 %v319_v1, %v335_v13  ;;  %v338_v25 = vmul.f32 0.2, %v322_v15  ;;  %v320_v27 = vadd.f32 %v626_v41, %v297_v17  ;;  %v294_v28 = vld [vmem:[#allocation2 + $0x30] sm:$0xff]  ;;  %282 = vst.msk [vmem:[#allocation2 + $0x68] sm:$0xff] %vm19_vm3, %v265_v19 }
  0xe0   :  { %v302_v29 = vld [vmem:[#allocation2 + $0x70] sm:$0xff]  ;;  %426 = vst.msk [vmem:[%s721_s3 + $0x8] sm:$0xf] %vm423_vm4, %v481_v20  ;;  %v479_v30 = vpack.c.bf16 %v343_v22, %v343_v22  ;;  %v317_v32 = vadd.f32 %v626_v41, %v294_v28  ;;  %v346_v34 = vmax.f32 %v314_v14, %v330_v24  ;;  %v328_v36 = vmul.f32 0.2, %v312_v26 }
  0xe1   :  { %434 = vst.msk [vmem:[%s721_s3 + $0x28] sm:$0xf] %vm423_vm4, %v489_v21  ;;  %v487_v31 = vpack.c.bf16 %v351_v23, %v351_v23  ;;  %v325_v33 = vadd.f32 %v626_v41, %v302_v29  ;;  %v354_v35 = vmax.f32 %v322_v15, %v338_v25  ;;  %v336_v37 = vmul.f32 0.2, %v320_v27  ;;  %v292_v38 = vld [vmem:[#allocation2 + $0x20] sm:$0xff] }
  0xe2   :  { %v300_v39 = vld [vmem:[#allocation2 + $0x60] sm:$0xff]  ;;  %424 = vst.msk [vmem:[%s721_s3] sm:$0xf] %vm423_vm4, %v479_v30  ;;  %v333_v40 = vmul.f32 0.2, %v317_v32  ;;  %v315_v43 = vadd.f32 %v626_v41, %v292_v38  ;;  %v482_v45 = vpack.c.bf16 %v346_v34, %v346_v34  ;;  %v344_v47 = vmax.f32 %v312_v26, %v328_v36 }
  0xe3   :  { %432 = vst.msk [vmem:[%s721_s3 + $0x20] sm:$0xf] %vm423_vm4, %v487_v31  ;;  %v341_v42 = vmul.f32 0.2, %v325_v33  ;;  %v323_v44 = vadd.f32 %v626_v41, %v300_v39  ;;  %v490_v46 = vpack.c.bf16 %v354_v35, %v354_v35  ;;  %v352_v48 = vmax.f32 %v320_v27, %v336_v37  ;;  %v295_v53 = vld [vmem:[#allocation2 + $0x38] sm:$0xff] }
  0xe4   :  { %v349_v49 = vmax.f32 %v317_v32, %v333_v40  ;;  %v331_v51 = vmul.f32 0.2, %v315_v43  ;;  %v303_v54 = vld [vmem:[#allocation2 + $0x78] sm:$0xff]  ;;  %427 = vst.msk [vmem:[%s721_s3 + $0xc] sm:$0xf] %vm423_vm4, %v482_v45  ;;  %v480_v55 = vpack.c.bf16 %v344_v47, %v344_v47  ;;  %v318_v57 = vadd.f32 %v626_v41, %v295_v53 }
  0xe5   :  { %v357_v50 = vmax.f32 %v325_v33, %v341_v42  ;;  %v339_v52 = vmul.f32 0.2, %v323_v44  ;;  %435 = vst.msk [vmem:[%s721_s3 + $0x2c] sm:$0xf] %vm423_vm4, %v490_v46  ;;  %v488_v56 = vpack.c.bf16 %v352_v48, %v352_v48  ;;  %v326_v58 = vadd.f32 %v626_v41, %v303_v54  ;;  %v293_v63 = vld [vmem:[#allocation2 + $0x28] sm:$0xff] }
  0xe6   :  { %v485_v59 = vpack.c.bf16 %v349_v49, %v349_v49  ;;  %v347_v61 = vmax.f32 %v315_v43, %v331_v51  ;;  %v301_v0 = vld [vmem:[#allocation2 + $0x68] sm:$0xff]  ;;  %425 = vst.msk [vmem:[%s721_s3 + $0x4] sm:$0xf] %vm423_vm4, %v480_v55  ;;  %v334_v1 = vmul.f32 0.2, %v318_v57  ;;  %v316_v3 = vadd.f32 %v626_v41, %v293_v63 }
  0xe7   :  { %v493_v60 = vpack.c.bf16 %v357_v50, %v357_v50  ;;  %v355_v62 = vmax.f32 %v323_v44, %v339_v52  ;;  %433 = vst.msk [vmem:[%s721_s3 + $0x24] sm:$0xf] %vm423_vm4, %v488_v56  ;;  %v342_v2 = vmul.f32 0.2, %v326_v58  ;;  %v324_v4 = vadd.f32 %v626_v41, %v301_v0 }
  0xe8   :  { %430 = vst.msk [vmem:[%s721_s3 + $0x18] sm:$0xf] %vm423_vm4, %v485_v59  ;;  %v483_v5 = vpack.c.bf16 %v347_v61, %v347_v61  ;;  %v350_v7 = vmax.f32 %v318_v57, %v334_v1  ;;  %v332_v9 = vmul.f32 0.2, %v316_v3 }
  0xe9   :  { %438 = vst.msk [vmem:[%s721_s3 + $0x38] sm:$0xf] %vm423_vm4, %v493_v60  ;;  %v491_v6 = vpack.c.bf16 %v355_v62, %v355_v62  ;;  %v358_v8 = vmax.f32 %v326_v58, %v342_v2  ;;  %v340_v10 = vmul.f32 0.2, %v324_v4 }
  0xea   :  { %428 = vst.msk [vmem:[%s721_s3 + $0x10] sm:$0xf] %vm423_vm4, %v483_v5  ;;  %v486_v41 = vpack.c.bf16 %v350_v7, %v350_v7  ;;  %v348_v12 = vmax.f32 %v316_v3, %v332_v9 }
  0xeb   :  { %436 = vst.msk [vmem:[%s721_s3 + $0x30] sm:$0xf] %vm423_vm4, %v491_v6  ;;  %v494_v11 = vpack.c.bf16 %v358_v8, %v358_v8  ;;  %v356_v13 = vmax.f32 %v324_v4, %v340_v10 }
  0xec   :  { %431 = vst.msk [vmem:[%s721_s3 + $0x1c] sm:$0xf] %vm423_vm4, %v486_v41  ;;  %v484_v14 = vpack.c.bf16 %v348_v12, %v348_v12 }
  0xed   :  { %439 = vst.msk [vmem:[%s721_s3 + $0x3c] sm:$0xf] %vm423_vm4, %v494_v11  ;;  %v492_v15 = vpack.c.bf16 %v356_v13, %v356_v13 }
  0xee   :  { %429 = vst.msk [vmem:[%s721_s3 + $0x14] sm:$0xf] %vm423_vm4, %v484_v14 }
  0xef   :  { %437 = vst.msk [vmem:[%s721_s3 + $0x34] sm:$0xf] %vm423_vm4, %v492_v15 }

// kernel: discriminator_forward.11
= control target key start
LH: loop header
LB: loop body
LE: loop exit
PB: predicated region body
PF: predicated region fallthrough
CT: control target
= control target key end

     0   :  { %vm484_vm0 = vcmask 1044480   ;;  %vm485_vm1 = vcmask 1045504   ;;  %v1838_v1 = vmov 65535   ;;  %vm387_vm2 = vcmask 220160   ;;  %s2615_s1 = inlined_call_operand.vmem [shape: bf16[27,3], index: 1, kind: input, shape index: {}]   ;;  %s2616_s0 = inlined_call_operand.vmem [shape: bf16[512,27], index: 0, kind: input, shape index: {}]   ;;  %s2617_s2 = inlined_call_operand.vmem [shape: f32[1,3], index: 2, kind: input, shape index: {}]   ;;  %s2618_s3 = inlined_call_operand.vmem [shape: bf16[512,3], index: 3, kind: output, shape index: {}]  }
   0x1   :  { %v1803_v0 = vld [vmem:[%s2615_s1 + $0x8] sm:$0x3f]   ;;  %v486_v2 = vsel %vm484_vm0, 4294967295, %v1838_v1  ;;  %v1805_v4 = vld [vmem:[%s2616_s0] sm:$0xff]   ;;  %vm19_vm3 = vcmask 23552   ;;  %v1839_v8 = vmov 0.0  }
   0x2   :  { %v487_v3 = vsel %vm485_vm1, %v486_v2, 0  ;;  %v1871_v6 = vld [vmem:[%s2615_s1] sm:$0xff]   ;;  %1733 = vmatprep.mubr.msk.bf16.mxu0 %vm387_vm2, %v1805_v4  ;;  %22 = vst.msk [vmem:[#allocation2 + $0x10] sm:$0xff] %vm19_vm3, %v1839_v8  ;;  %20 = vst.msk [vmem:[#allocation2] sm:$0xff] %vm19_vm3, %v1839_v8  ;;  %v1807_v9 = vld [vmem:[%s2616_s0 + $0x8] sm:$0xff]   ;;  %vm1431_vm4 = vcmask 19456  }
   0x3   :  { %v1866_v5 = vand.u32 %v1803_v0, %v487_v3  ;;  %v1877_v7 = vld [vmem:[%s2616_s0 + $0x80] sm:$0xff]   ;;  %21 = vst.msk [vmem:[#allocation2 + $0x8] sm:$0xff] %vm19_vm3, %v1839_v8  ;;  %23 = vst.msk [vmem:[#allocation2 + $0x18] sm:$0xff] %vm19_vm3, %v1839_v8  ;;  %v1808_v10 = vld [vmem:[%s2616_s0 + $0x88] sm:$0xff]  }
   0x4   :  { %24 = vst.msk [vmem:[#allocation2 + $0x20] sm:$0xff] %vm19_vm3, %v1839_v8  ;;  %25 = vst.msk [vmem:[#allocation2 + $0x28] sm:$0xff] %vm19_vm3, %v1839_v8  ;;  %1765 = vmatprep.mubr.msk.bf16.mxu1 %vm387_vm2, %v1877_v7  ;;  %v1809_v11 = vld [vmem:[%s2616_s0 + $0x10] sm:$0xff]   ;;  %v1811_v13 = vld [vmem:[%s2616_s0 + $0x18] sm:$0xff]  }
   0x5   :  { %1729 = vmatprep.subr.bf16.mxu0 %v1866_v5  ;;  %1797 = vmatprep.subr.bf16.mxu1 %v1866_v5  ;;  %26 = vst.msk [vmem:[#allocation2 + $0x30] sm:$0xff] %vm19_vm3, %v1839_v8  ;;  %27 = vst.msk [vmem:[#allocation2 + $0x38] sm:$0xff] %vm19_vm3, %v1839_v8  ;;  %v1810_v12 = vld [vmem:[%s2616_s0 + $0x90] sm:$0xff]   ;;  %v1812_v14 = vld [vmem:[%s2616_s0 + $0x98] sm:$0xff]  }
   0x6   :  { %28 = vst.msk [vmem:[#allocation2 + $0x40] sm:$0xff] %vm19_vm3, %v1839_v8  ;;  %29 = vst.msk [vmem:[#allocation2 + $0x48] sm:$0xff] %vm19_vm3, %v1839_v8  ;;  %1730 = vmatpush3.bf16.msra.mxu0 %v1866_v5  ;;  %1799 = vmatpush3.bf16.msra.mxu1 %v1866_v5  ;;  %v1813_v15 = vld [vmem:[%s2616_s0 + $0x20] sm:$0xff]   ;;  %v1815_v17 = vld [vmem:[%s2616_s0 + $0x28] sm:$0xff]  }
   0x7   :  { %30 = vst.msk [vmem:[#allocation2 + $0x50] sm:$0xff] %vm19_vm3, %v1839_v8  ;;  %31 = vst.msk [vmem:[#allocation2 + $0x58] sm:$0xff] %vm19_vm3, %v1839_v8  ;;  %1731 = vmatprep.subr.bf16.mxu0 %v1871_v6  ;;  %1798 = vmatprep.subr.bf16.mxu1 %v1871_v6  ;;  %v1814_v16 = vld [vmem:[%s2616_s0 + $0xa0] sm:$0xff]   ;;  %v1816_v18 = vld [vmem:[%s2616_s0 + $0xa8] sm:$0xff]  }
   0x8   :  { %32 = vst.msk [vmem:[#allocation2 + $0x60] sm:$0xff] %vm19_vm3, %v1839_v8  ;;  %33 = vst.msk [vmem:[#allocation2 + $0x68] sm:$0xff] %vm19_vm3, %v1839_v8  ;;  %v1817_v19 = vld [vmem:[%s2616_s0 + $0x30] sm:$0xff]   ;;  %v1819_v21 = vld [vmem:[%s2616_s0 + $0x38] sm:$0xff]  }
   0x9   :  { %34 = vst.msk [vmem:[#allocation2 + $0x70] sm:$0xff] %vm19_vm3, %v1839_v8  ;;  %35 = vst.msk [vmem:[#allocation2 + $0x78] sm:$0xff] %vm19_vm3, %v1839_v8  ;;  %v1818_v20 = vld [vmem:[%s2616_s0 + $0xb0] sm:$0xff]   ;;  %v1820_v22 = vld [vmem:[%s2616_s0 + $0xb8] sm:$0xff]  }
   0xa   :  { %36 = vst.msk [vmem:[#allocation2 + $0x80] sm:$0xff] %vm19_vm3, %v1839_v8  ;;  %37 = vst.msk [vmem:[#allocation2 + $0x88] sm:$0xff] %vm19_vm3, %v1839_v8  ;;  %1732 = vmatpush3.bf16.msra.mxu0 %v1871_v6  ;;  %1800 = vmatpush3.bf16.msra.mxu1 %v1871_v6  ;;  %v1821_v23 = vld [vmem:[%s2616_s0 + $0x40] sm:$0xff]   ;;  %v1823_v25 = vld [vmem:[%s2616_s0 + $0x48] sm:$0xff]  }
   0xb   :  { %38 = vst.msk [vmem:[#allocation2 + $0x90] sm:$0xff] %vm19_vm3, %v1839_v8  ;;  %39 = vst.msk [vmem:[#allocation2 + $0x98] sm:$0xff] %vm19_vm3, %v1839_v8  ;;  %v1822_v24 = vld [vmem:[%s2616_s0 + $0xc0] sm:$0xff]   ;;  %v1824_v26 = vld [vmem:[%s2616_s0 + $0xc8] sm:$0xff]  }
   0xc   :  { %40 = vst.msk [vmem:[#allocation2 + $0xa0] sm:$0xff] %vm19_vm3, %v1839_v8  ;;  %41 = vst.msk [vmem:[#allocation2 + $0xa8] sm:$0xff] %vm19_vm3, %v1839_v8  ;;  %v1825_v27 = vld [vmem:[%s2616_s0 + $0x50] sm:$0xff]   ;;  %v1827_v29 = vld [vmem:[%s2616_s0 + $0x58] sm:$0xff]  }
   0xd   :  { %42 = vst.msk [vmem:[#allocation2 + $0xb0] sm:$0xff] %vm19_vm3, %v1839_v8  ;;  %43 = vst.msk [vmem:[#allocation2 + $0xb8] sm:$0xff] %vm19_vm3, %v1839_v8  ;;  %1734 = vmatmul.mubr.msk.bf16.vlgmr.msra.gmra.mxu0 %vm387_vm2, %v1807_v9  ;;  %1766 = vmatmul.mubr.msk.bf16.vlgmr.msra.gmra.mxu1 %vm387_vm2, %v1808_v10  ;;  %v1826_v28 = vld [vmem:[%s2616_s0 + $0xd0] sm:$0xff]   ;;  %v1828_v30 = vld [vmem:[%s2616_s0 + $0xd8] sm:$0xff]  }
   0xe   :  { %44 = vst.msk [vmem:[#allocation2 + $0xc0] sm:$0xff] %vm19_vm3, %v1839_v8  ;;  %45 = vst.msk [vmem:[#allocation2 + $0xc8] sm:$0xff] %vm19_vm3, %v1839_v8  ;;  %1737 = vmatprep.mubr.msk.bf16.mxu0 %vm387_vm2, %v1809_v11  ;;  %1769 = vmatprep.mubr.msk.bf16.mxu1 %vm387_vm2, %v1810_v12  ;;  %v1829_v31 = vld [vmem:[%s2616_s0 + $0x60] sm:$0xff]   ;;  %v1831_v33 = vld [vmem:[%s2616_s0 + $0x68] sm:$0xff]  }
   0xf   :  { %46 = vst.msk [vmem:[#allocation2 + $0xd0] sm:$0xff] %vm19_vm3, %v1839_v8  ;;  %47 = vst.msk [vmem:[#allocation2 + $0xd8] sm:$0xff] %vm19_vm3, %v1839_v8  ;;  %v1830_v32 = vld [vmem:[%s2616_s0 + $0xe0] sm:$0xff]   ;;  %v1832_v34 = vld [vmem:[%s2616_s0 + $0xe8] sm:$0xff]  }
  0x10   :  { %48 = vst.msk [vmem:[#allocation2 + $0xe0] sm:$0xff] %vm19_vm3, %v1839_v8  ;;  %49 = vst.msk [vmem:[#allocation2 + $0xe8] sm:$0xff] %vm19_vm3, %v1839_v8  ;;  %v1833_v35 = vld [vmem:[%s2616_s0 + $0x70] sm:$0xff]   ;;  %v1835_v37 = vld [vmem:[%s2616_s0 + $0x78] sm:$0xff]  }
  0x11   :  { %50 = vst.msk [vmem:[#allocation2 + $0xf0] sm:$0xff] %vm19_vm3, %v1839_v8  ;;  %51 = vst.msk [vmem:[#allocation2 + $0xf8] sm:$0xff] %vm19_vm3, %v1839_v8  ;;  %v1834_v36 = vld [vmem:[%s2616_s0 + $0xf0] sm:$0xff]   ;;  %v1836_v38 = vld [vmem:[%s2616_s0 + $0xf8] sm:$0xff]  }
  0x12   :  { %52 = vst.msk [vmem:[#allocation2 + $0x100] sm:$0xff] %vm19_vm3, %v1839_v8  ;;  %53 = vst.msk [vmem:[#allocation2 + $0x108] sm:$0xff] %vm19_vm3, %v1839_v8  ;;  %v86_v39 = vld [vmem:[#allocation2 + $0x10] sm:$0xff]  ;;  %v84_v43 = vld [vmem:[#allocation2] sm:$0xff] }
  0x13   :  { %54 = vst.msk [vmem:[#allocation2 + $0x110] sm:$0xff] %vm19_vm3, %v1839_v8  ;;  %55 = vst.msk [vmem:[#allocation2 + $0x118] sm:$0xff] %vm19_vm3, %v1839_v8  ;;  %v87_v49 = vld [vmem:[#allocation2 + $0x18] sm:$0xff]  ;;  %v85_v55 = vld [vmem:[#allocation2 + $0x8] sm:$0xff] }
  0x14   :  { %56 = vst.msk [vmem:[#allocation2 + $0x120] sm:$0xff] %vm19_vm3, %v1839_v8  ;;  %57 = vst.msk [vmem:[#allocation2 + $0x128] sm:$0xff] %vm19_vm3, %v1839_v8  ;;  %v90_v61 = vld [vmem:[#allocation2 + $0x30] sm:$0xff]  ;;  %v2146_v1 = vld [vmem:[%s2617_s2] ss:$0 sm:$0xff] }
  0x15   :  { %58 = vst.msk [vmem:[#allocation2 + $0x130] sm:$0xff] %vm19_vm3, %v1839_v8  ;;  %59 = vst.msk [vmem:[#allocation2 + $0x138] sm:$0xff] %vm19_vm3, %v1839_v8  ;;  %1738 = vmatmul.mubr.msk.bf16.gmra.mxu0 %vm387_vm2, %v1811_v13  ;;  %1770 = vmatmul.mubr.msk.bf16.gmra.mxu1 %vm387_vm2, %v1812_v14  ;;  %v88_v4 = vld [vmem:[#allocation2 + $0x20] sm:$0xff] }
  0x16   :  { %60 = vst.msk [vmem:[#allocation2 + $0x140] sm:$0xff] %vm19_vm3, %v1839_v8  ;;  %61 = vst.msk [vmem:[#allocation2 + $0x148] sm:$0xff] %vm19_vm3, %v1839_v8  ;;  %1741 = vmatprep.mubr.msk.bf16.mxu0 %vm387_vm2, %v1813_v15  ;;  %1773 = vmatprep.mubr.msk.bf16.mxu1 %vm387_vm2, %v1814_v16  ;;  %v91_v16 = vld [vmem:[#allocation2 + $0x38] sm:$0xff] }
  0x17   :  { %62 = vst.msk [vmem:[#allocation2 + $0x150] sm:$0xff] %vm19_vm3, %v1839_v8  ;;  %63 = vst.msk [vmem:[#allocation2 + $0x158] sm:$0xff] %vm19_vm3, %v1839_v8 }
  0x18   :  { %64 = vst.msk [vmem:[#allocation2 + $0x160] sm:$0xff] %vm19_vm3, %v1839_v8  ;;  %65 = vst.msk [vmem:[#allocation2 + $0x168] sm:$0xff] %vm19_vm3, %v1839_v8 }
  0x19   :  { %66 = vst.msk [vmem:[#allocation2 + $0x170] sm:$0xff] %vm19_vm3, %v1839_v8  ;;  %67 = vst.msk [vmem:[#allocation2 + $0x178] sm:$0xff] %vm19_vm3, %v1839_v8  ;;  %v116_v44 = vld [vmem:[#allocation2 + $0x100] sm:$0xff]  ;;  %v117_v56 = vld [vmem:[#allocation2 + $0x108] sm:$0xff] }
  0x1a   :  { %68 = vst.msk [vmem:[#allocation2 + $0x180] sm:$0xff] %vm19_vm3, %v1839_v8  ;;  %69 = vst.msk [vmem:[#allocation2 + $0x188] sm:$0xff] %vm19_vm3, %v1839_v8  ;;  %v118_v40 = vld [vmem:[#allocation2 + $0x110] sm:$0xff]  ;;  %v119_v50 = vld [vmem:[#allocation2 + $0x118] sm:$0xff] }
  0x1b   :  { %70 = vst.msk [vmem:[#allocation2 + $0x190] sm:$0xff] %vm19_vm3, %v1839_v8  ;;  %71 = vst.msk [vmem:[#allocation2 + $0x198] sm:$0xff] %vm19_vm3, %v1839_v8  ;;  %v120_v5 = vld [vmem:[#allocation2 + $0x120] sm:$0xff] }
  0x1c   :  { %72 = vst.msk [vmem:[#allocation2 + $0x1a0] sm:$0xff] %vm19_vm3, %v1839_v8  ;;  %73 = vst.msk [vmem:[#allocation2 + $0x1a8] sm:$0xff] %vm19_vm3, %v1839_v8  ;;  %v122_v62 = vld [vmem:[#allocation2 + $0x130] sm:$0xff] }
  0x1d   :  { %74 = vst.msk [vmem:[#allocation2 + $0x1b0] sm:$0xff] %vm19_vm3, %v1839_v8  ;;  %75 = vst.msk [vmem:[#allocation2 + $0x1b8] sm:$0xff] %vm19_vm3, %v1839_v8  ;;  %1742 = vmatmul.mubr.msk.bf16.gmra.mxu0 %vm387_vm2, %v1815_v17  ;;  %1774 = vmatmul.mubr.msk.bf16.gmra.mxu1 %vm387_vm2, %v1816_v18  ;;  %v123_v17 = vld [vmem:[#allocation2 + $0x138] sm:$0xff] }
  0x1e   :  { %76 = vst.msk [vmem:[#allocation2 + $0x1c0] sm:$0xff] %vm19_vm3, %v1839_v8  ;;  %77 = vst.msk [vmem:[#allocation2 + $0x1c8] sm:$0xff] %vm19_vm3, %v1839_v8  ;;  %1745 = vmatprep.mubr.msk.bf16.mxu0 %vm387_vm2, %v1817_v19  ;;  %1777 = vmatprep.mubr.msk.bf16.mxu1 %vm387_vm2, %v1818_v20 }
  0x1f   :  { %78 = vst.msk [vmem:[#allocation2 + $0x1d0] sm:$0xff] %vm19_vm3, %v1839_v8  ;;  %79 = vst.msk [vmem:[#allocation2 + $0x1d8] sm:$0xff] %vm19_vm3, %v1839_v8 }
  0x20   :  { %80 = vst.msk [vmem:[#allocation2 + $0x1e0] sm:$0xff] %vm19_vm3, %v1839_v8  ;;  %81 = vst.msk [vmem:[#allocation2 + $0x1e8] sm:$0xff] %vm19_vm3, %v1839_v8 }
  0x21   :  { %82 = vst.msk [vmem:[#allocation2 + $0x1f0] sm:$0xff] %vm19_vm3, %v1839_v8  ;;  %83 = vst.msk [vmem:[#allocation2 + $0x1f8] sm:$0xff] %vm19_vm3, %v1839_v8 }
  0x25   :  { %1746 = vmatmul.mubr.msk.bf16.gmra.mxu0 %vm387_vm2, %v1819_v21  ;;  %1778 = vmatmul.mubr.msk.bf16.gmra.mxu1 %vm387_vm2, %v1820_v22 }
  0x26   :  { %1749 = vmatprep.mubr.msk.bf16.mxu0 %vm387_vm2, %v1821_v23  ;;  %1781 = vmatprep.mubr.msk.bf16.mxu1 %vm387_vm2, %v1822_v24 }
  0x2d   :  { %1750 = vmatmul.mubr.msk.bf16.gmra.mxu0 %vm387_vm2, %v1823_v25  ;;  %1782 = vmatmul.mubr.msk.bf16.gmra.mxu1 %vm387_vm2, %v1824_v26  ;;  %v89_v26 = vld [vmem:[#allocation2 + $0x28] sm:$0xff] }
  0x2e   :  { %1753 = vmatprep.mubr.msk.bf16.mxu0 %vm387_vm2, %v1825_v27  ;;  %1785 = vmatprep.mubr.msk.bf16.mxu1 %vm387_vm2, %v1826_v28  ;;  %v121_v27 = vld [vmem:[#allocation2 + $0x128] sm:$0xff] }
  0x35   :  { %1754 = vmatmul.mubr.msk.bf16.gmra.mxu0 %vm387_vm2, %v1827_v29  ;;  %1786 = vmatmul.mubr.msk.bf16.gmra.mxu1 %vm387_vm2, %v1828_v30 }
  0x36   :  { %1757 = vmatprep.mubr.msk.bf16.mxu0 %vm387_vm2, %v1829_v31  ;;  %1789 = vmatprep.mubr.msk.bf16.mxu1 %vm387_vm2, %v1830_v32 }
  0x3d   :  { %1758 = vmatmul.mubr.msk.bf16.gmra.mxu0 %vm387_vm2, %v1831_v33  ;;  %1790 = vmatmul.mubr.msk.bf16.gmra.mxu1 %vm387_vm2, %v1832_v34 }
  0x3e   :  { %1761 = vmatprep.mubr.msk.bf16.mxu0 %vm387_vm2, %v1833_v35  ;;  %1793 = vmatprep.mubr.msk.bf16.mxu1 %vm387_vm2, %v1834_v36 }
  0x45   :  { %1762 = vmatmul.mubr.msk.bf16.gmra.mxu0 %vm387_vm2, %v1835_v37  ;;  %1794 = vmatmul.mubr.msk.bf16.gmra.mxu1 %vm387_vm2, %v1836_v38 }
  0xcd   :  { %v1735_v41 = vpop.f32.mrf.mxu0  ;;  %v1767_v42 = vpop.f32.mrf.mxu1 }
  0xce   :  { %v782_v45 = vadd.f32 %v1735_v41, %v86_v39  ;;  %v814_v46 = vadd.f32 %v1767_v42, %v118_v40 }
  0xcf   :  { %v525_v47 = vpop.f32.mrf.mxu0  ;;  %v653_v48 = vpop.f32.mrf.mxu1 }
  0xd0   :  { %847 = vst.msk [vmem:[#allocation2 + $0x10] sm:$0xff] %vm19_vm3, %v782_v45  ;;  %879 = vst.msk [vmem:[#allocation2 + $0x110] sm:$0xff] %vm19_vm3, %v814_v46  ;;  %v780_v51 = vadd.f32 %v525_v47, %v84_v43  ;;  %v812_v52 = vadd.f32 %v653_v48, %v116_v44 }
  0xd1   :  { %v1736_v53 = vpop.f32.mrf.mxu0  ;;  %v1768_v54 = vpop.f32.mrf.mxu1 }
  0xd2   :  { %845 = vst.msk [vmem:[#allocation2] sm:$0xff] %vm19_vm3, %v780_v51  ;;  %877 = vst.msk [vmem:[#allocation2 + $0x100] sm:$0xff] %vm19_vm3, %v812_v52  ;;  %v783_v57 = vadd.f32 %v1736_v53, %v87_v49  ;;  %v815_v58 = vadd.f32 %v1768_v54, %v119_v50 }
  0xd3   :  { %v528_v59 = vpop.f32.mrf.mxu0  ;;  %v656_v60 = vpop.f32.mrf.mxu1 }
  0xd4   :  { %848 = vst.msk [vmem:[#allocation2 + $0x18] sm:$0xff] %vm19_vm3, %v783_v57  ;;  %880 = vst.msk [vmem:[#allocation2 + $0x118] sm:$0xff] %vm19_vm3, %v815_v58  ;;  %v781_v63 = vadd.f32 %v528_v59, %v85_v55  ;;  %v813_v0 = vadd.f32 %v656_v60, %v117_v56 }
  0xd5   :  { %v1739_v2 = vpop.f32.mrf.mxu0  ;;  %v1771_v3 = vpop.f32.mrf.mxu1 }
  0xd6   :  { %846 = vst.msk [vmem:[#allocation2 + $0x8] sm:$0xff] %vm19_vm3, %v781_v63  ;;  %878 = vst.msk [vmem:[#allocation2 + $0x108] sm:$0xff] %vm19_vm3, %v813_v0  ;;  %v786_v6 = vadd.f32 %v1739_v2, %v90_v61  ;;  %v818_v7 = vadd.f32 %v1771_v3, %v122_v62 }
  0xd7   :  { %v914_v8 = vld [vmem:[#allocation2 + $0x10] sm:$0xff]  ;;  %v541_v10 = vpop.f32.mrf.mxu0  ;;  %v669_v11 = vpop.f32.mrf.mxu1 }
  0xd8   :  { %v946_v9 = vld [vmem:[#allocation2 + $0x110] sm:$0xff]  ;;  %v985_v12 = vadd.f32 %v2146_v1, %v914_v8  ;;  %851 = vst.msk [vmem:[#allocation2 + $0x30] sm:$0xff] %vm19_vm3, %v786_v6  ;;  %883 = vst.msk [vmem:[#allocation2 + $0x130] sm:$0xff] %vm19_vm3, %v818_v7  ;;  %v784_v14 = vadd.f32 %v541_v10, %v88_v4  ;;  %v816_v15 = vadd.f32 %v669_v11, %v120_v5 }
  0xd9   :  { %v1017_v13 = vadd.f32 %v2146_v1, %v946_v9  ;;  %v912_v18 = vld [vmem:[#allocation2] sm:$0xff]  ;;  %v1740_v20 = vpop.f32.mrf.mxu0  ;;  %v1772_v21 = vpop.f32.mrf.mxu1 }
  0xda   :  { %v944_v19 = vld [vmem:[#allocation2 + $0x100] sm:$0xff]  ;;  %v1049_v22 = vmul.f32 0.2, %v985_v12  ;;  %v983_v24 = vadd.f32 %v2146_v1, %v912_v18  ;;  %849 = vst.msk [vmem:[#allocation2 + $0x20] sm:$0xff] %vm19_vm3, %v784_v14  ;;  %881 = vst.msk [vmem:[#allocation2 + $0x120] sm:$0xff] %vm19_vm3, %v816_v15  ;;  %v787_v30 = vadd.f32 %v1740_v20, %v91_v16  ;;  %v819_v31 = vadd.f32 %v1772_v21, %v123_v17 }
  0xdb   :  { %v1081_v23 = vmul.f32 0.2, %v1017_v13  ;;  %v1015_v25 = vadd.f32 %v2146_v1, %v944_v19  ;;  %v915_v28 = vld [vmem:[#allocation2 + $0x18] sm:$0xff]  ;;  %v544_v32 = vpop.f32.mrf.mxu0  ;;  %v672_v33 = vpop.f32.mrf.mxu1 }
  0xdc   :  { %v947_v29 = vld [vmem:[#allocation2 + $0x118] sm:$0xff]  ;;  %v1113_v34 = vmax.f32 %v985_v12, %v1049_v22  ;;  %v1047_v36 = vmul.f32 0.2, %v983_v24  ;;  %v986_v38 = vadd.f32 %v2146_v1, %v915_v28  ;;  %852 = vst.msk [vmem:[#allocation2 + $0x38] sm:$0xff] %vm19_vm3, %v787_v30  ;;  %884 = vst.msk [vmem:[#allocation2 + $0x138] sm:$0xff] %vm19_vm3, %v819_v31  ;;  %v785_v42 = vadd.f32 %v544_v32, %v89_v26  ;;  %v126_v28 = vld [vmem:[#allocation2 + $0x150] sm:$0xff] }
  0xdd   :  { %v1145_v35 = vmax.f32 %v1017_v13, %v1081_v23  ;;  %v1079_v37 = vmul.f32 0.2, %v1015_v25  ;;  %v1018_v39 = vadd.f32 %v2146_v1, %v947_v29  ;;  %v913_v40 = vld [vmem:[#allocation2 + $0x8] sm:$0xff]  ;;  %v817_v43 = vadd.f32 %v672_v33, %v121_v27  ;;  %v2162_v44 = vpop.f32.mrf.mxu0  ;;  %v2164_v45 = vpop.f32.mrf.mxu1  ;;  %v94_v27 = vld [vmem:[#allocation2 + $0x50] sm:$0xff]  ;;  %v92_v29 = vld [vmem:[#allocation2 + $0x40] sm:$0xff] }
  0xde   :  { %v945_v41 = vld [vmem:[#allocation2 + $0x108] sm:$0xff]  ;;  %v1633_v46 = vpack.c.bf16 %v1113_v34, %v1113_v34  ;;  %v1111_v48 = vmax.f32 %v983_v24, %v1047_v36  ;;  %v1050_v50 = vmul.f32 0.2, %v986_v38  ;;  %v984_v52 = vadd.f32 %v2146_v1, %v913_v40  ;;  %850 = vst.msk [vmem:[#allocation2 + $0x28] sm:$0xff] %vm19_vm3, %v785_v42 }
  0xdf   :  { %v1665_v47 = vpack.c.bf16 %v1145_v35, %v1145_v35  ;;  %v1143_v49 = vmax.f32 %v1015_v25, %v1079_v37  ;;  %v1082_v51 = vmul.f32 0.2, %v1018_v39  ;;  %v1016_v53 = vadd.f32 %v2146_v1, %v945_v41  ;;  %v918_v54 = vld [vmem:[#allocation2 + $0x30] sm:$0xff]  ;;  %882 = vst.msk [vmem:[#allocation2 + $0x128] sm:$0xff] %vm19_vm3, %v817_v43  ;;  %v2170_v56 = vpop.f32.mrf.mxu0  ;;  %v2172_v57 = vpop.f32.mrf.mxu1  ;;  %v95_v43 = vld [vmem:[#allocation2 + $0x58] sm:$0xff] }
  0xe0   :  { %v950_v55 = vld [vmem:[#allocation2 + $0x130] sm:$0xff]  ;;  %1434 = vst.msk [vmem:[%s2618_s3 + $0x8] sm:$0xf] %vm1431_vm4, %v1633_v46  ;;  %v1631_v58 = vpack.c.bf16 %v1111_v48, %v1111_v48  ;;  %v989_v60 = vadd.f32 %v2146_v1, %v918_v54  ;;  %v1114_v62 = vmax.f32 %v986_v38, %v1050_v50  ;;  %v1048_v0 = vmul.f32 0.2, %v984_v52  ;;  %v124_v38 = vld [vmem:[#allocation2 + $0x140] sm:$0xff] }
  0xe1   :  { %1466 = vst.msk [vmem:[%s2618_s3 + $0x88] sm:$0xf] %vm1431_vm4, %v1665_v47  ;;  %v1663_v59 = vpack.c.bf16 %v1143_v49, %v1143_v49  ;;  %v1021_v61 = vadd.f32 %v2146_v1, %v950_v55  ;;  %v1146_v63 = vmax.f32 %v1018_v39, %v1082_v51  ;;  %v1080_v2 = vmul.f32 0.2, %v1016_v53  ;;  %v916_v3 = vld [vmem:[#allocation2 + $0x20] sm:$0xff]  ;;  %v2184_v5 = vpop.f32.mrf.mxu0  ;;  %v2186_v6 = vpop.f32.mrf.mxu1  ;;  %v127_v46 = vld [vmem:[#allocation2 + $0x158] sm:$0xff] }
  0xe2   :  { %v948_v4 = vld [vmem:[#allocation2 + $0x120] sm:$0xff]  ;;  %1432 = vst.msk [vmem:[%s2618_s3] sm:$0xf] %vm1431_vm4, %v1631_v58  ;;  %v1053_v7 = vmul.f32 0.2, %v989_v60  ;;  %v987_v9 = vadd.f32 %v2146_v1, %v916_v3  ;;  %v1634_v11 = vpack.c.bf16 %v1114_v62, %v1114_v62  ;;  %v1112_v13 = vmax.f32 %v984_v52, %v1048_v0  ;;  %v125_v54 = vld [vmem:[#allocation2 + $0x148] sm:$0xff] }
  0xe3   :  { %1464 = vst.msk [vmem:[%s2618_s3 + $0x80] sm:$0xf] %vm1431_vm4, %v1663_v59  ;;  %v1085_v8 = vmul.f32 0.2, %v1021_v61  ;;  %v1019_v10 = vadd.f32 %v2146_v1, %v948_v4  ;;  %v1666_v12 = vpack.c.bf16 %v1146_v63, %v1146_v63  ;;  %v1144_v14 = vmax.f32 %v1016_v53, %v1080_v2  ;;  %v2198_v15 = vpop.f32.mrf.mxu0  ;;  %v2200_v16 = vpop.f32.mrf.mxu1  ;;  %v919_v21 = vld [vmem:[#allocation2 + $0x38] sm:$0xff]  ;;  %v93_v53 = vld [vmem:[#allocation2 + $0x48] sm:$0xff] }
  0xe4   :  { %v1117_v17 = vmax.f32 %v989_v60, %v1053_v7  ;;  %v1051_v19 = vmul.f32 0.2, %v987_v9  ;;  %v951_v22 = vld [vmem:[#allocation2 + $0x138] sm:$0xff]  ;;  %1435 = vst.msk [vmem:[%s2618_s3 + $0xc] sm:$0xf] %vm1431_vm4, %v1634_v11  ;;  %v1632_v23 = vpack.c.bf16 %v1112_v13, %v1112_v13  ;;  %v990_v25 = vadd.f32 %v2146_v1, %v919_v21  ;;  %v130_v62 = vld [vmem:[#allocation2 + $0x170] sm:$0xff] }
  0xe5   :  { %v1149_v18 = vmax.f32 %v1021_v61, %v1085_v8  ;;  %v1083_v20 = vmul.f32 0.2, %v1019_v10  ;;  %1467 = vst.msk [vmem:[%s2618_s3 + $0x8c] sm:$0xf] %vm1431_vm4, %v1666_v12  ;;  %v1664_v24 = vpack.c.bf16 %v1144_v14, %v1144_v14  ;;  %v1022_v26 = vadd.f32 %v2146_v1, %v951_v22  ;;  %v1747_v30 = vpop.f32.mrf.mxu0  ;;  %v1779_v31 = vpop.f32.mrf.mxu1  ;;  %v917_v36 = vld [vmem:[#allocation2 + $0x28] sm:$0xff]  ;;  %v98_v61 = vld [vmem:[#allocation2 + $0x70] sm:$0xff] }
  0xe6   :  { %v1637_v32 = vpack.c.bf16 %v1117_v17, %v1117_v17  ;;  %v1115_v34 = vmax.f32 %v987_v9, %v1051_v19  ;;  %v949_v37 = vld [vmem:[#allocation2 + $0x128] sm:$0xff]  ;;  %1433 = vst.msk [vmem:[%s2618_s3 + $0x4] sm:$0xf] %vm1431_vm4, %v1632_v23  ;;  %v1054_v39 = vmul.f32 0.2, %v990_v25  ;;  %v988_v41 = vadd.f32 %v2146_v1, %v917_v36  ;;  %v96_v4 = vld [vmem:[#allocation2 + $0x60] sm:$0xff] }
  0xe7   :  { %v1669_v33 = vpack.c.bf16 %v1149_v18, %v1149_v18  ;;  %v1147_v35 = vmax.f32 %v1019_v10, %v1083_v20  ;;  %1465 = vst.msk [vmem:[%s2618_s3 + $0x84] sm:$0xf] %vm1431_vm4, %v1664_v24  ;;  %v1086_v40 = vmul.f32 0.2, %v1022_v26  ;;  %v1020_v42 = vadd.f32 %v2146_v1, %v949_v37  ;;  %v573_v47 = vpop.f32.mrf.mxu0  ;;  %v701_v48 = vpop.f32.mrf.mxu1  ;;  %v128_v7 = vld [vmem:[#allocation2 + $0x160] sm:$0xff]  ;;  %v99_v8 = vld [vmem:[#allocation2 + $0x78] sm:$0xff] }
  0xe8   :  { %1438 = vst.msk [vmem:[%s2618_s3 + $0x18] sm:$0xf] %vm1431_vm4, %v1637_v32  ;;  %v1635_v49 = vpack.c.bf16 %v1115_v34, %v1115_v34  ;;  %v790_v51 = vadd.f32 %v2162_v44, %v94_v27  ;;  %v822_v52 = vadd.f32 %v2164_v45, %v126_v28  ;;  %v1118_v55 = vmax.f32 %v990_v25, %v1054_v39  ;;  %v131_v13 = vld [vmem:[#allocation2 + $0x178] sm:$0xff]  ;;  %v97_v14 = vld [vmem:[#allocation2 + $0x68] sm:$0xff]  ;;  %v102_v20 = vld [vmem:[#allocation2 + $0x90] sm:$0xff] }
  0xe9   :  { %1470 = vst.msk [vmem:[%s2618_s3 + $0x98] sm:$0xf] %vm1431_vm4, %v1669_v33  ;;  %v1667_v50 = vpack.c.bf16 %v1147_v35, %v1147_v35  ;;  %v1150_v58 = vmax.f32 %v1022_v26, %v1086_v40  ;;  %v1052_v59 = vmul.f32 0.2, %v988_v41  ;;  %v1084_v60 = vmul.f32 0.2, %v1020_v42  ;;  %v1748_v63 = vpop.f32.mrf.mxu0  ;;  %v1780_v0 = vpop.f32.mrf.mxu1 }
  0xea   :  { %1436 = vst.msk [vmem:[%s2618_s3 + $0x10] sm:$0xf] %vm1431_vm4, %v1635_v49  ;;  %v788_v44 = vadd.f32 %v2170_v56, %v92_v29  ;;  %v820_v45 = vadd.f32 %v2172_v57, %v124_v38  ;;  %v791_v2 = vadd.f32 %v2184_v5, %v95_v43  ;;  %v823_v3 = vadd.f32 %v2186_v6, %v127_v46  ;;  %v129_v18 = vld [vmem:[#allocation2 + $0x168] sm:$0xff]  ;;  %v134_v21 = vld [vmem:[#allocation2 + $0x190] sm:$0xff]  ;;  %v100_v26 = vld [vmem:[#allocation2 + $0x80] sm:$0xff] }
  0xeb   :  { %1468 = vst.msk [vmem:[%s2618_s3 + $0x90] sm:$0xf] %vm1431_vm4, %v1667_v50  ;;  %v1638_v9 = vpack.c.bf16 %v1118_v55, %v1118_v55  ;;  %v1670_v10 = vpack.c.bf16 %v1150_v58, %v1150_v58  ;;  %v1116_v11 = vmax.f32 %v988_v41, %v1052_v59  ;;  %v1148_v12 = vmax.f32 %v1020_v42, %v1084_v60  ;;  %v576_v17 = vpop.f32.mrf.mxu0  ;;  %v704_v19 = vpop.f32.mrf.mxu1  ;;  %v132_v27 = vld [vmem:[#allocation2 + $0x180] sm:$0xff]  ;;  %v103_v36 = vld [vmem:[#allocation2 + $0x98] sm:$0xff]  ;;  %v101_v50 = vld [vmem:[#allocation2 + $0x88] sm:$0xff] }
  0xec   :  { %855 = vst.msk [vmem:[#allocation2 + $0x50] sm:$0xff] %vm19_vm3, %v790_v51  ;;  %887 = vst.msk [vmem:[#allocation2 + $0x150] sm:$0xff] %vm19_vm3, %v822_v52  ;;  %v789_v56 = vadd.f32 %v2198_v15, %v93_v53  ;;  %v821_v57 = vadd.f32 %v2200_v16, %v125_v54  ;;  %v794_v5 = vadd.f32 %v1747_v30, %v98_v61  ;;  %v135_v37 = vld [vmem:[#allocation2 + $0x198] sm:$0xff]  ;;  %v133_v51 = vld [vmem:[#allocation2 + $0x188] sm:$0xff] }
  0xed   :  { %853 = vst.msk [vmem:[#allocation2 + $0x40] sm:$0xff] %vm19_vm3, %v788_v44  ;;  %885 = vst.msk [vmem:[#allocation2 + $0x140] sm:$0xff] %vm19_vm3, %v820_v45  ;;  %v826_v6 = vadd.f32 %v1779_v31, %v130_v62  ;;  %v1636_v22 = vpack.c.bf16 %v1116_v11, %v1116_v11  ;;  %v1668_v23 = vpack.c.bf16 %v1148_v12, %v1148_v12  ;;  %v1751_v25 = vpop.f32.mrf.mxu0  ;;  %v1783_v16 = vpop.f32.mrf.mxu1 }
  0xee   :  { %856 = vst.msk [vmem:[#allocation2 + $0x58] sm:$0xff] %vm19_vm3, %v791_v2  ;;  %888 = vst.msk [vmem:[#allocation2 + $0x158] sm:$0xff] %vm19_vm3, %v823_v3  ;;  %v792_v24 = vadd.f32 %v573_v47, %v96_v4  ;;  %v824_v15 = vadd.f32 %v701_v48, %v128_v7  ;;  %v795_v28 = vadd.f32 %v1748_v63, %v99_v8 }
  0xef   :  { %1439 = vst.msk [vmem:[%s2618_s3 + $0x1c] sm:$0xf] %vm1431_vm4, %v1638_v9  ;;  %1471 = vst.msk [vmem:[%s2618_s3 + $0x9c] sm:$0xf] %vm1431_vm4, %v1670_v10  ;;  %v827_v29 = vadd.f32 %v1780_v0, %v131_v13  ;;  %v793_v30 = vadd.f32 %v576_v17, %v97_v14  ;;  %v825_v31 = vadd.f32 %v704_v19, %v129_v18  ;;  %v589_v34 = vpop.f32.mrf.mxu0  ;;  %v717_v35 = vpop.f32.mrf.mxu1 }
  0xf0   :  { %854 = vst.msk [vmem:[#allocation2 + $0x48] sm:$0xff] %vm19_vm3, %v789_v56  ;;  %886 = vst.msk [vmem:[#allocation2 + $0x148] sm:$0xff] %vm19_vm3, %v821_v57  ;;  %v798_v32 = vadd.f32 %v1751_v25, %v102_v20  ;;  %v830_v33 = vadd.f32 %v1783_v16, %v134_v21  ;;  %v796_v38 = vadd.f32 %v589_v34, %v100_v26 }
  0xf1   :  { %859 = vst.msk [vmem:[#allocation2 + $0x70] sm:$0xff] %vm19_vm3, %v794_v5  ;;  %891 = vst.msk [vmem:[#allocation2 + $0x170] sm:$0xff] %vm19_vm3, %v826_v6  ;;  %v828_v39 = vadd.f32 %v717_v35, %v132_v27  ;;  %v1752_v42 = vpop.f32.mrf.mxu0  ;;  %v1784_v43 = vpop.f32.mrf.mxu1 }
  0xf2   :  { %1437 = vst.msk [vmem:[%s2618_s3 + $0x14] sm:$0xf] %vm1431_vm4, %v1636_v22  ;;  %1469 = vst.msk [vmem:[%s2618_s3 + $0x94] sm:$0xf] %vm1431_vm4, %v1668_v23  ;;  %v799_v48 = vadd.f32 %v1752_v42, %v103_v36  ;;  %v831_v49 = vadd.f32 %v1784_v43, %v135_v37 }
  0xf3   :  { %857 = vst.msk [vmem:[#allocation2 + $0x60] sm:$0xff] %vm19_vm3, %v792_v24  ;;  %889 = vst.msk [vmem:[#allocation2 + $0x160] sm:$0xff] %vm19_vm3, %v824_v15  ;;  %v922_v40 = vld [vmem:[#allocation2 + $0x50] sm:$0xff]  ;;  %v592_v55 = vpop.f32.mrf.mxu0  ;;  %v720_v58 = vpop.f32.mrf.mxu1 }
  0xf4   :  { %860 = vst.msk [vmem:[#allocation2 + $0x78] sm:$0xff] %vm19_vm3, %v795_v28  ;;  %892 = vst.msk [vmem:[#allocation2 + $0x178] sm:$0xff] %vm19_vm3, %v827_v29  ;;  %v954_v41 = vld [vmem:[#allocation2 + $0x150] sm:$0xff]  ;;  %v993_v46 = vadd.f32 %v2146_v1, %v922_v40  ;;  %v920_v52 = vld [vmem:[#allocation2 + $0x40] sm:$0xff]  ;;  %v797_v3 = vadd.f32 %v592_v55, %v101_v50  ;;  %v829_v4 = vadd.f32 %v720_v58, %v133_v51 }
  0xf5   :  { %858 = vst.msk [vmem:[#allocation2 + $0x68] sm:$0xff] %vm19_vm3, %v793_v30  ;;  %890 = vst.msk [vmem:[#allocation2 + $0x168] sm:$0xff] %vm19_vm3, %v825_v31  ;;  %v1025_v47 = vadd.f32 %v2146_v1, %v954_v41  ;;  %v952_v53 = vld [vmem:[#allocation2 + $0x140] sm:$0xff]  ;;  %v923_v54 = vld [vmem:[#allocation2 + $0x58] sm:$0xff]  ;;  %v991_v61 = vadd.f32 %v2146_v1, %v920_v52  ;;  %v2290_v7 = vpop.f32.mrf.mxu0  ;;  %v2292_v8 = vpop.f32.mrf.mxu1 }
  0xf6   :  { %863 = vst.msk [vmem:[#allocation2 + $0x90] sm:$0xff] %vm19_vm3, %v798_v32  ;;  %895 = vst.msk [vmem:[#allocation2 + $0x190] sm:$0xff] %vm19_vm3, %v830_v33  ;;  %v1057_v59 = vmul.f32 0.2, %v993_v46  ;;  %v1023_v62 = vadd.f32 %v2146_v1, %v952_v53  ;;  %v955_v63 = vld [vmem:[#allocation2 + $0x158] sm:$0xff]  ;;  %v994_v0 = vadd.f32 %v2146_v1, %v923_v54 }
  0xf7   :  { %861 = vst.msk [vmem:[#allocation2 + $0x80] sm:$0xff] %vm19_vm3, %v796_v38  ;;  %893 = vst.msk [vmem:[#allocation2 + $0x180] sm:$0xff] %vm19_vm3, %v828_v39  ;;  %v1089_v60 = vmul.f32 0.2, %v1025_v47  ;;  %v1026_v44 = vadd.f32 %v2146_v1, %v955_v63  ;;  %v921_v45 = vld [vmem:[#allocation2 + $0x48] sm:$0xff]  ;;  %v2298_v57 = vpop.f32.mrf.mxu0  ;;  %v2300_v5 = vpop.f32.mrf.mxu1 }
  0xf8   :  { %864 = vst.msk [vmem:[#allocation2 + $0x98] sm:$0xff] %vm19_vm3, %v799_v48  ;;  %896 = vst.msk [vmem:[#allocation2 + $0x198] sm:$0xff] %vm19_vm3, %v831_v49  ;;  %v953_v2 = vld [vmem:[#allocation2 + $0x148] sm:$0xff]  ;;  %v1121_v9 = vmax.f32 %v993_v46, %v1057_v59  ;;  %v1055_v11 = vmul.f32 0.2, %v991_v61  ;;  %v992_v17 = vadd.f32 %v2146_v1, %v921_v45  ;;  %v926_v19 = vld [vmem:[#allocation2 + $0x70] sm:$0xff] }
  0xf9   :  { %v1153_v10 = vmax.f32 %v1025_v47, %v1089_v60  ;;  %v1087_v12 = vmul.f32 0.2, %v1023_v62  ;;  %v1058_v13 = vmul.f32 0.2, %v994_v0  ;;  %v1090_v14 = vmul.f32 0.2, %v1026_v44  ;;  %v2302_v27 = vpop.f32.mrf.mxu0  ;;  %v2304_v28 = vpop.f32.mrf.mxu1 }
  0xfa   :  { %v1024_v18 = vadd.f32 %v2146_v1, %v953_v2  ;;  %v958_v56 = vld [vmem:[#allocation2 + $0x170] sm:$0xff]  ;;  %862 = vst.msk [vmem:[#allocation2 + $0x88] sm:$0xff] %vm19_vm3, %v797_v3  ;;  %894 = vst.msk [vmem:[#allocation2 + $0x188] sm:$0xff] %vm19_vm3, %v829_v4  ;;  %v1641_v6 = vpack.c.bf16 %v1121_v9, %v1121_v9  ;;  %v1119_v21 = vmax.f32 %v991_v61, %v1055_v11  ;;  %v1056_v15 = vmul.f32 0.2, %v992_v17  ;;  %v924_v16 = vld [vmem:[#allocation2 + $0x60] sm:$0xff] }
  0xfb   :  { %v1673_v20 = vpack.c.bf16 %v1153_v10, %v1153_v10  ;;  %v1151_v22 = vmax.f32 %v1023_v62, %v1087_v12  ;;  %v1122_v23 = vmax.f32 %v994_v0, %v1058_v13  ;;  %v1154_v24 = vmax.f32 %v1026_v44, %v1090_v14  ;;  %v956_v26 = vld [vmem:[#allocation2 + $0x160] sm:$0xff]  ;;  %v927_v33 = vld [vmem:[#allocation2 + $0x78] sm:$0xff]  ;;  %v2316_v39 = vpop.f32.mrf.mxu0  ;;  %v2318_v40 = vpop.f32.mrf.mxu1 }
  0xfc   :  { %v1088_v25 = vmul.f32 0.2, %v1024_v18  ;;  %1442 = vst.msk [vmem:[%s2618_s3 + $0x28] sm:$0xf] %vm1431_vm4, %v1641_v6  ;;  %v1639_v29 = vpack.c.bf16 %v1119_v21, %v1119_v21  ;;  %v997_v31 = vadd.f32 %v2146_v1, %v926_v19  ;;  %v1029_v32 = vadd.f32 %v2146_v1, %v958_v56  ;;  %v959_v34 = vld [vmem:[#allocation2 + $0x178] sm:$0xff]  ;;  %v925_v47 = vld [vmem:[#allocation2 + $0x68] sm:$0xff] }
  0xfd   :  { %1474 = vst.msk [vmem:[%s2618_s3 + $0xa8] sm:$0xf] %vm1431_vm4, %v1673_v20  ;;  %v1671_v30 = vpack.c.bf16 %v1151_v22, %v1151_v22  ;;  %v1642_v35 = vpack.c.bf16 %v1122_v23, %v1122_v23  ;;  %v1674_v36 = vpack.c.bf16 %v1154_v24, %v1154_v24  ;;  %v1120_v37 = vmax.f32 %v992_v17, %v1056_v15  ;;  %v957_v48 = vld [vmem:[#allocation2 + $0x168] sm:$0xff]  ;;  %v2340_v53 = vpop.f32.mrf.mxu0  ;;  %v2342_v54 = vpop.f32.mrf.mxu1  ;;  %v930_v44 = vld [vmem:[#allocation2 + $0x90] sm:$0xff] }
  0xfe   :  { %v1152_v38 = vmax.f32 %v1024_v18, %v1088_v25  ;;  %1440 = vst.msk [vmem:[%s2618_s3 + $0x20] sm:$0xf] %vm1431_vm4, %v1639_v29  ;;  %v1061_v41 = vmul.f32 0.2, %v997_v31  ;;  %v1093_v42 = vmul.f32 0.2, %v1029_v32  ;;  %v995_v43 = vadd.f32 %v2146_v1, %v924_v16 }
  0xff   :  { %1472 = vst.msk [vmem:[%s2618_s3 + $0xa0] sm:$0xf] %vm1431_vm4, %v1671_v30  ;;  %v1027_v46 = vadd.f32 %v2146_v1, %v956_v26  ;;  %1443 = vst.msk [vmem:[%s2618_s3 + $0x2c] sm:$0xf] %vm1431_vm4, %v1642_v35  ;;  %v1640_v49 = vpack.c.bf16 %v1120_v37, %v1120_v37  ;;  %v998_v51 = vadd.f32 %v2146_v1, %v927_v33  ;;  %v962_v45 = vld [vmem:[#allocation2 + $0x190] sm:$0xff]  ;;  %v2354_v2 = vpop.f32.mrf.mxu0  ;;  %v2356_v3 = vpop.f32.mrf.mxu1  ;;  %v928_v18 = vld [vmem:[#allocation2 + $0x80] sm:$0xff] }
 0x100   :  { %1475 = vst.msk [vmem:[%s2618_s3 + $0xac] sm:$0xf] %vm1431_vm4, %v1674_v36  ;;  %v1672_v50 = vpack.c.bf16 %v1152_v38, %v1152_v38  ;;  %v1030_v52 = vadd.f32 %v2146_v1, %v959_v34  ;;  %v1125_v55 = vmax.f32 %v997_v31, %v1061_v41  ;;  %v1157_v58 = vmax.f32 %v1029_v32, %v1093_v42  ;;  %v960_v19 = vld [vmem:[#allocation2 + $0x180] sm:$0xff]  ;;  %v931_v24 = vld [vmem:[#allocation2 + $0x98] sm:$0xff] }
 0x101   :  { %v1059_v59 = vmul.f32 0.2, %v995_v43  ;;  %v1091_v60 = vmul.f32 0.2, %v1027_v46  ;;  %1441 = vst.msk [vmem:[%s2618_s3 + $0x24] sm:$0xf] %vm1431_vm4, %v1640_v49  ;;  %v996_v63 = vadd.f32 %v2146_v1, %v925_v47  ;;  %v1028_v0 = vadd.f32 %v2146_v1, %v957_v48  ;;  %v2358_v56 = vpop.f32.mrf.mxu0  ;;  %v2360_v6 = vpop.f32.mrf.mxu1 }
 0x102   :  { %1473 = vst.msk [vmem:[%s2618_s3 + $0xa4] sm:$0xf] %vm1431_vm4, %v1672_v50  ;;  %v1062_v61 = vmul.f32 0.2, %v998_v51  ;;  %v1094_v62 = vmul.f32 0.2, %v1030_v52  ;;  %v1645_v4 = vpack.c.bf16 %v1125_v55, %v1125_v55  ;;  %v1677_v9 = vpack.c.bf16 %v1157_v58, %v1157_v58 }
 0x103   :  { %v1123_v10 = vmax.f32 %v995_v43, %v1059_v59  ;;  %v1155_v11 = vmax.f32 %v1027_v46, %v1091_v60  ;;  %v1060_v14 = vmul.f32 0.2, %v996_v63  ;;  %v1092_v17 = vmul.f32 0.2, %v1028_v0  ;;  %v963_v15 = vld [vmem:[#allocation2 + $0x198] sm:$0xff]  ;;  %v2372_v30 = vpop.f32.mrf.mxu0  ;;  %v2374_v31 = vpop.f32.mrf.mxu1  ;;  %v929_v36 = vld [vmem:[#allocation2 + $0x88] sm:$0xff] }
 0x104   :  { %v1126_v12 = vmax.f32 %v998_v51, %v1062_v61  ;;  %v1158_v13 = vmax.f32 %v1030_v52, %v1094_v62  ;;  %1446 = vst.msk [vmem:[%s2618_s3 + $0x38] sm:$0xf] %vm1431_vm4, %v1645_v4  ;;  %1478 = vst.msk [vmem:[%s2618_s3 + $0xb8] sm:$0xf] %vm1431_vm4, %v1677_v9  ;;  %v1001_v22 = vadd.f32 %v2146_v1, %v930_v44  ;;  %v961_v37 = vld [vmem:[#allocation2 + $0x188] sm:$0xff]  ;;  %v106_v52 = vld [vmem:[#allocation2 + $0xb0] sm:$0xff] }
 0x105   :  { %v1643_v20 = vpack.c.bf16 %v1123_v10, %v1123_v10  ;;  %v1675_v21 = vpack.c.bf16 %v1155_v11, %v1155_v11  ;;  %v1033_v23 = vadd.f32 %v2146_v1, %v962_v45  ;;  %v1124_v26 = vmax.f32 %v996_v63, %v1060_v14  ;;  %v2396_v46 = vpop.f32.mrf.mxu0  ;;  %v2398_v47 = vpop.f32.mrf.mxu1  ;;  %v138_v55 = vld [vmem:[#allocation2 + $0x1b0] sm:$0xff]  ;;  %v104_v62 = vld [vmem:[#allocation2 + $0xa0] sm:$0xff]  ;;  %v107_v11 = vld [vmem:[#allocation2 + $0xb8] sm:$0xff] }
 0x106   :  { %v1646_v25 = vpack.c.bf16 %v1126_v12, %v1126_v12  ;;  %v1678_v16 = vpack.c.bf16 %v1158_v13, %v1158_v13  ;;  %v1156_v29 = vmax.f32 %v1028_v0, %v1092_v17  ;;  %v1065_v32 = vmul.f32 0.2, %v1001_v22  ;;  %v136_v63 = vld [vmem:[#allocation2 + $0x1a0] sm:$0xff]  ;;  %v139_v12 = vld [vmem:[#allocation2 + $0x1b8] sm:$0xff]  ;;  %v105_v13 = vld [vmem:[#allocation2 + $0xa8] sm:$0xff] }
 0x107   :  { %1444 = vst.msk [vmem:[%s2618_s3 + $0x30] sm:$0xf] %vm1431_vm4, %v1643_v20  ;;  %1476 = vst.msk [vmem:[%s2618_s3 + $0xb0] sm:$0xf] %vm1431_vm4, %v1675_v21  ;;  %v1097_v33 = vmul.f32 0.2, %v1033_v23  ;;  %v999_v34 = vadd.f32 %v2146_v1, %v928_v18  ;;  %v1031_v35 = vadd.f32 %v2146_v1, %v960_v19  ;;  %v1644_v38 = vpack.c.bf16 %v1124_v26, %v1124_v26  ;;  %v2410_v0 = vpop.f32.mrf.mxu0  ;;  %v2412_v44 = vpop.f32.mrf.mxu1 }
 0x108   :  { %1447 = vst.msk [vmem:[%s2618_s3 + $0x3c] sm:$0xf] %vm1431_vm4, %v1646_v25  ;;  %1479 = vst.msk [vmem:[%s2618_s3 + $0xbc] sm:$0xf] %vm1431_vm4, %v1678_v16  ;;  %v1676_v41 = vpack.c.bf16 %v1156_v29, %v1156_v29  ;;  %v1002_v42 = vadd.f32 %v2146_v1, %v931_v24  ;;  %v1034_v43 = vadd.f32 %v2146_v1, %v963_v15  ;;  %v137_v20 = vld [vmem:[#allocation2 + $0x1a8] sm:$0xff]  ;;  %v110_v21 = vld [vmem:[#allocation2 + $0xd0] sm:$0xff] }
 0x109   :  { %v1129_v48 = vmax.f32 %v1001_v22, %v1065_v32  ;;  %v1161_v49 = vmax.f32 %v1033_v23, %v1097_v33  ;;  %v1063_v50 = vmul.f32 0.2, %v999_v34  ;;  %v1095_v51 = vmul.f32 0.2, %v1031_v35  ;;  %1445 = vst.msk [vmem:[%s2618_s3 + $0x34] sm:$0xf] %vm1431_vm4, %v1644_v38  ;;  %v1764_v29 = vpop.f32.mrf.mxu0  ;;  %v1796_v32 = vpop.f32.mrf.mxu1 }
 0x10a   :  { %1477 = vst.msk [vmem:[%s2618_s3 + $0xb4] sm:$0xf] %vm1431_vm4, %v1676_v41  ;;  %v1066_v58 = vmul.f32 0.2, %v1002_v42  ;;  %v1098_v59 = vmul.f32 0.2, %v1034_v43  ;;  %v1000_v60 = vadd.f32 %v2146_v1, %v929_v36  ;;  %v1032_v61 = vadd.f32 %v2146_v1, %v961_v37 }
 0x10b   :  { %v1649_v45 = vpack.c.bf16 %v1129_v48, %v1129_v48  ;;  %v1681_v4 = vpack.c.bf16 %v1161_v49, %v1161_v49  ;;  %v1127_v9 = vmax.f32 %v999_v34, %v1063_v50  ;;  %v1159_v10 = vmax.f32 %v1031_v35, %v1095_v51  ;;  %v142_v25 = vld [vmem:[#allocation2 + $0x1d0] sm:$0xff]  ;;  %v108_v16 = vld [vmem:[#allocation2 + $0xc0] sm:$0xff]  ;;  %v111_v37 = vld [vmem:[#allocation2 + $0xd8] sm:$0xff] }
 0x10c   :  { %v1130_v14 = vmax.f32 %v1002_v42, %v1066_v58  ;;  %v1162_v17 = vmax.f32 %v1034_v43, %v1098_v59  ;;  %v1064_v18 = vmul.f32 0.2, %v1000_v60  ;;  %v1096_v19 = vmul.f32 0.2, %v1032_v61  ;;  %v140_v26 = vld [vmem:[#allocation2 + $0x1c0] sm:$0xff]  ;;  %v143_v38 = vld [vmem:[#allocation2 + $0x1d8] sm:$0xff] }
 0x10d   :  { %1450 = vst.msk [vmem:[%s2618_s3 + $0x48] sm:$0xf] %vm1431_vm4, %v1649_v45  ;;  %1482 = vst.msk [vmem:[%s2618_s3 + $0xc8] sm:$0xf] %vm1431_vm4, %v1681_v4  ;;  %v1647_v22 = vpack.c.bf16 %v1127_v9, %v1127_v9  ;;  %v1679_v23 = vpack.c.bf16 %v1159_v10, %v1159_v10  ;;  %v802_v24 = vadd.f32 %v2290_v7, %v106_v52  ;;  %v109_v41 = vld [vmem:[#allocation2 + $0xc8] sm:$0xff]  ;;  %v114_v49 = vld [vmem:[#allocation2 + $0xf0] sm:$0xff]  ;;  %v768_v45 = vpop.f32.mrf.mxu1 }
 0x10e   :  { %v834_v15 = vadd.f32 %v2292_v8, %v138_v55  ;;  %v1650_v33 = vpack.c.bf16 %v1130_v14, %v1130_v14  ;;  %v1682_v34 = vpack.c.bf16 %v1162_v17, %v1162_v17  ;;  %v1128_v35 = vmax.f32 %v1000_v60, %v1064_v18  ;;  %v141_v48 = vld [vmem:[#allocation2 + $0x1c8] sm:$0xff]  ;;  %v146_v50 = vld [vmem:[#allocation2 + $0x1f0] sm:$0xff]  ;;  %v144_v52 = vld [vmem:[#allocation2 + $0x1e0] sm:$0xff] }
 0x10f   :  { %v1160_v36 = vmax.f32 %v1032_v61, %v1096_v19  ;;  %1448 = vst.msk [vmem:[%s2618_s3 + $0x40] sm:$0xf] %vm1431_vm4, %v1647_v22  ;;  %1480 = vst.msk [vmem:[%s2618_s3 + $0xc0] sm:$0xf] %vm1431_vm4, %v1679_v23  ;;  %v800_v7 = vadd.f32 %v2298_v57, %v104_v62  ;;  %v832_v8 = vadd.f32 %v2300_v5, %v136_v63  ;;  %v115_v55 = vld [vmem:[#allocation2 + $0xf8] sm:$0xff]  ;;  %v113_v61 = vld [vmem:[#allocation2 + $0xe8] sm:$0xff]  ;;  %v640_v62 = vpop.f32.mrf.mxu0 }
 0x110   :  { %867 = vst.msk [vmem:[#allocation2 + $0xb0] sm:$0xff] %vm19_vm3, %v802_v24  ;;  %899 = vst.msk [vmem:[#allocation2 + $0x1b0] sm:$0xff] %vm19_vm3, %v834_v15  ;;  %v803_v42 = vadd.f32 %v2302_v27, %v107_v11  ;;  %v835_v43 = vadd.f32 %v2304_v28, %v139_v12  ;;  %v1648_v57 = vpack.c.bf16 %v1128_v35, %v1128_v35  ;;  %v112_v28 = vld [vmem:[#allocation2 + $0xe0] sm:$0xff]  ;;  %v145_v63 = vld [vmem:[#allocation2 + $0x1e8] sm:$0xff] }
 0x111   :  { %1451 = vst.msk [vmem:[%s2618_s3 + $0x4c] sm:$0xf] %vm1431_vm4, %v1650_v33  ;;  %1483 = vst.msk [vmem:[%s2618_s3 + $0xcc] sm:$0xf] %vm1431_vm4, %v1682_v34  ;;  %v1680_v51 = vpack.c.bf16 %v1160_v36, %v1160_v36  ;;  %v801_v5 = vadd.f32 %v2316_v39, %v105_v13  ;;  %v833_v27 = vadd.f32 %v2318_v40, %v137_v20  ;;  %v147_v40 = vld [vmem:[#allocation2 + $0x1f8] sm:$0xff] }
 0x112   :  { %865 = vst.msk [vmem:[#allocation2 + $0xa0] sm:$0xff] %vm19_vm3, %v800_v7  ;;  %897 = vst.msk [vmem:[#allocation2 + $0x1a0] sm:$0xff] %vm19_vm3, %v832_v8  ;;  %v806_v58 = vadd.f32 %v2340_v53, %v110_v21  ;;  %v838_v59 = vadd.f32 %v2342_v54, %v142_v25  ;;  %v804_v60 = vadd.f32 %v2354_v2, %v108_v16 }
 0x113   :  { %868 = vst.msk [vmem:[#allocation2 + $0xb8] sm:$0xff] %vm19_vm3, %v803_v42  ;;  %900 = vst.msk [vmem:[#allocation2 + $0x1b8] sm:$0xff] %vm19_vm3, %v835_v43  ;;  %v836_v39 = vadd.f32 %v2356_v3, %v140_v26  ;;  %v807_v53 = vadd.f32 %v2358_v56, %v111_v37  ;;  %v839_v54 = vadd.f32 %v2360_v6, %v143_v38 }
 0x114   :  { %1449 = vst.msk [vmem:[%s2618_s3 + $0x44] sm:$0xf] %vm1431_vm4, %v1648_v57  ;;  %1481 = vst.msk [vmem:[%s2618_s3 + $0xc4] sm:$0xf] %vm1431_vm4, %v1680_v51  ;;  %v805_v2 = vadd.f32 %v2372_v30, %v109_v41  ;;  %v837_v3 = vadd.f32 %v2374_v31, %v141_v48  ;;  %v810_v4 = vadd.f32 %v2396_v46, %v114_v49 }
 0x115   :  { %866 = vst.msk [vmem:[#allocation2 + $0xa8] sm:$0xff] %vm19_vm3, %v801_v5  ;;  %898 = vst.msk [vmem:[#allocation2 + $0x1a8] sm:$0xff] %vm19_vm3, %v833_v27  ;;  %v842_v9 = vadd.f32 %v2398_v47, %v146_v50  ;;  %v808_v56 = vadd.f32 %v2410_v0, %v112_v28  ;;  %v840_v6 = vadd.f32 %v2412_v44, %v144_v52 }
 0x116   :  { %871 = vst.msk [vmem:[#allocation2 + $0xd0] sm:$0xff] %vm19_vm3, %v806_v58  ;;  %903 = vst.msk [vmem:[#allocation2 + $0x1d0] sm:$0xff] %vm19_vm3, %v838_v59  ;;  %v811_v30 = vadd.f32 %v1764_v29, %v115_v55  ;;  %v843_v31 = vadd.f32 %v1796_v32, %v147_v40  ;;  %v809_v10 = vadd.f32 %v640_v62, %v113_v61 }
 0x117   :  { %869 = vst.msk [vmem:[#allocation2 + $0xc0] sm:$0xff] %vm19_vm3, %v804_v60  ;;  %901 = vst.msk [vmem:[#allocation2 + $0x1c0] sm:$0xff] %vm19_vm3, %v836_v39  ;;  %v841_v11 = vadd.f32 %v768_v45, %v145_v63  ;;  %v934_v46 = vld [vmem:[#allocation2 + $0xb0] sm:$0xff] }
 0x118   :  { %872 = vst.msk [vmem:[#allocation2 + $0xd8] sm:$0xff] %vm19_vm3, %v807_v53  ;;  %904 = vst.msk [vmem:[#allocation2 + $0x1d8] sm:$0xff] %vm19_vm3, %v839_v54  ;;  %v966_v47 = vld [vmem:[#allocation2 + $0x1b0] sm:$0xff]  ;;  %v1005_v0 = vadd.f32 %v2146_v1, %v934_v46 }
 0x119   :  { %870 = vst.msk [vmem:[#allocation2 + $0xc8] sm:$0xff] %vm19_vm3, %v805_v2  ;;  %902 = vst.msk [vmem:[#allocation2 + $0x1c8] sm:$0xff] %vm19_vm3, %v837_v3  ;;  %v1037_v44 = vadd.f32 %v2146_v1, %v966_v47  ;;  %v932_v12 = vld [vmem:[#allocation2 + $0xa0] sm:$0xff] }
 0x11a   :  { %875 = vst.msk [vmem:[#allocation2 + $0xf0] sm:$0xff] %vm19_vm3, %v810_v4  ;;  %907 = vst.msk [vmem:[#allocation2 + $0x1f0] sm:$0xff] %vm19_vm3, %v842_v9  ;;  %v964_v13 = vld [vmem:[#allocation2 + $0x1a0] sm:$0xff]  ;;  %v935_v14 = vld [vmem:[#allocation2 + $0xb8] sm:$0xff]  ;;  %v1069_v17 = vmul.f32 0.2, %v1005_v0  ;;  %v1003_v19 = vadd.f32 %v2146_v1, %v932_v12 }
 0x11b   :  { %873 = vst.msk [vmem:[#allocation2 + $0xe0] sm:$0xff] %vm19_vm3, %v808_v56  ;;  %905 = vst.msk [vmem:[#allocation2 + $0x1e0] sm:$0xff] %vm19_vm3, %v840_v6  ;;  %v1101_v18 = vmul.f32 0.2, %v1037_v44  ;;  %v1035_v20 = vadd.f32 %v2146_v1, %v964_v13  ;;  %v967_v21 = vld [vmem:[#allocation2 + $0x1b8] sm:$0xff]  ;;  %v1006_v23 = vadd.f32 %v2146_v1, %v935_v14 }
 0x11c   :  { %876 = vst.msk [vmem:[#allocation2 + $0xf8] sm:$0xff] %vm19_vm3, %v811_v30  ;;  %908 = vst.msk [vmem:[#allocation2 + $0x1f8] sm:$0xff] %vm19_vm3, %v843_v31  ;;  %v933_v22 = vld [vmem:[#allocation2 + $0xa8] sm:$0xff]  ;;  %v1038_v24 = vadd.f32 %v2146_v1, %v967_v21  ;;  %v1133_v16 = vmax.f32 %v1005_v0, %v1069_v17  ;;  %v1067_v29 = vmul.f32 0.2, %v1003_v19 }
 0x11d   :  { %874 = vst.msk [vmem:[#allocation2 + $0xe8] sm:$0xff] %vm19_vm3, %v809_v10  ;;  %906 = vst.msk [vmem:[#allocation2 + $0x1e8] sm:$0xff] %vm19_vm3, %v841_v11  ;;  %v1004_v15 = vadd.f32 %v2146_v1, %v933_v22  ;;  %v965_v25 = vld [vmem:[#allocation2 + $0x1a8] sm:$0xff]  ;;  %v1165_v26 = vmax.f32 %v1037_v44, %v1101_v18  ;;  %v1099_v32 = vmul.f32 0.2, %v1035_v20  ;;  %v938_v33 = vld [vmem:[#allocation2 + $0xd0] sm:$0xff] }
 0x11e   :  { %v970_v34 = vld [vmem:[#allocation2 + $0x1d0] sm:$0xff]  ;;  %v1070_v35 = vmul.f32 0.2, %v1006_v23  ;;  %v1102_v36 = vmul.f32 0.2, %v1038_v24  ;;  %v1036_v38 = vadd.f32 %v2146_v1, %v965_v25  ;;  %v1653_v41 = vpack.c.bf16 %v1133_v16, %v1133_v16  ;;  %v936_v57 = vld [vmem:[#allocation2 + $0xc0] sm:$0xff] }
 0x11f   :  { %v1068_v37 = vmul.f32 0.2, %v1004_v15  ;;  %v1685_v7 = vpack.c.bf16 %v1165_v26, %v1165_v26  ;;  %v1131_v8 = vmax.f32 %v1003_v19, %v1067_v29  ;;  %v1163_v42 = vmax.f32 %v1035_v20, %v1099_v32  ;;  %v968_v51 = vld [vmem:[#allocation2 + $0x1c0] sm:$0xff]  ;;  %v939_v55 = vld [vmem:[#allocation2 + $0xd8] sm:$0xff] }
 0x120   :  { %v1134_v43 = vmax.f32 %v1006_v23, %v1070_v35  ;;  %v1166_v48 = vmax.f32 %v1038_v24, %v1102_v36  ;;  %v1100_v50 = vmul.f32 0.2, %v1036_v38  ;;  %1454 = vst.msk [vmem:[%s2618_s3 + $0x58] sm:$0xf] %vm1431_vm4, %v1653_v41  ;;  %v1009_v28 = vadd.f32 %v2146_v1, %v938_v33  ;;  %v971_v58 = vld [vmem:[#allocation2 + $0x1d8] sm:$0xff]  ;;  %v937_v59 = vld [vmem:[#allocation2 + $0xc8] sm:$0xff] }
 0x121   :  { %v1132_v49 = vmax.f32 %v1004_v15, %v1068_v37  ;;  %1486 = vst.msk [vmem:[%s2618_s3 + $0xd8] sm:$0xf] %vm1431_vm4, %v1685_v7  ;;  %v1651_v5 = vpack.c.bf16 %v1131_v8, %v1131_v8  ;;  %v1683_v27 = vpack.c.bf16 %v1163_v42, %v1163_v42  ;;  %v1041_v52 = vadd.f32 %v2146_v1, %v970_v34  ;;  %v2519_v1 = vld [vmem:[%s2617_s2] ss:$0 sm:$0xff]  ;;  %v969_v54 = vld [vmem:[#allocation2 + $0x1c8] sm:$0xff]  ;;  %v942_v10 = vld [vmem:[#allocation2 + $0xf0] sm:$0xff] }
 0x122   :  { %v1654_v60 = vpack.c.bf16 %v1134_v43, %v1134_v43  ;;  %v1686_v39 = vpack.c.bf16 %v1166_v48, %v1166_v48  ;;  %v1164_v61 = vmax.f32 %v1036_v38, %v1100_v50  ;;  %v1073_v62 = vmul.f32 0.2, %v1009_v28  ;;  %v974_v11 = vld [vmem:[#allocation2 + $0x1f0] sm:$0xff]  ;;  %v940_v22 = vld [vmem:[#allocation2 + $0xe0] sm:$0xff] }
 0x123   :  { %v1652_v40 = vpack.c.bf16 %v1132_v49, %v1132_v49  ;;  %1452 = vst.msk [vmem:[%s2618_s3 + $0x50] sm:$0xf] %vm1431_vm4, %v1651_v5  ;;  %1484 = vst.msk [vmem:[%s2618_s3 + $0xd0] sm:$0xf] %vm1431_vm4, %v1683_v27  ;;  %v1105_v63 = vmul.f32 0.2, %v1041_v52  ;;  %v1007_v45 = vadd.f32 %v2519_v1, %v936_v57  ;;  %v1039_v53 = vadd.f32 %v2519_v1, %v968_v51 }
 0x124   :  { %1455 = vst.msk [vmem:[%s2618_s3 + $0x5c] sm:$0xf] %vm1431_vm4, %v1654_v60  ;;  %1487 = vst.msk [vmem:[%s2618_s3 + $0xdc] sm:$0xf] %vm1431_vm4, %v1686_v39  ;;  %v1684_v2 = vpack.c.bf16 %v1164_v61, %v1164_v61  ;;  %v1010_v3 = vadd.f32 %v2519_v1, %v939_v55  ;;  %v1042_v4 = vadd.f32 %v2519_v1, %v971_v58  ;;  %v972_v23 = vld [vmem:[#allocation2 + $0x1e0] sm:$0xff]  ;;  %v943_v26 = vld [vmem:[#allocation2 + $0xf8] sm:$0xff] }
 0x125   :  { %1453 = vst.msk [vmem:[%s2618_s3 + $0x54] sm:$0xf] %vm1431_vm4, %v1652_v40  ;;  %v1008_v9 = vadd.f32 %v2519_v1, %v937_v59  ;;  %v1137_v56 = vmax.f32 %v1009_v28, %v1073_v62  ;;  %v1169_v6 = vmax.f32 %v1041_v52, %v1105_v63  ;;  %v1071_v30 = vmul.f32 0.2, %v1007_v45  ;;  %v975_v29 = vld [vmem:[#allocation2 + $0x1f8] sm:$0xff]  ;;  %v941_v32 = vld [vmem:[#allocation2 + $0xe8] sm:$0xff] }
 0x126   :  { %v1103_v31 = vmul.f32 0.2, %v1039_v53  ;;  %1485 = vst.msk [vmem:[%s2618_s3 + $0xd4] sm:$0xf] %vm1431_vm4, %v1684_v2  ;;  %v1074_v46 = vmul.f32 0.2, %v1010_v3  ;;  %v1040_v44 = vadd.f32 %v2519_v1, %v969_v54  ;;  %v1013_v25 = vadd.f32 %v2519_v1, %v942_v10 }
 0x127   :  { %v1106_v47 = vmul.f32 0.2, %v1042_v4  ;;  %v1072_v0 = vmul.f32 0.2, %v1008_v9  ;;  %v1657_v12 = vpack.c.bf16 %v1137_v56, %v1137_v56  ;;  %v1689_v13 = vpack.c.bf16 %v1169_v6, %v1169_v6  ;;  %v973_v8 = vld [vmem:[#allocation2 + $0x1e8] sm:$0xff] }
 0x128   :  { %v1135_v14 = vmax.f32 %v1007_v45, %v1071_v30  ;;  %v1167_v17 = vmax.f32 %v1039_v53, %v1103_v31  ;;  %v1138_v18 = vmax.f32 %v1010_v3, %v1074_v46  ;;  %v1104_v21 = vmul.f32 0.2, %v1040_v44 }
 0x129   :  { %v1170_v19 = vmax.f32 %v1042_v4, %v1106_v47  ;;  %v1136_v20 = vmax.f32 %v1008_v9, %v1072_v0  ;;  %1458 = vst.msk [vmem:[%s2618_s3 + $0x68] sm:$0xf] %vm1431_vm4, %v1657_v12  ;;  %1490 = vst.msk [vmem:[%s2618_s3 + $0xe8] sm:$0xf] %vm1431_vm4, %v1689_v13  ;;  %v1045_v16 = vadd.f32 %v2519_v1, %v974_v11  ;;  %v1077_v37 = vmul.f32 0.2, %v1013_v25 }
 0x12a   :  { %v1655_v24 = vpack.c.bf16 %v1135_v14, %v1135_v14  ;;  %v1687_v15 = vpack.c.bf16 %v1167_v17, %v1167_v17  ;;  %v1658_v33 = vpack.c.bf16 %v1138_v18, %v1138_v18  ;;  %v1168_v36 = vmax.f32 %v1040_v44, %v1104_v21 }
 0x12b   :  { %v1690_v34 = vpack.c.bf16 %v1170_v19, %v1170_v19  ;;  %v1656_v35 = vpack.c.bf16 %v1136_v20, %v1136_v20  ;;  %v1109_v38 = vmul.f32 0.2, %v1045_v16  ;;  %v1011_v41 = vadd.f32 %v2519_v1, %v940_v22 }
 0x12c   :  { %1456 = vst.msk [vmem:[%s2618_s3 + $0x60] sm:$0xf] %vm1431_vm4, %v1655_v24  ;;  %1488 = vst.msk [vmem:[%s2618_s3 + $0xe0] sm:$0xf] %vm1431_vm4, %v1687_v15  ;;  %v1043_v7 = vadd.f32 %v2519_v1, %v972_v23  ;;  %v1688_v42 = vpack.c.bf16 %v1168_v36, %v1168_v36  ;;  %v1014_v43 = vadd.f32 %v2519_v1, %v943_v26 }
 0x12d   :  { %1459 = vst.msk [vmem:[%s2618_s3 + $0x6c] sm:$0xf] %vm1431_vm4, %v1658_v33  ;;  %1491 = vst.msk [vmem:[%s2618_s3 + $0xec] sm:$0xf] %vm1431_vm4, %v1690_v34  ;;  %v1046_v48 = vadd.f32 %v2519_v1, %v975_v29  ;;  %v1012_v49 = vadd.f32 %v2519_v1, %v941_v32  ;;  %v1141_v50 = vmax.f32 %v1013_v25, %v1077_v37  ;;  %v1075_v51 = vmul.f32 0.2, %v1011_v41 }
 0x12e   :  { %1457 = vst.msk [vmem:[%s2618_s3 + $0x64] sm:$0xf] %vm1431_vm4, %v1656_v35  ;;  %v1173_v57 = vmax.f32 %v1045_v16, %v1109_v38  ;;  %v1107_v5 = vmul.f32 0.2, %v1043_v7  ;;  %1489 = vst.msk [vmem:[%s2618_s3 + $0xe4] sm:$0xf] %vm1431_vm4, %v1688_v42  ;;  %v1044_v55 = vadd.f32 %v2519_v1, %v973_v8 }
 0x12f   :  { %v1078_v27 = vmul.f32 0.2, %v1014_v43  ;;  %v1110_v28 = vmul.f32 0.2, %v1046_v48  ;;  %v1076_v52 = vmul.f32 0.2, %v1012_v49  ;;  %v1661_v58 = vpack.c.bf16 %v1141_v50, %v1141_v50 }
 0x130   :  { %v1693_v59 = vpack.c.bf16 %v1173_v57, %v1173_v57  ;;  %v1139_v60 = vmax.f32 %v1011_v41, %v1075_v51  ;;  %v1171_v39 = vmax.f32 %v1043_v7, %v1107_v5  ;;  %v1108_v63 = vmul.f32 0.2, %v1044_v55 }
 0x131   :  { %v1142_v40 = vmax.f32 %v1014_v43, %v1078_v27  ;;  %v1174_v61 = vmax.f32 %v1046_v48, %v1110_v28  ;;  %v1140_v62 = vmax.f32 %v1012_v49, %v1076_v52  ;;  %1462 = vst.msk [vmem:[%s2618_s3 + $0x78] sm:$0xf] %vm1431_vm4, %v1661_v58 }
 0x132   :  { %1494 = vst.msk [vmem:[%s2618_s3 + $0xf8] sm:$0xf] %vm1431_vm4, %v1693_v59  ;;  %v1659_v45 = vpack.c.bf16 %v1139_v60, %v1139_v60  ;;  %v1691_v1 = vpack.c.bf16 %v1171_v39, %v1171_v39  ;;  %v1172_v3 = vmax.f32 %v1044_v55, %v1108_v63 }
 0x133   :  { %v1662_v53 = vpack.c.bf16 %v1142_v40, %v1142_v40  ;;  %v1694_v54 = vpack.c.bf16 %v1174_v61, %v1174_v61  ;;  %v1660_v2 = vpack.c.bf16 %v1140_v62, %v1140_v62 }
 0x134   :  { %1460 = vst.msk [vmem:[%s2618_s3 + $0x70] sm:$0xf] %vm1431_vm4, %v1659_v45  ;;  %1492 = vst.msk [vmem:[%s2618_s3 + $0xf0] sm:$0xf] %vm1431_vm4, %v1691_v1  ;;  %v1692_v4 = vpack.c.bf16 %v1172_v3, %v1172_v3 }
 0x135   :  { %1463 = vst.msk [vmem:[%s2618_s3 + $0x7c] sm:$0xf] %vm1431_vm4, %v1662_v53  ;;  %1495 = vst.msk [vmem:[%s2618_s3 + $0xfc] sm:$0xf] %vm1431_vm4, %v1694_v54 }
 0x136   :  { %1461 = vst.msk [vmem:[%s2618_s3 + $0x74] sm:$0xf] %vm1431_vm4, %v1660_v2  ;;  %1493 = vst.msk [vmem:[%s2618_s3 + $0xf4] sm:$0xf] %vm1431_vm4, %v1692_v4 }

// kernel: discriminator_forward.13
= control target key start
LH: loop header
LB: loop body
LE: loop exit
PB: predicated region body
PF: predicated region fallthrough
CT: control target
= control target key end

     0   :  { %vm19_vm0 = vcmask 523264   ;;  %vm1074_vm1 = vcmask 519168   ;;  %s1902_s1 = inlined_call_operand.vmem [shape: bf16[576,64], index: 1, kind: input, shape index: {}]   ;;  %s1903_s0 = inlined_call_operand.vmem [shape: bf16[128,576], index: 0, kind: input, shape index: {}]   ;;  %s1904_s2 = inlined_call_operand.vmem [shape: f32[1,64], index: 2, kind: input, shape index: {}]   ;;  %s1905_s3 = inlined_call_operand.vmem [shape: bf16[128,64], index: 3, kind: output, shape index: {}]  }
   0x1   :  { %v1385_v0 = vld [vmem:[%s1902_s1 + $0x78] sm:$0xff]   ;;  %v1389_v4 = vld [vmem:[%s1902_s1 + $0x70] sm:$0xff]   ;;  %v1393_v8 = vld [vmem:[%s1902_s1 + $0x68] sm:$0xff]  }
   0x2   :  { %v1386_v1 = vld [vmem:[%s1902_s1 + $0xf8] sm:$0xff]   ;;  %1212 = vmatprep.subr.bf16.mxu0 %v1385_v0  ;;  %v1390_v5 = vld [vmem:[%s1902_s1 + $0xf0] sm:$0xff]   ;;  %v1394_v9 = vld [vmem:[%s1902_s1 + $0xe8] sm:$0xff]  }
   0x3   :  { %v1387_v2 = vld [vmem:[%s1902_s1 + $0x38] sm:$0xff]   ;;  %1276 = vmatprep.subr.bf16.mxu1 %v1386_v1  ;;  %v1391_v6 = vld [vmem:[%s1902_s1 + $0x30] sm:$0xff]   ;;  %v1395_v10 = vld [vmem:[%s1902_s1 + $0x28] sm:$0xff]  }
   0x4   :  { %v1388_v3 = vld [vmem:[%s1902_s1 + $0xb8] sm:$0xff]   ;;  %1213 = vmatpush3.bf16.msra.mxu0 %v1387_v2  ;;  %v1392_v7 = vld [vmem:[%s1902_s1 + $0xb0] sm:$0xff]   ;;  %v1396_v11 = vld [vmem:[%s1902_s1 + $0xa8] sm:$0xff]  }
   0x5   :  { %1277 = vmatpush3.bf16.msra.mxu1 %v1388_v3  ;;  %1214 = vmatprep.subr.bf16.mxu0 %v1389_v4  ;;  %v1397_v12 = vld [vmem:[%s1902_s1 + $0x60] sm:$0xff]   ;;  %v1401_v16 = vld [vmem:[%s1902_s1 + $0x58] sm:$0xff]   ;;  %v1405_v20 = vld [vmem:[%s1902_s1 + $0x50] sm:$0xff]  }
   0x6   :  { %1278 = vmatprep.subr.bf16.mxu1 %v1390_v5  ;;  %v1398_v13 = vld [vmem:[%s1902_s1 + $0xe0] sm:$0xff]   ;;  %v1402_v17 = vld [vmem:[%s1902_s1 + $0xd8] sm:$0xff]   ;;  %v1406_v21 = vld [vmem:[%s1902_s1 + $0xd0] sm:$0xff]  }
   0x7   :  { %v1399_v14 = vld [vmem:[%s1902_s1 + $0x20] sm:$0xff]   ;;  %v1403_v18 = vld [vmem:[%s1902_s1 + $0x18] sm:$0xff]   ;;  %v1407_v22 = vld [vmem:[%s1902_s1 + $0x10] sm:$0xff]  }
   0x8   :  { %1215 = vmatpush3.bf16.msra.mxu0 %v1391_v6  ;;  %v1400_v15 = vld [vmem:[%s1902_s1 + $0xa0] sm:$0xff]   ;;  %v1404_v19 = vld [vmem:[%s1902_s1 + $0x98] sm:$0xff]   ;;  %v1408_v23 = vld [vmem:[%s1902_s1 + $0x90] sm:$0xff]  }
   0x9   :  { %1279 = vmatpush3.bf16.msra.mxu1 %v1392_v7  ;;  %1216 = vmatprep.subr.bf16.mxu0 %v1393_v8  ;;  %v1409_v24 = vld [vmem:[%s1902_s1 + $0x48] sm:$0xff]   ;;  %v1413_v28 = vld [vmem:[%s1902_s1 + $0x40] sm:$0xff]   ;;  %v1423_v36 = vld [vmem:[%s1902_s1 + $0x118] sm:$0xff]  }
   0xa   :  { %1280 = vmatprep.subr.bf16.mxu1 %v1394_v9  ;;  %v1410_v25 = vld [vmem:[%s1902_s1 + $0xc8] sm:$0xff]   ;;  %v1414_v29 = vld [vmem:[%s1902_s1 + $0xc0] sm:$0xff]   ;;  %v1436_v42 = vld [vmem:[%s1902_s1 + $0x110] sm:$0xff]  }
   0xb   :  { %v1411_v26 = vld [vmem:[%s1902_s1 + $0x8] sm:$0xff]   ;;  %v1415_v30 = vld [vmem:[%s1902_s1] sm:$0xff]   ;;  %v1432_v43 = vld [vmem:[%s1903_s0 + $0x5c] ss:$20 sps:$4 sm:$0xff]  }
   0xc   :  { %1217 = vmatpush3.bf16.msra.mxu0 %v1395_v10  ;;  %v1412_v27 = vld [vmem:[%s1902_s1 + $0x88] sm:$0xff]   ;;  %v1416_v31 = vld [vmem:[%s1902_s1 + $0x80] sm:$0xff]   ;;  %v1437_v47 = vld [vmem:[%s1903_s0 + $0x7c] ss:$20 sps:$4 sm:$0xff]  }
   0xd   :  { %1281 = vmatpush3.bf16.msra.mxu1 %v1396_v11  ;;  %1218 = vmatprep.subr.bf16.mxu0 %v1397_v12  ;;  %v1417_v32 = vld [vmem:[%s1903_s0] ss:$20 sps:$4 sm:$0xff]   ;;  %v1419_v33 = vld [vmem:[%s1903_s0 + $0x4] ss:$20 sps:$4 sm:$0xff]   ;;  %v1420_v34 = vld [vmem:[%s1903_s0 + $0x8] ss:$20 sps:$4 sm:$0xff]  }
   0xe   :  { %1282 = vmatprep.subr.bf16.mxu1 %v1398_v13  ;;  %v1422_v35 = vld [vmem:[%s1903_s0 + $0xc] ss:$20 sps:$4 sm:$0xff]   ;;  %645 = vmatprep.mubr.bf16.mxu0 %v1419_v33  ;;  %v1426_v38 = vld [vmem:[%s1903_s0 + $0x34] ss:$20 sps:$4 sm:$0xff]   ;;  %v1429_v40 = vld [vmem:[%s1903_s0 + $0x30] ss:$20 sps:$4 sm:$0xff]  }
   0xf   :  { %742 = vmatprep.mubr.bf16.mxu1 %v1422_v35  ;;  %v1424_v37 = vld [vmem:[%s1903_s0 + $0x2c] ss:$20 sps:$4 sm:$0xff]   ;;  %v1428_v39 = vld [vmem:[%s1903_s0 + $0x28] ss:$20 sps:$4 sm:$0xff]   ;;  %v1434_v44 = vld [vmem:[%s1903_s0 + $0x50] ss:$20 sps:$4 sm:$0xff]  }
  0x10   :  { %1219 = vmatpush3.bf16.msra.mxu0 %v1399_v14  ;;  %v1430_v41 = vld [vmem:[%s1903_s0 + $0x54] ss:$20 sps:$4 sm:$0xff]   ;;  %v1435_v45 = vld [vmem:[%s1903_s0 + $0x58] ss:$20 sps:$4 sm:$0xff]   ;;  %v1462_v49 = vld [vmem:[%s1902_s1 + $0x100] sm:$0xff]   ;;  %v1477_v12 = vmov 0.0  }
  0x11   :  { %1283 = vmatpush3.bf16.msra.mxu1 %v1400_v15  ;;  %1220 = vmatprep.subr.bf16.mxu0 %v1401_v16  ;;  %v1449_v46 = vld [vmem:[%s1902_s1 + $0x108] sm:$0xff]   ;;  %v1439_v48 = vld [vmem:[%s1903_s0 + $0x84] ss:$20 sps:$4 sm:$0xff]   ;;  %v1442_v51 = vld [vmem:[%s1903_s0 + $0x80] ss:$20 sps:$4 sm:$0xff]   ;;  %22 = vst.msk [vmem:[#allocation2 + $0x10] sm:$0xff] %vm19_vm0, %v1477_v12 }
  0x12   :  { %1284 = vmatprep.subr.bf16.mxu1 %v1402_v17  ;;  %v1441_v50 = vld [vmem:[%s1903_s0 + $0x78] ss:$20 sps:$4 sm:$0xff]   ;;  %v1447_v54 = vld [vmem:[%s1903_s0 + $0xa0] ss:$20 sps:$4 sm:$0xff]   ;;  %v1448_v55 = vld [vmem:[%s1903_s0 + $0xa8] ss:$20 sps:$4 sm:$0xff]  }
  0x13   :  { %v1443_v52 = vld [vmem:[%s1903_s0 + $0xa4] ss:$20 sps:$4 sm:$0xff]   ;;  %v1445_v53 = vld [vmem:[%s1903_s0 + $0xac] ss:$20 sps:$4 sm:$0xff]   ;;  %v1452_v57 = vld [vmem:[%s1903_s0 + $0xd4] ss:$20 sps:$4 sm:$0xff]  }
  0x14   :  { %1221 = vmatpush3.bf16.msra.mxu0 %v1403_v18  ;;  %v1450_v56 = vld [vmem:[%s1903_s0 + $0xcc] ss:$20 sps:$4 sm:$0xff]   ;;  %v1454_v58 = vld [vmem:[%s1903_s0 + $0xc8] ss:$20 sps:$4 sm:$0xff]   ;;  %v1455_v59 = vld [vmem:[%s1903_s0 + $0xd0] ss:$20 sps:$4 sm:$0xff]  }
  0x15   :  { %1285 = vmatpush3.bf16.msra.mxu1 %v1404_v19  ;;  %1222 = vmatprep.subr.bf16.mxu0 %v1405_v20  ;;  %v1456_v60 = vld [vmem:[%s1903_s0 + $0xf4] ss:$20 sps:$4 sm:$0xff]   ;;  %v1458_v61 = vld [vmem:[%s1903_s0 + $0xfc] ss:$20 sps:$4 sm:$0xff]   ;;  %v1461_v63 = vld [vmem:[%s1903_s0 + $0xf8] ss:$20 sps:$4 sm:$0xff]  }
  0x16   :  { %1286 = vmatprep.subr.bf16.mxu1 %v1406_v21  ;;  %v1460_v62 = vld [vmem:[%s1903_s0 + $0xf0] ss:$20 sps:$4 sm:$0xff]   ;;  %v1467_v2 = vld [vmem:[%s1903_s0 + $0x118] ss:$20 sps:$4 sm:$0xff]   ;;  %v1468_v3 = vld [vmem:[%s1903_s0 + $0x120] ss:$20 sps:$4 sm:$0xff]  }
  0x17   :  { %v1463_v0 = vld [vmem:[%s1903_s0 + $0x11c] ss:$20 sps:$4 sm:$0xff]   ;;  %v1465_v1 = vld [vmem:[%s1903_s0 + $0x124] ss:$20 sps:$4 sm:$0xff]   ;;  %v1473_v8 = vld [vmem:[%s1903_s0 + $0x60] ss:$20 sps:$4 sm:$0xff]  }
  0x18   :  { %1223 = vmatpush3.bf16.msra.mxu0 %v1407_v22  ;;  %v1469_v4 = vld [vmem:[%s1903_s0 + $0x10] ss:$20 sps:$4 sm:$0xff]   ;;  %v1471_v6 = vld [vmem:[%s1903_s0 + $0x38] ss:$20 sps:$4 sm:$0xff]   ;;  %v1474_v9 = vld [vmem:[%s1903_s0 + $0x100] ss:$20 sps:$4 sm:$0xff]  }
  0x19   :  { %1287 = vmatpush3.bf16.msra.mxu1 %v1408_v23  ;;  %1224 = vmatprep.subr.bf16.mxu0 %v1409_v24  ;;  %v1470_v5 = vld [vmem:[%s1903_s0 + $0xb0] ss:$20 sps:$4 sm:$0xff]   ;;  %v1472_v7 = vld [vmem:[%s1903_s0 + $0xd8] ss:$20 sps:$4 sm:$0xff]   ;;  %v1475_v10 = vld [vmem:[%s1903_s0 + $0x88] ss:$20 sps:$4 sm:$0xff]  }
  0x1a   :  { %1288 = vmatprep.subr.bf16.mxu1 %v1410_v25  ;;  %v1476_v11 = vld [vmem:[%s1903_s0 + $0x128] ss:$20 sps:$4 sm:$0xff]   ;;  %20 = vst.msk [vmem:[#allocation2] sm:$0xff] %vm19_vm0, %v1477_v12  ;;  %21 = vst.msk [vmem:[#allocation2 + $0x8] sm:$0xff] %vm19_vm0, %v1477_v12 }
  0x1b   :  { %23 = vst.msk [vmem:[#allocation2 + $0x18] sm:$0xff] %vm19_vm0, %v1477_v12  ;;  %24 = vst.msk [vmem:[#allocation2 + $0x20] sm:$0xff] %vm19_vm0, %v1477_v12 }
  0x1c   :  { %1225 = vmatpush3.bf16.msra.mxu0 %v1411_v26  ;;  %25 = vst.msk [vmem:[#allocation2 + $0x28] sm:$0xff] %vm19_vm0, %v1477_v12  ;;  %26 = vst.msk [vmem:[#allocation2 + $0x30] sm:$0xff] %vm19_vm0, %v1477_v12 }
  0x1d   :  { %1289 = vmatpush3.bf16.msra.mxu1 %v1412_v27  ;;  %1226 = vmatprep.subr.bf16.mxu0 %v1413_v28  ;;  %27 = vst.msk [vmem:[#allocation2 + $0x38] sm:$0xff] %vm19_vm0, %v1477_v12  ;;  %28 = vst.msk [vmem:[#allocation2 + $0x40] sm:$0xff] %vm19_vm0, %v1477_v12 }
  0x1e   :  { %1290 = vmatprep.subr.bf16.mxu1 %v1414_v29  ;;  %29 = vst.msk [vmem:[#allocation2 + $0x48] sm:$0xff] %vm19_vm0, %v1477_v12  ;;  %30 = vst.msk [vmem:[#allocation2 + $0x50] sm:$0xff] %vm19_vm0, %v1477_v12 }
  0x1f   :  { %31 = vst.msk [vmem:[#allocation2 + $0x58] sm:$0xff] %vm19_vm0, %v1477_v12  ;;  %32 = vst.msk [vmem:[#allocation2 + $0x60] sm:$0xff] %vm19_vm0, %v1477_v12 }
  0x20   :  { %1227 = vmatpush3.bf16.msra.mxu0 %v1415_v30  ;;  %33 = vst.msk [vmem:[#allocation2 + $0x68] sm:$0xff] %vm19_vm0, %v1477_v12  ;;  %34 = vst.msk [vmem:[#allocation2 + $0x70] sm:$0xff] %vm19_vm0, %v1477_v12 }
  0x21   :  { %1291 = vmatpush3.bf16.msra.mxu1 %v1416_v31  ;;  %1352 = vmatprep.subr.bf16.mxu0 %v1423_v36  ;;  %35 = vst.msk [vmem:[#allocation2 + $0x78] sm:$0xff] %vm19_vm0, %v1477_v12 }
  0x22   :  { %1376 = vmatprep.subr.bf16.mxu1 %v1423_v36 }
  0x23   :  { %646 = vmatmul.mubr.bf16.vlgmr.msra.gmra.mxu0 %v1417_v32 }
  0x24   :  { %743 = vmatmul.mubr.bf16.vlgmr.msra.gmra.mxu1 %v1420_v34  ;;  %1353 = vmatpush3.bf16.msra.mxu0 %v1423_v36 }
  0x25   :  { %1380 = vmatpush3.bf16.msra.mxu1 %v1423_v36  ;;  %653 = vmatprep.mubr.bf16.mxu0 %v1424_v37 }
  0x26   :  { %750 = vmatprep.mubr.bf16.mxu1 %v1426_v38  ;;  %1354 = vmatprep.subr.bf16.mxu0 %v1436_v42 }
  0x27   :  { %1377 = vmatprep.subr.bf16.mxu1 %v1436_v42 }
  0x28   :  { %1355 = vmatpush3.bf16.msra.mxu0 %v1436_v42 }
  0x29   :  { %1381 = vmatpush3.bf16.msra.mxu1 %v1436_v42  ;;  %1356 = vmatprep.subr.bf16.mxu0 %v1449_v46 }
  0x2a   :  { %1378 = vmatprep.subr.bf16.mxu1 %v1449_v46 }
  0x2b   :  { %654 = vmatmul.mubr.bf16.gmra.mxu0 %v1428_v39 }
  0x2c   :  { %751 = vmatmul.mubr.bf16.gmra.mxu1 %v1429_v40  ;;  %661 = vmatprep.mubr.bf16.mxu0 %v1430_v41 }
  0x2d   :  { %758 = vmatprep.mubr.bf16.mxu1 %v1432_v43  ;;  %1357 = vmatpush3.bf16.msra.mxu0 %v1449_v46 }
  0x2e   :  { %1382 = vmatpush3.bf16.msra.mxu1 %v1449_v46  ;;  %1358 = vmatprep.subr.bf16.mxu0 %v1462_v49 }
  0x2f   :  { %1379 = vmatprep.subr.bf16.mxu1 %v1462_v49 }
  0x31   :  { %1359 = vmatpush3.bf16.msra.mxu0 %v1462_v49 }
  0x32   :  { %1383 = vmatpush3.bf16.msra.mxu1 %v1462_v49 }
  0x33   :  { %662 = vmatmul.mubr.bf16.gmra.mxu0 %v1434_v44 }
  0x34   :  { %759 = vmatmul.mubr.bf16.gmra.mxu1 %v1435_v45  ;;  %669 = vmatprep.mubr.bf16.mxu0 %v1437_v47 }
  0x35   :  { %766 = vmatprep.mubr.bf16.mxu1 %v1439_v48 }
  0x3b   :  { %670 = vmatmul.mubr.bf16.gmra.mxu0 %v1441_v50 }
  0x3c   :  { %767 = vmatmul.mubr.bf16.gmra.mxu1 %v1442_v51  ;;  %677 = vmatprep.mubr.bf16.mxu0 %v1443_v52 }
  0x3d   :  { %774 = vmatprep.mubr.bf16.mxu1 %v1445_v53 }
  0x43   :  { %678 = vmatmul.mubr.bf16.gmra.mxu0 %v1447_v54 }
  0x44   :  { %775 = vmatmul.mubr.bf16.gmra.mxu1 %v1448_v55  ;;  %685 = vmatprep.mubr.bf16.mxu0 %v1450_v56 }
  0x45   :  { %782 = vmatprep.mubr.bf16.mxu1 %v1452_v57 }
  0x4b   :  { %686 = vmatmul.mubr.bf16.gmra.mxu0 %v1454_v58 }
  0x4c   :  { %783 = vmatmul.mubr.bf16.gmra.mxu1 %v1455_v59  ;;  %693 = vmatprep.mubr.bf16.mxu0 %v1456_v60 }
  0x4d   :  { %790 = vmatprep.mubr.bf16.mxu1 %v1458_v61 }
  0x53   :  { %694 = vmatmul.mubr.bf16.gmra.mxu0 %v1460_v62 }
  0x54   :  { %791 = vmatmul.mubr.bf16.gmra.mxu1 %v1461_v63  ;;  %701 = vmatprep.mubr.bf16.mxu0 %v1463_v0 }
  0x55   :  { %798 = vmatprep.mubr.bf16.mxu1 %v1465_v1 }
  0x5b   :  { %702 = vmatmul.mubr.bf16.gmra.mxu0 %v1467_v2 }
  0x5c   :  { %799 = vmatmul.mubr.bf16.gmra.mxu1 %v1468_v3  ;;  %1360 = vmatprep.mubr.msk.bf16.mxu0 %vm19_vm0, %v1469_v4 }
  0x5d   :  { %1368 = vmatprep.mubr.msk.bf16.mxu1 %vm19_vm0, %v1470_v5 }
  0x63   :  { %1361 = vmatmul.mubr.msk.bf16.vlgmr.msra.gmra.mxu0 %vm19_vm0, %v1471_v6 }
  0x64   :  { %1369 = vmatmul.mubr.msk.bf16.vlgmr.msra.gmra.mxu1 %vm19_vm0, %v1472_v7  ;;  %1364 = vmatprep.mubr.msk.bf16.mxu0 %vm19_vm0, %v1473_v8 }
  0x65   :  { %1372 = vmatprep.mubr.msk.bf16.mxu1 %vm19_vm0, %v1474_v9 }
  0x6b   :  { %1365 = vmatmul.mubr.msk.bf16.gmra.mxu0 %vm19_vm0, %v1475_v10 }
  0x6c   :  { %1373 = vmatmul.mubr.msk.bf16.gmra.mxu1 %vm19_vm0, %v1476_v11 }
  0xe3   :  { %v1228_v13 = vpop.f32.mrf.mxu0 }
  0xe4   :  { %v1292_v14 = vpop.f32.mrf.mxu1 }
  0xe5   :  { %v1229_v15 = vpop.f32.mrf.mxu0 }
  0xe6   :  { %v1293_v16 = vpop.f32.mrf.mxu1  ;;  %v1230_v7 = vadd.f32 %v1229_v15, %v1228_v13 }
  0xe7   :  { %v1231_v17 = vpop.f32.mrf.mxu0  ;;  %v1294_v8 = vadd.f32 %v1293_v16, %v1292_v14 }
  0xe8   :  { %v1295_v18 = vpop.f32.mrf.mxu1 }
  0xe9   :  { %v1232_v19 = vpop.f32.mrf.mxu0  ;;  %v745_v16 = vadd.f32 %v1294_v8, %v1230_v7 }
  0xea   :  { %v1296_v20 = vpop.f32.mrf.mxu1  ;;  %v1233_v10 = vadd.f32 %v1232_v19, %v1231_v17 }
  0xeb   :  { %v1234_v21 = vpop.f32.mrf.mxu0  ;;  %v1297_v11 = vadd.f32 %v1296_v20, %v1295_v18 }
  0xec   :  { %v1298_v22 = vpop.f32.mrf.mxu1 }
  0xed   :  { %v1235_v23 = vpop.f32.mrf.mxu0  ;;  %v748_v17 = vadd.f32 %v1297_v11, %v1233_v10 }
  0xee   :  { %v1299_v24 = vpop.f32.mrf.mxu1  ;;  %v1236_v12 = vadd.f32 %v1235_v23, %v1234_v21  ;;  %v38_v21 = vld [vmem:[#allocation2 + $0x10] sm:$0xff] }
  0xef   :  { %v1237_v25 = vpop.f32.mrf.mxu0 }
  0xf0   :  { %v1301_v26 = vpop.f32.mrf.mxu1 }
  0xf1   :  { %v1238_v27 = vpop.f32.mrf.mxu0 }
  0xf2   :  { %v1302_v28 = vpop.f32.mrf.mxu1 }
  0xf3   :  { %v1240_v29 = vpop.f32.mrf.mxu0 }
  0xf4   :  { %v1304_v30 = vpop.f32.mrf.mxu1 }
  0xf5   :  { %v1241_v31 = vpop.f32.mrf.mxu0 }
  0xf6   :  { %v1305_v32 = vpop.f32.mrf.mxu1 }
  0xf7   :  { %v1750_v33 = vpop.f32.mrf.mxu0 }
  0xf8   :  { %v1752_v34 = vpop.f32.mrf.mxu1 }
  0xf9   :  { %1906 = vst [vmem:[#allocation3_spill] sm:$0xff] %v1752_v34  ;;  %v1754_v35 = vpop.f32.mrf.mxu0 }
  0xfa   :  { %1907 = vst [vmem:[#allocation4_spill] sm:$0xff] %v1754_v35  ;;  %v1756_v36 = vpop.f32.mrf.mxu1 }
  0xfb   :  { %1908 = vst [vmem:[#allocation5_spill] sm:$0xff] %v1756_v36  ;;  %v1246_v37 = vpop.f32.mrf.mxu0  ;;  %v1300_v36 = vadd.f32 %v1299_v24, %v1298_v22 }
  0xfc   :  { %v1310_v38 = vpop.f32.mrf.mxu1 }
  0xfd   :  { %v1247_v39 = vpop.f32.mrf.mxu0  ;;  %v753_v15 = vadd.f32 %v1300_v36, %v1236_v12 }
  0xfe   :  { %v1311_v40 = vpop.f32.mrf.mxu1  ;;  %v1248_v13 = vadd.f32 %v1247_v39, %v1246_v37  ;;  %v36_v37 = vld [vmem:[#allocation2] sm:$0xff] }
  0xff   :  { %v1758_v41 = vpop.f32.mrf.mxu0  ;;  %v1312_v18 = vadd.f32 %v1311_v40, %v1310_v38 }
 0x100   :  { %1909 = vst [vmem:[#allocation6_spill] sm:$0xff] %v1758_v41  ;;  %v1760_v42 = vpop.f32.mrf.mxu1  ;;  %v1242_v41 = vadd.f32 %v1241_v31, %v1240_v29 }
 0x101   :  { %1910 = vst [vmem:[#allocation7_spill] sm:$0xff] %v1760_v42  ;;  %v1762_v43 = vpop.f32.mrf.mxu0  ;;  %v1919_v24 = vld [vmem:[#allocation4_spill] sm:$0xff] }
 0x102   :  { %1911 = vst [vmem:[#allocation8_spill] sm:$0xff] %v1762_v43  ;;  %v1764_v44 = vpop.f32.mrf.mxu1 }
 0x103   :  { %1912 = vst [vmem:[#allocation9_spill] sm:$0xff] %v1764_v44  ;;  %v1252_v45 = vpop.f32.mrf.mxu0 }
 0x104   :  { %v1316_v46 = vpop.f32.mrf.mxu1 }
 0x105   :  { %v1253_v47 = vpop.f32.mrf.mxu0 }
 0x106   :  { %v1317_v48 = vpop.f32.mrf.mxu1 }
 0x107   :  { %v1255_v49 = vpop.f32.mrf.mxu0 }
 0x108   :  { %v1319_v50 = vpop.f32.mrf.mxu1 }
 0x109   :  { %v1256_v51 = vpop.f32.mrf.mxu0 }
 0x10a   :  { %v1320_v52 = vpop.f32.mrf.mxu1  ;;  %v1257_v31 = vadd.f32 %v1256_v51, %v1255_v49 }
 0x10b   :  { %v1258_v53 = vpop.f32.mrf.mxu0 }
 0x10c   :  { %v1322_v54 = vpop.f32.mrf.mxu1 }
 0x10d   :  { %v1259_v55 = vpop.f32.mrf.mxu0 }
 0x10e   :  { %v1323_v56 = vpop.f32.mrf.mxu1  ;;  %v1260_v44 = vadd.f32 %v1259_v55, %v1258_v53  ;;  %v39_v53 = vld [vmem:[#allocation2 + $0x18] sm:$0xff] }
 0x10f   :  { %v1261_v57 = vpop.f32.mrf.mxu0  ;;  %v1324_v42 = vadd.f32 %v1323_v56, %v1322_v54  ;;  %v769_v56 = vadd.f32 %v1312_v18, %v1248_v13  ;;  %v42_v18 = vld [vmem:[#allocation2 + $0x30] sm:$0xff] }
 0x110   :  { %v1325_v58 = vpop.f32.mrf.mxu1 }
 0x111   :  { %v1262_v59 = vpop.f32.mrf.mxu0  ;;  %v785_v23 = vadd.f32 %v1324_v42, %v1260_v44  ;;  %v44_v44 = vld [vmem:[#allocation2 + $0x40] sm:$0xff] }
 0x112   :  { %v1326_v60 = vpop.f32.mrf.mxu1  ;;  %v1263_v19 = vadd.f32 %v1262_v59, %v1261_v57  ;;  %v1922_v59 = vld [vmem:[#allocation6_spill] sm:$0xff] }
 0x113   :  { %v1766_v61 = vpop.f32.mrf.mxu0  ;;  %v1327_v20 = vadd.f32 %v1326_v60, %v1325_v58  ;;  %v47_v58 = vld [vmem:[#allocation2 + $0x58] sm:$0xff]  ;;  %v1923_v60 = vld [vmem:[#allocation8_spill] sm:$0xff] }
 0x114   :  { %1913 = vst [vmem:[#allocation10_spill] sm:$0xff] %v1766_v61  ;;  %v1768_v62 = vpop.f32.mrf.mxu1  ;;  %v1318_v61 = vadd.f32 %v1317_v48, %v1316_v46 }
 0x115   :  { %1914 = vst [vmem:[#allocation11_spill] sm:$0xff] %v1768_v62  ;;  %v1265_v63 = vpop.f32.mrf.mxu0  ;;  %v788_v55 = vadd.f32 %v1327_v20, %v1263_v19  ;;  %v1926_v20 = vld [vmem:[#allocation3_spill] sm:$0xff] }
 0x116   :  { %v1329_v0 = vpop.f32.mrf.mxu1 }
 0x117   :  { %v1770_v1 = vpop.f32.mrf.mxu0 }
 0x118   :  { %1915 = vst [vmem:[#allocation12_spill] sm:$0xff] %v1770_v1  ;;  %v1772_v2 = vpop.f32.mrf.mxu1  ;;  %v1239_v1 = vadd.f32 %v1238_v27, %v1237_v25  ;;  %v1782_v25 = vadd.f32 %v1919_v24, %v1750_v33  ;;  %v46_v27 = vld [vmem:[#allocation2 + $0x50] sm:$0xff] }
 0x119   :  { %1916 = vst [vmem:[#allocation13_spill] sm:$0xff] %v1772_v2  ;;  %v1774_v3 = vpop.f32.mrf.mxu0  ;;  %v1303_v2 = vadd.f32 %v1302_v28, %v1301_v26 }
 0x11a   :  { %1917 = vst [vmem:[#allocation14_spill] sm:$0xff] %v1774_v3  ;;  %v1776_v4 = vpop.f32.mrf.mxu1  ;;  %v1306_v3 = vadd.f32 %v1305_v32, %v1304_v30  ;;  %v1321_v32 = vadd.f32 %v1320_v52, %v1319_v50 }
 0x11b   :  { %1918 = vst [vmem:[#allocation15_spill] sm:$0xff] %v1776_v4  ;;  %v1270_v5 = vpop.f32.mrf.mxu0  ;;  %v1254_v4 = vadd.f32 %v1253_v47, %v1252_v45  ;;  %v756_v29 = vadd.f32 %v1303_v2, %v1239_v1 }
 0x11c   :  { %v1334_v6 = vpop.f32.mrf.mxu1  ;;  %v1784_v30 = vadd.f32 %v1306_v3, %v1242_v41  ;;  %v1920_v41 = vld [vmem:[#allocation10_spill] sm:$0xff]  ;;  %v1921_v49 = vld [vmem:[#allocation11_spill] sm:$0xff]  ;;  %v37_v3 = vld [vmem:[#allocation2 + $0x8] sm:$0xff] }
 0x11d   :  { %v1271_v9 = vpop.f32.mrf.mxu0  ;;  %v777_v39 = vadd.f32 %v1318_v61, %v1254_v4  ;;  %v1266_v57 = vadd.f32 %v1265_v63, %v1920_v41  ;;  %v1330_v50 = vadd.f32 %v1329_v0, %v1921_v49  ;;  %v1251_v61 = vadd.f32 %v1923_v60, %v1922_v59  ;;  %v1925_v63 = vld [vmem:[#allocation9_spill] sm:$0xff]  ;;  %v41_v59 = vld [vmem:[#allocation2 + $0x28] sm:$0xff] }
 0x11e   :  { %v1335_v34 = vpop.f32.mrf.mxu1  ;;  %v1272_v40 = vadd.f32 %v1271_v9, %v1270_v5  ;;  %v780_v5 = vadd.f32 %v1321_v32, %v1257_v31  ;;  %v45_v9 = vld [vmem:[#allocation2 + $0x48] sm:$0xff]  ;;  %v1807_v31 = vld [vmem:[%s1904_s2] ss:$0 sm:$0xff] }
 0x11f   :  { %v1778_v43 = vpop.f32.mrf.mxu0  ;;  %v1336_v45 = vadd.f32 %v1335_v34, %v1334_v6  ;;  %v1924_v6 = vld [vmem:[#allocation7_spill] sm:$0xff] }
 0x120   :  { %v1337_v62 = vpop.f32.mrf.mxu1  ;;  %v1315_v7 = vadd.f32 %v1925_v63, %v1924_v6  ;;  %v49_v6 = vld [vmem:[#allocation2 + $0x68] sm:$0xff] }
 0x121   :  { %v1274_v35 = vpop.f32.mrf.mxu0  ;;  %v801_v11 = vadd.f32 %v1336_v45, %v1272_v40  ;;  %v48_v45 = vld [vmem:[#allocation2 + $0x60] sm:$0xff] }
 0x122   :  { %v1338_v14 = vpop.f32.mrf.mxu1  ;;  %v1275_v12 = vadd.f32 %v1274_v35, %v1778_v43  ;;  %v1930_v43 = vld [vmem:[#allocation13_spill] sm:$0xff] }
 0x123   :  { %v1362_v22 = vpop.f32.mrf.mxu0  ;;  %v1339_v13 = vadd.f32 %v1338_v14, %v1337_v62  ;;  %v1931_v62 = vld [vmem:[#allocation15_spill] sm:$0xff] }
 0x124   :  { %v850_v26 = vadd.f32 %v1362_v22, %v753_v15  ;;  %v1370_v28 = vpop.f32.mrf.mxu1  ;;  %v1333_v14 = vadd.f32 %v1931_v62, %v1930_v43 }
 0x125   :  { %v882_v36 = vadd.f32 %v1370_v28, %v785_v23  ;;  %v841_v38 = vpop.f32.mrf.mxu0  ;;  %v1928_v28 = vld [vmem:[#allocation12_spill] sm:$0xff] }
 0x126   :  { %v906_v46 = vadd.f32 %v850_v26, %v38_v21  ;;  %v842_v42 = vadd.f32 %v841_v38, %v745_v16  ;;  %v873_v47 = vpop.f32.mrf.mxu1  ;;  %v1927_v21 = vld [vmem:[#allocation5_spill] sm:$0xff] }
 0x127   :  { %v914_v33 = vadd.f32 %v882_v36, %v46_v27  ;;  %v874_v48 = vadd.f32 %v873_v47, %v777_v39  ;;  %v1363_v54 = vpop.f32.mrf.mxu0  ;;  %v1309_v22 = vadd.f32 %v1927_v21, %v1926_v20  ;;  %v793_v27 = vadd.f32 %v1330_v50, %v1266_v57 }
 0x128   :  { %922 = vst.msk [vmem:[#allocation2 + $0x10] sm:$0xff] %vm19_vm0, %v906_v46  ;;  %v904_v51 = vadd.f32 %v842_v42, %v36_v37  ;;  %v853_v52 = vadd.f32 %v1363_v54, %v756_v29  ;;  %v1371_v34 = vpop.f32.mrf.mxu1  ;;  %v1929_v29 = vld [vmem:[#allocation14_spill] sm:$0xff]  ;;  %v40_v37 = vld [vmem:[#allocation2 + $0x20] sm:$0xff]  ;;  %v772_v42 = vadd.f32 %v1315_v7, %v1251_v61  ;;  %v804_v54 = vadd.f32 %v1339_v13, %v1275_v12 }
 0x129   :  { %930 = vst.msk [vmem:[#allocation2 + $0x50] sm:$0xff] %vm19_vm0, %v914_v33  ;;  %v912_v1 = vadd.f32 %v874_v48, %v44_v44  ;;  %v885_v2 = vadd.f32 %v1371_v34, %v788_v55  ;;  %v844_v4 = vpop.f32.mrf.mxu0  ;;  %v1269_v35 = vadd.f32 %v1929_v29, %v1928_v28  ;;  %v43_v48 = vld [vmem:[#allocation2 + $0x38] sm:$0xff]  ;;  %v764_v50 = vadd.f32 %v1309_v22, %v1782_v25 }
 0x12a   :  { %920 = vst.msk [vmem:[#allocation2] sm:$0xff] %vm19_vm0, %v904_v51  ;;  %v907_v0 = vadd.f32 %v853_v52, %v39_v53  ;;  %v845_v8 = vadd.f32 %v844_v4, %v748_v17  ;;  %v876_v10 = vpop.f32.mrf.mxu1  ;;  %v50_v17 = vld [vmem:[#allocation2 + $0x70] sm:$0xff] }
 0x12b   :  { %928 = vst.msk [vmem:[#allocation2 + $0x40] sm:$0xff] %vm19_vm0, %v912_v1  ;;  %v915_v15 = vadd.f32 %v885_v2, %v47_v58  ;;  %v877_v16 = vadd.f32 %v876_v10, %v780_v5  ;;  %v1366_v19 = vpop.f32.mrf.mxu0  ;;  %v796_v61 = vadd.f32 %v1333_v14, %v1269_v35 }
 0x12c   :  { %923 = vst.msk [vmem:[#allocation2 + $0x18] sm:$0xff] %vm19_vm0, %v907_v0  ;;  %v905_v23 = vadd.f32 %v845_v8, %v37_v3  ;;  %v866_v24 = vadd.f32 %v1366_v19, %v769_v56  ;;  %v1374_v26 = vpop.f32.mrf.mxu1 }
 0x12d   :  { %931 = vst.msk [vmem:[#allocation2 + $0x58] sm:$0xff] %vm19_vm0, %v915_v15  ;;  %v913_v32 = vadd.f32 %v877_v16, %v45_v9  ;;  %v898_v36 = vadd.f32 %v1374_v26, %v801_v11  ;;  %v857_v38 = vpop.f32.mrf.mxu0 }
 0x12e   :  { %921 = vst.msk [vmem:[#allocation2 + $0x8] sm:$0xff] %vm19_vm0, %v905_v23  ;;  %v910_v39 = vadd.f32 %v866_v24, %v42_v18  ;;  %v858_v40 = vadd.f32 %v857_v38, %v1784_v30  ;;  %v889_v46 = vpop.f32.mrf.mxu1  ;;  %v51_v30 = vld [vmem:[#allocation2 + $0x78] sm:$0xff] }
 0x12f   :  { %v941_v44 = vld [vmem:[#allocation2 + $0x10] sm:$0xff]  ;;  %929 = vst.msk [vmem:[#allocation2 + $0x48] sm:$0xff] %vm19_vm0, %v913_v32  ;;  %v918_v47 = vadd.f32 %v898_v36, %v50_v17  ;;  %v890_v33 = vadd.f32 %v889_v46, %v793_v27  ;;  %v1367_v53 = vpop.f32.mrf.mxu0 }
 0x130   :  { %v964_v55 = vadd.f32 %v1807_v31, %v941_v44  ;;  %v949_v56 = vld [vmem:[#allocation2 + $0x50] sm:$0xff]  ;;  %926 = vst.msk [vmem:[#allocation2 + $0x30] sm:$0xff] %vm19_vm0, %v910_v39  ;;  %v908_v41 = vadd.f32 %v858_v40, %v40_v37  ;;  %v869_v57 = vadd.f32 %v1367_v53, %v772_v42  ;;  %v1375_v49 = vpop.f32.mrf.mxu1 }
 0x131   :  { %v972_v51 = vadd.f32 %v1807_v31, %v949_v56  ;;  %v939_v52 = vld [vmem:[#allocation2] sm:$0xff]  ;;  %934 = vst.msk [vmem:[#allocation2 + $0x70] sm:$0xff] %vm19_vm0, %v918_v47  ;;  %v916_v58 = vadd.f32 %v890_v33, %v48_v45  ;;  %v901_v34 = vadd.f32 %v1375_v49, %v804_v54  ;;  %v860_v60 = vpop.f32.mrf.mxu0 }
 0x132   :  { %v980_v1 = vmul.f32 0.2, %v964_v55  ;;  %v962_v2 = vadd.f32 %v1807_v31, %v939_v52  ;;  %v947_v3 = vld [vmem:[#allocation2 + $0x40] sm:$0xff]  ;;  %924 = vst.msk [vmem:[#allocation2 + $0x20] sm:$0xff] %vm19_vm0, %v908_v41  ;;  %v911_v4 = vadd.f32 %v869_v57, %v43_v48  ;;  %v861_v5 = vadd.f32 %v860_v60, %v764_v50  ;;  %v892_v25 = vpop.f32.mrf.mxu1 }
 0x133   :  { %v988_v63 = vmul.f32 0.2, %v972_v51  ;;  %v970_v7 = vadd.f32 %v1807_v31, %v947_v3  ;;  %v942_v0 = vld [vmem:[#allocation2 + $0x18] sm:$0xff]  ;;  %932 = vst.msk [vmem:[#allocation2 + $0x60] sm:$0xff] %vm19_vm0, %v916_v58  ;;  %v919_v8 = vadd.f32 %v901_v34, %v51_v30  ;;  %v893_v9 = vadd.f32 %v892_v25, %v796_v61 }
 0x134   :  { %v996_v10 = vmax.f32 %v964_v55, %v980_v1  ;;  %v978_v11 = vmul.f32 0.2, %v962_v2  ;;  %v965_v12 = vadd.f32 %v1807_v31, %v942_v0  ;;  %v950_v13 = vld [vmem:[#allocation2 + $0x58] sm:$0xff]  ;;  %927 = vst.msk [vmem:[#allocation2 + $0x38] sm:$0xff] %vm19_vm0, %v911_v4  ;;  %v909_v15 = vadd.f32 %v861_v5, %v41_v59 }
 0x135   :  { %v1004_v16 = vmax.f32 %v972_v51, %v988_v63  ;;  %v986_v18 = vmul.f32 0.2, %v970_v7  ;;  %v973_v19 = vadd.f32 %v1807_v31, %v950_v13  ;;  %v940_v20 = vld [vmem:[#allocation2 + $0x8] sm:$0xff]  ;;  %935 = vst.msk [vmem:[#allocation2 + $0x78] sm:$0xff] %vm19_vm0, %v919_v8  ;;  %v917_v21 = vadd.f32 %v893_v9, %v49_v6 }
 0x136   :  { %v1198_v22 = vpack.c.bf16 %v996_v10, %v996_v10  ;;  %v994_v23 = vmax.f32 %v962_v2, %v978_v11  ;;  %v981_v24 = vmul.f32 0.2, %v965_v12  ;;  %v963_v17 = vadd.f32 %v1807_v31, %v940_v20  ;;  %v948_v26 = vld [vmem:[#allocation2 + $0x48] sm:$0xff]  ;;  %925 = vst.msk [vmem:[#allocation2 + $0x28] sm:$0xff] %vm19_vm0, %v909_v15 }
 0x137   :  { %v1206_v27 = vpack.c.bf16 %v1004_v16, %v1004_v16  ;;  %v1002_v28 = vmax.f32 %v970_v7, %v986_v18  ;;  %v989_v29 = vmul.f32 0.2, %v973_v19  ;;  %v971_v35 = vadd.f32 %v1807_v31, %v948_v26  ;;  %v945_v43 = vld [vmem:[#allocation2 + $0x30] sm:$0xff]  ;;  %933 = vst.msk [vmem:[#allocation2 + $0x68] sm:$0xff] %vm19_vm0, %v917_v21 }
 0x138   :  { %1077 = vst.msk [vmem:[%s1905_s3 + $0x8] sm:$0xf] %vm1074_vm1, %v1198_v22  ;;  %v1196_v62 = vpack.c.bf16 %v994_v23, %v994_v23  ;;  %v997_v14 = vmax.f32 %v965_v12, %v981_v24  ;;  %v979_v32 = vmul.f32 0.2, %v963_v17  ;;  %v968_v36 = vadd.f32 %v1807_v31, %v945_v43  ;;  %v953_v37 = vld [vmem:[#allocation2 + $0x70] sm:$0xff] }
 0x139   :  { %1085 = vst.msk [vmem:[%s1905_s3 + $0x28] sm:$0xf] %vm1074_vm1, %v1206_v27  ;;  %v1204_v38 = vpack.c.bf16 %v1002_v28, %v1002_v28  ;;  %v1005_v39 = vmax.f32 %v973_v19, %v989_v29  ;;  %v987_v40 = vmul.f32 0.2, %v971_v35  ;;  %v976_v45 = vadd.f32 %v1807_v31, %v953_v37  ;;  %v943_v46 = vld [vmem:[#allocation2 + $0x20] sm:$0xff] }
 0x13a   :  { %1075 = vst.msk [vmem:[%s1905_s3] sm:$0xf] %vm1074_vm1, %v1196_v62  ;;  %v1199_v42 = vpack.c.bf16 %v997_v14, %v997_v14  ;;  %v995_v44 = vmax.f32 %v963_v17, %v979_v32  ;;  %v984_v47 = vmul.f32 0.2, %v968_v36  ;;  %v966_v33 = vadd.f32 %v1807_v31, %v943_v46  ;;  %v951_v48 = vld [vmem:[#allocation2 + $0x60] sm:$0xff] }
 0x13b   :  { %1083 = vst.msk [vmem:[%s1905_s3 + $0x20] sm:$0xf] %vm1074_vm1, %v1204_v38  ;;  %v1207_v53 = vpack.c.bf16 %v1005_v39, %v1005_v39  ;;  %v1003_v54 = vmax.f32 %v971_v35, %v987_v40  ;;  %v992_v55 = vmul.f32 0.2, %v976_v45  ;;  %v974_v56 = vadd.f32 %v1807_v31, %v951_v48  ;;  %v946_v41 = vld [vmem:[#allocation2 + $0x38] sm:$0xff] }
 0x13c   :  { %1078 = vst.msk [vmem:[%s1905_s3 + $0xc] sm:$0xf] %vm1074_vm1, %v1199_v42  ;;  %v1197_v57 = vpack.c.bf16 %v995_v44, %v995_v44  ;;  %v1000_v30 = vmax.f32 %v968_v36, %v984_v47  ;;  %v982_v49 = vmul.f32 0.2, %v966_v33  ;;  %v969_v50 = vadd.f32 %v1807_v31, %v946_v41  ;;  %v954_v51 = vld [vmem:[#allocation2 + $0x78] sm:$0xff] }
 0x13d   :  { %1086 = vst.msk [vmem:[%s1905_s3 + $0x2c] sm:$0xf] %vm1074_vm1, %v1207_v53  ;;  %v1205_v52 = vpack.c.bf16 %v1003_v54, %v1003_v54  ;;  %v1008_v58 = vmax.f32 %v976_v45, %v992_v55  ;;  %v990_v34 = vmul.f32 0.2, %v974_v56  ;;  %v977_v59 = vadd.f32 %v1807_v31, %v954_v51  ;;  %v944_v60 = vld [vmem:[#allocation2 + $0x28] sm:$0xff] }
 0x13e   :  { %1076 = vst.msk [vmem:[%s1905_s3 + $0x4] sm:$0xf] %vm1074_vm1, %v1197_v57  ;;  %v1202_v61 = vpack.c.bf16 %v1000_v30, %v1000_v30  ;;  %v998_v1 = vmax.f32 %v966_v33, %v982_v49  ;;  %v985_v2 = vmul.f32 0.2, %v969_v50  ;;  %v967_v3 = vadd.f32 %v1807_v31, %v944_v60  ;;  %v952_v4 = vld [vmem:[#allocation2 + $0x68] sm:$0xff] }
 0x13f   :  { %1084 = vst.msk [vmem:[%s1905_s3 + $0x24] sm:$0xf] %vm1074_vm1, %v1205_v52  ;;  %v1210_v5 = vpack.c.bf16 %v1008_v58, %v1008_v58  ;;  %v1006_v6 = vmax.f32 %v974_v56, %v990_v34  ;;  %v993_v25 = vmul.f32 0.2, %v977_v59  ;;  %v975_v63 = vadd.f32 %v1807_v31, %v952_v4 }
 0x140   :  { %1081 = vst.msk [vmem:[%s1905_s3 + $0x18] sm:$0xf] %vm1074_vm1, %v1202_v61  ;;  %v1200_v7 = vpack.c.bf16 %v998_v1, %v998_v1  ;;  %v1001_v0 = vmax.f32 %v969_v50, %v985_v2  ;;  %v983_v8 = vmul.f32 0.2, %v967_v3 }
 0x141   :  { %1089 = vst.msk [vmem:[%s1905_s3 + $0x38] sm:$0xf] %vm1074_vm1, %v1210_v5  ;;  %v1208_v9 = vpack.c.bf16 %v1006_v6, %v1006_v6  ;;  %v1009_v10 = vmax.f32 %v977_v59, %v993_v25  ;;  %v991_v11 = vmul.f32 0.2, %v975_v63 }
 0x142   :  { %1079 = vst.msk [vmem:[%s1905_s3 + $0x10] sm:$0xf] %vm1074_vm1, %v1200_v7  ;;  %v1203_v31 = vpack.c.bf16 %v1001_v0, %v1001_v0  ;;  %v999_v12 = vmax.f32 %v967_v3, %v983_v8 }
 0x143   :  { %1087 = vst.msk [vmem:[%s1905_s3 + $0x30] sm:$0xf] %vm1074_vm1, %v1208_v9  ;;  %v1211_v13 = vpack.c.bf16 %v1009_v10, %v1009_v10  ;;  %v1007_v15 = vmax.f32 %v975_v63, %v991_v11 }
 0x144   :  { %1082 = vst.msk [vmem:[%s1905_s3 + $0x1c] sm:$0xf] %vm1074_vm1, %v1203_v31  ;;  %v1201_v16 = vpack.c.bf16 %v999_v12, %v999_v12 }
 0x145   :  { %1090 = vst.msk [vmem:[%s1905_s3 + $0x3c] sm:$0xf] %vm1074_vm1, %v1211_v13  ;;  %v1209_v18 = vpack.c.bf16 %v1007_v15, %v1007_v15 }
 0x146   :  { %1080 = vst.msk [vmem:[%s1905_s3 + $0x14] sm:$0xf] %vm1074_vm1, %v1201_v16 }
 0x147   :  { %1088 = vst.msk [vmem:[%s1905_s3 + $0x34] sm:$0xf] %vm1074_vm1, %v1209_v18 }

// kernel: discriminator_forward.14
= control target key start
LH: loop header
LB: loop body
LE: loop exit
PB: predicated region body
PF: predicated region fallthrough
CT: control target
= control target key end

     0   :  { %s176_s2 = inlined_call_operand.<no memory space> [shape: f32[1,1], index: 2, kind: input, shape index: {}]   ;;  %s177_s0 = inlined_call_operand.vmem [shape: bf16[8,1024], index: 0, kind: input, shape index: {}]   ;;  %s178_s1 = inlined_call_operand.vmem [shape: bf16[8,1024], index: 1, kind: input, shape index: {}]   ;;  %s179_s3 = inlined_call_operand.vmem [shape: bf16[8,1024], index: 3, kind: output, shape index: {}]  }
   0x1   :  { %v8_v0 = vstv %s176_s2  ;;  %v18_v2 = vld [vmem:[%s177_s0] sm:$0xff]  ;;  %v19_v3 = vld [vmem:[%s177_s0 + $0x8] sm:$0xff]  ;;  %v20_v4 = vld [vmem:[%s177_s0 + $0x10] sm:$0xff] }
   0x2   :  { %9 = vst [vmem:[#allocation2] sm:$0x1] %v8_v0  ;;  %v21_v5 = vld [vmem:[%s177_s0 + $0x18] sm:$0xff]  ;;  %v30_v6 = vld [vmem:[%s178_s1] sm:$0xff]  ;;  %v31_v7 = vld [vmem:[%s178_s1 + $0x8] sm:$0xff]  ;;  %v22_v8 = vunpack.c.l.bf16 %v18_v2  ;;  %v23_v9 = vunpack.c.h.bf16 %v18_v2  ;;  %v24_v10 = vunpack.c.l.bf16 %v19_v3  ;;  %v25_v11 = vunpack.c.h.bf16 %v19_v3 }
   0x3   :  { %v32_v12 = vld [vmem:[%s178_s1 + $0x10] sm:$0xff]  ;;  %v33_v13 = vld [vmem:[%s178_s1 + $0x18] sm:$0xff]  ;;  %v26_v14 = vunpack.c.l.bf16 %v20_v4  ;;  %v27_v15 = vunpack.c.h.bf16 %v20_v4  ;;  %v28_v16 = vunpack.c.l.bf16 %v21_v5  ;;  %v29_v17 = vunpack.c.h.bf16 %v21_v5 }
   0x4   :  { %v34_v18 = vunpack.c.l.bf16 %v30_v6  ;;  %v35_v19 = vunpack.c.h.bf16 %v30_v6  ;;  %v36_v20 = vunpack.c.l.bf16 %v31_v7  ;;  %v37_v21 = vunpack.c.h.bf16 %v31_v7 }
   0x5   :  { %v38_v22 = vunpack.c.l.bf16 %v32_v12  ;;  %v39_v23 = vunpack.c.h.bf16 %v32_v12  ;;  %v40_v24 = vunpack.c.l.bf16 %v33_v13  ;;  %v41_v25 = vunpack.c.h.bf16 %v33_v13 }
   0x6   :  { %v42_v26 = vsub.f32 %v34_v18, %v22_v8  ;;  %v43_v27 = vsub.f32 %v35_v19, %v23_v9  ;;  %v44_v28 = vsub.f32 %v36_v20, %v24_v10  ;;  %v45_v29 = vsub.f32 %v37_v21, %v25_v11 }
   0x7   :  { %v46_v30 = vsub.f32 %v38_v22, %v26_v14  ;;  %v47_v31 = vsub.f32 %v39_v23, %v27_v15  ;;  %v48_v32 = vsub.f32 %v40_v24, %v28_v16  ;;  %v49_v33 = vsub.f32 %v41_v25, %v29_v17 }
   0x9   :  { %v16_v1 = vld [vmem:[#allocation2] sm:$0x1] }
   0xa   :  { %115 = vpush %v16_v1 }
  0x3b   :  { %s116_s0 = spop %115 }
  0x3c   :  { %v50_v34 = vstv %s116_s0 }
  0x3d   :  { %v51_v35 = vmul.f32 %v50_v34, %v42_v26  ;;  %v52_v36 = vmul.f32 %v50_v34, %v43_v27  ;;  %v53_v37 = vmul.f32 %v50_v34, %v44_v28  ;;  %v54_v38 = vmul.f32 %v50_v34, %v45_v29 }
  0x3e   :  { %v55_v39 = vmul.f32 %v50_v34, %v46_v30  ;;  %v56_v40 = vmul.f32 %v50_v34, %v47_v31  ;;  %v57_v41 = vmul.f32 %v50_v34, %v48_v32  ;;  %v58_v42 = vmul.f32 %v50_v34, %v49_v33 }
  0x3f   :  { %v59_v43 = vadd.f32 %v51_v35, %v22_v8  ;;  %v60_v44 = vadd.f32 %v52_v36, %v23_v9  ;;  %v61_v45 = vadd.f32 %v53_v37, %v24_v10  ;;  %v62_v46 = vadd.f32 %v54_v38, %v25_v11 }
  0x40   :  { %v63_v47 = vadd.f32 %v55_v39, %v26_v14  ;;  %v64_v48 = vadd.f32 %v56_v40, %v27_v15  ;;  %v65_v49 = vadd.f32 %v57_v41, %v28_v16  ;;  %v66_v50 = vadd.f32 %v58_v42, %v29_v17 }
  0x41   :  { %v111_v51 = vpack.c.bf16 %v60_v44, %v59_v43  ;;  %v112_v52 = vpack.c.bf16 %v62_v46, %v61_v45 }
  0x42   :  { %v113_v53 = vpack.c.bf16 %v64_v48, %v63_v47  ;;  %v114_v54 = vpack.c.bf16 %v66_v50, %v65_v49 }
  0x43   :  { %99 = vst [vmem:[%s179_s3] sm:$0xff] %v111_v51  ;;  %100 = vst [vmem:[%s179_s3 + $0x8] sm:$0xff] %v112_v52 }
  0x44   :  { %101 = vst [vmem:[%s179_s3 + $0x10] sm:$0xff] %v113_v53  ;;  %102 = vst [vmem:[%s179_s3 + $0x18] sm:$0xff] %v114_v54 }

// kernel: discriminator_forward.18
= control target key start
LH: loop header
LB: loop body
LE: loop exit
PB: predicated region body
PF: predicated region fallthrough
CT: control target
= control target key end

     0   :  { %s940_s12 = smov 0   ;;  %s942_s13 = smov 0   ;;  %s1027_s0 = inlined_call_operand.vmem [shape: bf16[2,1024], index: 0, kind: input, shape index: {}]   ;;  %s1028_s1 = inlined_call_operand.vmem [shape: bf16[1024,64], index: 1, kind: input, shape index: {}]   ;;  %s1029_s2 = inlined_call_operand.vmem [shape: f32[1,64], index: 2, kind: input, shape index: {}]   ;;  %s1030_s3 = inlined_call_operand.vmem [shape: bf16[2,64], index: 3, kind: output, shape index: {}]  }
   0x1   :  { %s944_s14 = smov 0  }
   0x2 LB: > { %s25_s15 = sadd.s32 1, %s912_s13  ;;  %p749_p0 = scmp.ge.s32.totalorder %s916_s14, 1  ;;  %s916_s14 = sphi %s944_s14, %s13_s14   ;;  %s912_s13 = sphi %s942_s13, %s1032_s13   ;;  %s908_s12 = sphi %s940_s12, %s1031_s12  }
   0x3   : > { %p26_p1 = scmp.ge.s32.totalorder %s25_s15, 2  ;;  %p188_p2 = scmp.lt.s32.totalorder %s916_s14, 3 }
   0x5   : > { %s1034_s15 = smov (%p26_p1, %s25_s15), 0  ;;  %p189_p3 = pnand %p749_p0, %p188_p2 }
   0x6   : > { %s750_s16 = sshll.u32 (!%p189_p3), %s908_s12, 2  ;;  %s751_s17 = sshll.u32 (!%p189_p3), %s908_s12, 6 }
   0x7   : > { %192 = sbr.rel (%p189_p3) target bundleno = 274 (0x112), region = 32  ;;  %p230_p4 = scmp.lt.s32.totalorder (!%p189_p3), %s750_s16, 7 }
   0x8   : > { %p237_p5 = scmp.lt.s32.totalorder (!%p189_p3), %s751_s17, 127  ;;  %p753_p6 = scmp.ne.s32.totalorder (!%p189_p3), %s908_s12, 0 }
   0xc   : > { %s1036_s16 = smov (!%p230_p4, %s750_s16), 7  ;;  %s1038_s17 = smov (!%p237_p5, %s751_s17), 127 }
   0xd   : > { %s234_s20 = scalar_lea.vmem %s1027_s0, %s1036_s16  ;;  %s752_s21 = sshll.u32 %s1038_s17, 2 }
   0xe   : > { %s971_s24 = scalar_lea.vmem %s1028_s1, %s752_s21  ;;  %258 = sbr.rel (%p753_p6) target bundleno = 21 (0x15), region = 36 }
  0x13   : > { %vm259_vm0 = vcmask 517120   ;;  %v918_v0 = vmov 0.0  }
  0x14   : > { %260 = vst.msk [vmem:[#allocation2] sm:$0x3] %vm259_vm0, %v918_v0 }
  0x15 PF: > { %v862_v1 = vld [vmem:[%s971_s24 + $0x78] sm:$0xff]   ;;  %v866_v5 = vld [vmem:[%s971_s24 + $0x70] sm:$0xff]   ;;  %v870_v9 = vld [vmem:[%s971_s24 + $0x68] sm:$0xff]   ;;  %v339_v31 = vlaneseq  ;;  %v919_v35 = vmov 1966171168   ;;  %vm629_vm1 = vcmask 517120  }
  0x16   : > { %v863_v2 = vld [vmem:[%s971_s24 + $0xf8] sm:$0xff]   ;;  %792 = vmatprep.subr.bf16.mxu0 %v862_v1  ;;  %v867_v6 = vld [vmem:[%s971_s24 + $0xf0] sm:$0xff]   ;;  %v871_v10 = vld [vmem:[%s971_s24 + $0xe8] sm:$0xff]   ;;  %v337_v36 = vunpack.c.l.s4 %v919_v35  ;;  %p787_p7 = scmp.ne.s32.totalorder %s908_s12, 1 }
  0x17   : > { %v864_v3 = vld [vmem:[%s971_s24 + $0x38] sm:$0xff]   ;;  %814 = vmatprep.subr.bf16.mxu1 %v863_v2  ;;  %v868_v7 = vld [vmem:[%s971_s24 + $0x30] sm:$0xff]   ;;  %v872_v11 = vld [vmem:[%s971_s24 + $0x28] sm:$0xff]   ;;  %v340_v37 = vshrl.u32 %v339_v31, 7 }
  0x18   : > { %v865_v4 = vld [vmem:[%s971_s24 + $0xb8] sm:$0xff]   ;;  %793 = vmatpush3.bf16.msra.mxu0 %v864_v3  ;;  %v869_v8 = vld [vmem:[%s971_s24 + $0xb0] sm:$0xff]   ;;  %v873_v12 = vld [vmem:[%s971_s24 + $0xa8] sm:$0xff]   ;;  %v338_v39 = vunpack.c.0.s8 %v337_v36 }
  0x19   : > { %815 = vmatpush3.bf16.msra.mxu1 %v865_v4  ;;  %794 = vmatprep.subr.bf16.mxu0 %v866_v5  ;;  %v874_v13 = vld [vmem:[%s971_s24 + $0x60] sm:$0xff]   ;;  %v878_v17 = vld [vmem:[%s971_s24 + $0x58] sm:$0xff]   ;;  %v882_v21 = vld [vmem:[%s971_s24 + $0x50] sm:$0xff]  }
  0x1a   : > { %816 = vmatprep.subr.bf16.mxu1 %v867_v6  ;;  %v875_v14 = vld [vmem:[%s971_s24 + $0xe0] sm:$0xff]   ;;  %v879_v18 = vld [vmem:[%s971_s24 + $0xd8] sm:$0xff]   ;;  %v883_v22 = vld [vmem:[%s971_s24 + $0xd0] sm:$0xff]   ;;  %v341_v40 = vsub.s32 %v338_v39, %v340_v37 }
  0x1b   : > { %v876_v15 = vld [vmem:[%s971_s24 + $0x20] sm:$0xff]   ;;  %v880_v19 = vld [vmem:[%s971_s24 + $0x18] sm:$0xff]   ;;  %v884_v23 = vld [vmem:[%s971_s24 + $0x10] sm:$0xff]  }
  0x1c   : > { %795 = vmatpush3.bf16.msra.mxu0 %v868_v7  ;;  %v877_v16 = vld [vmem:[%s971_s24 + $0xa0] sm:$0xff]   ;;  %v881_v20 = vld [vmem:[%s971_s24 + $0x98] sm:$0xff]   ;;  %v885_v24 = vld [vmem:[%s971_s24 + $0x90] sm:$0xff]  }
  0x1d   : > { %817 = vmatpush3.bf16.msra.mxu1 %v869_v8  ;;  %796 = vmatprep.subr.bf16.mxu0 %v870_v9  ;;  %v886_v25 = vld [vmem:[%s971_s24 + $0x48] sm:$0xff]   ;;  %v890_v29 = vld [vmem:[%s971_s24 + $0x40] sm:$0xff]  }
  0x1e   : > { %818 = vmatprep.subr.bf16.mxu1 %v871_v10  ;;  %v887_v26 = vld [vmem:[%s971_s24 + $0xc8] sm:$0xff]   ;;  %v891_v30 = vld [vmem:[%s971_s24 + $0xc0] sm:$0xff]  }
  0x1f   : > { %v888_v27 = vld [vmem:[%s971_s24 + $0x8] sm:$0xff]   ;;  %v892_v32 = vld [vmem:[%s971_s24] sm:$0xff]  }
  0x20   : > { %797 = vmatpush3.bf16.msra.mxu0 %v872_v11  ;;  %v889_v28 = vld [vmem:[%s971_s24 + $0x88] sm:$0xff]   ;;  %v893_v33 = vld [vmem:[%s971_s24 + $0x80] sm:$0xff]  }
  0x21   : > { %819 = vmatpush3.bf16.msra.mxu1 %v873_v12  ;;  %798 = vmatprep.subr.bf16.mxu0 %v874_v13  ;;  %v754_v34 = vld.sshfl [vmem:[%s234_s20] sm:$0x33 pattern:$0x75316420] }
  0x22   : > { %820 = vmatprep.subr.bf16.mxu1 %v875_v14  ;;  %v335_v38 = vcombine.high %v754_v34, %v754_v34  ;;  %v342_v42 = vrot.slane %v754_v34, %v341_v40  ;;  %v261_v52 = vld [vmem:[#allocation2] sm:$0x3] }
  0x24   : > { %799 = vmatpush3.bf16.msra.mxu0 %v876_v15  ;;  %v349_v41 = vrot.slane %v335_v38, %v341_v40  ;;  %v350_v44 = vcombine.high %v342_v42, %v342_v42 }
  0x25   : > { %821 = vmatpush3.bf16.msra.mxu1 %v877_v16  ;;  %800 = vmatprep.subr.bf16.mxu0 %v878_v17 }
  0x26   : > { %822 = vmatprep.subr.bf16.mxu1 %v879_v18  ;;  %580 = vmatprep.mubr.bf16.mxu0 %v349_v41  ;;  %v351_v43 = vcombine.high %v349_v41, %v349_v41 }
  0x28   : > { %801 = vmatpush3.bf16.msra.mxu0 %v880_v19  ;;  %620 = vmatprep.mubr.bf16.mxu1 %v351_v43 }
  0x29   : > { %823 = vmatpush3.bf16.msra.mxu1 %v881_v20  ;;  %802 = vmatprep.subr.bf16.mxu0 %v882_v21 }
  0x2a   : > { %824 = vmatprep.subr.bf16.mxu1 %v883_v22 }
  0x2c   : > { %803 = vmatpush3.bf16.msra.mxu0 %v884_v23 }
  0x2d   : > { %825 = vmatpush3.bf16.msra.mxu1 %v885_v24  ;;  %804 = vmatprep.subr.bf16.mxu0 %v886_v25 }
  0x2e   : > { %826 = vmatprep.subr.bf16.mxu1 %v887_v26 }
  0x30   : > { %805 = vmatpush3.bf16.msra.mxu0 %v888_v27 }
  0x31   : > { %827 = vmatpush3.bf16.msra.mxu1 %v889_v28  ;;  %806 = vmatprep.subr.bf16.mxu0 %v890_v29 }
  0x32   : > { %828 = vmatprep.subr.bf16.mxu1 %v891_v30 }
  0x34   : > { %807 = vmatpush3.bf16.msra.mxu0 %v892_v32 }
  0x35   : > { %829 = vmatpush3.bf16.msra.mxu1 %v893_v33 }
  0x37   : > { %581 = vmatmul.mubr.bf16.vlgmr.msra.gmra.mxu0 %v342_v42 }
  0x38   : > { %621 = vmatmul.mubr.bf16.vlgmr.msra.gmra.mxu1 %v350_v44 }
  0xf7   : > { %v808_v45 = vpop.f32.mrf.mxu0 }
  0xf8   : > { %v830_v46 = vpop.f32.mrf.mxu1 }
  0xf9   : > { %v809_v47 = vpop.f32.mrf.mxu0 }
  0xfa   : > { %v810_v48 = vadd.f32 %v809_v47, %v808_v45  ;;  %v831_v49 = vpop.f32.mrf.mxu1 }
  0xfb   : > { %v811_v50 = vpop.f32.mrf.mxu0  ;;  %v832_v51 = vadd.f32 %v831_v49, %v830_v46 }
  0xfc   : > { %v833_v53 = vpop.f32.mrf.mxu1 }
  0xfd   : > { %v812_v54 = vpop.f32.mrf.mxu0  ;;  %v623_v55 = vadd.f32 %v832_v51, %v810_v48  ;;  %634 = sbr.rel (%p787_p7) target bundleno = 274 (0x112), region = 40 }
  0xfe   : > { %v834_v56 = vpop.f32.mrf.mxu1 }
  0xff   : > { %v628_v57 = vadd.f32 %v623_v55, %v261_v52 }
 0x101   : > { %630 = vst.msk [vmem:[#allocation2] sm:$0x3] %vm629_vm1, %v628_v57 }
 0x102   : > { %v788_v59 = vld [vmem:[%s1029_s2] ss:$0 sm:$0xff]  ;;  %vm647_vm2 = vcmask 516096  }
 0x108   : > { %v635_v58 = vld [vmem:[#allocation2] sm:$0x3] }
 0x109   : > { %v643_v60 = vadd.f32 %v788_v59, %v635_v58 }
 0x10b   : > { %v644_v61 = vmul.f32 0.2, %v643_v60 }
 0x10d   : > { %v645_v62 = vmax.f32 %v643_v60, %v644_v61 }
 0x10f   : > { %v646_v63 = vpack.c.bf16 %v645_v62, %v645_v62 }
 0x111   : > { %648 = vst.msk [vmem:[%s1030_s3] sm:$0x1] %vm647_vm2, %v646_v63 }
 0x112 PF: > { %s13_s14 = sadd.s32 1, %s916_s14   ;;  %s1031_s12 = smov %s912_s13 }
 0x113   : > { %p10_p8 = scmp.ge.s32.totalorder %s13_s14, 4   ;;  %s1032_s13 = smov %s1034_s15 }
 0x115   :  { %12 = sbr.rel (!%p10_p8) target bundleno = 2 (0x2), region = 76 }

// kernel: discriminator_forward.15
= control target key start
LH: loop header
LB: loop body
LE: loop exit
PB: predicated region body
PF: predicated region fallthrough
CT: control target
= control target key end

     0   :  { %vm19_vm0 = vcmask 523264   ;;  %v773_v46 = vmov 0.0   ;;  %vm582_vm1 = vcmask 519168   ;;  %s957_s1 = inlined_call_operand.vmem [shape: bf16[576,64], index: 1, kind: input, shape index: {}]   ;;  %s958_s0 = inlined_call_operand.vmem [shape: bf16[32,576], index: 0, kind: input, shape index: {}]   ;;  %s959_s2 = inlined_call_operand.vmem [shape: f32[1,64], index: 2, kind: input, shape index: {}]   ;;  %s960_s3 = inlined_call_operand.vmem [shape: bf16[32,64], index: 3, kind: output, shape index: {}]  }
   0x1   :  { %v723_v0 = vld [vmem:[%s957_s1 + $0x78] sm:$0xff]   ;;  %v727_v4 = vld [vmem:[%s957_s1 + $0x70] sm:$0xff]   ;;  %v731_v8 = vld [vmem:[%s957_s1 + $0x68] sm:$0xff]   ;;  %22 = vst.msk [vmem:[#allocation2 + $0x10] sm:$0xff] %vm19_vm0, %v773_v46 }
   0x2   :  { %v724_v1 = vld [vmem:[%s957_s1 + $0xf8] sm:$0xff]   ;;  %648 = vmatprep.subr.bf16.mxu0 %v723_v0  ;;  %v728_v5 = vld [vmem:[%s957_s1 + $0xf0] sm:$0xff]   ;;  %v732_v9 = vld [vmem:[%s957_s1 + $0xe8] sm:$0xff]   ;;  %20 = vst.msk [vmem:[#allocation2] sm:$0xff] %vm19_vm0, %v773_v46 }
   0x3   :  { %v725_v2 = vld [vmem:[%s957_s1 + $0x38] sm:$0xff]   ;;  %676 = vmatprep.subr.bf16.mxu1 %v724_v1  ;;  %v729_v6 = vld [vmem:[%s957_s1 + $0x30] sm:$0xff]   ;;  %v733_v10 = vld [vmem:[%s957_s1 + $0x28] sm:$0xff]   ;;  %21 = vst.msk [vmem:[#allocation2 + $0x8] sm:$0xff] %vm19_vm0, %v773_v46 }
   0x4   :  { %v726_v3 = vld [vmem:[%s957_s1 + $0xb8] sm:$0xff]   ;;  %649 = vmatpush3.bf16.msra.mxu0 %v725_v2  ;;  %v730_v7 = vld [vmem:[%s957_s1 + $0xb0] sm:$0xff]   ;;  %v734_v11 = vld [vmem:[%s957_s1 + $0xa8] sm:$0xff]   ;;  %23 = vst.msk [vmem:[#allocation2 + $0x18] sm:$0xff] %vm19_vm0, %v773_v46 }
   0x5   :  { %677 = vmatpush3.bf16.msra.mxu1 %v726_v3  ;;  %650 = vmatprep.subr.bf16.mxu0 %v727_v4  ;;  %v735_v12 = vld [vmem:[%s957_s1 + $0x60] sm:$0xff]   ;;  %v739_v16 = vld [vmem:[%s957_s1 + $0x58] sm:$0xff]   ;;  %v743_v20 = vld [vmem:[%s957_s1 + $0x50] sm:$0xff]  }
   0x6   :  { %678 = vmatprep.subr.bf16.mxu1 %v728_v5  ;;  %v736_v13 = vld [vmem:[%s957_s1 + $0xe0] sm:$0xff]   ;;  %v740_v17 = vld [vmem:[%s957_s1 + $0xd8] sm:$0xff]   ;;  %v744_v21 = vld [vmem:[%s957_s1 + $0xd0] sm:$0xff]  }
   0x7   :  { %v737_v14 = vld [vmem:[%s957_s1 + $0x20] sm:$0xff]   ;;  %v741_v18 = vld [vmem:[%s957_s1 + $0x18] sm:$0xff]   ;;  %v745_v22 = vld [vmem:[%s957_s1 + $0x10] sm:$0xff]  }
   0x8   :  { %651 = vmatpush3.bf16.msra.mxu0 %v729_v6  ;;  %v738_v15 = vld [vmem:[%s957_s1 + $0xa0] sm:$0xff]   ;;  %v742_v19 = vld [vmem:[%s957_s1 + $0x98] sm:$0xff]   ;;  %v746_v23 = vld [vmem:[%s957_s1 + $0x90] sm:$0xff]  }
   0x9   :  { %679 = vmatpush3.bf16.msra.mxu1 %v730_v7  ;;  %652 = vmatprep.subr.bf16.mxu0 %v731_v8  ;;  %v747_v24 = vld [vmem:[%s957_s1 + $0x48] sm:$0xff]   ;;  %v751_v28 = vld [vmem:[%s957_s1 + $0x40] sm:$0xff]   ;;  %v761_v36 = vld [vmem:[%s957_s1 + $0x118] sm:$0xff]  }
   0xa   :  { %680 = vmatprep.subr.bf16.mxu1 %v732_v9  ;;  %v748_v25 = vld [vmem:[%s957_s1 + $0xc8] sm:$0xff]   ;;  %v752_v29 = vld [vmem:[%s957_s1 + $0xc0] sm:$0xff]   ;;  %v762_v37 = vld [vmem:[%s957_s1 + $0x110] sm:$0xff]  }
   0xb   :  { %v749_v26 = vld [vmem:[%s957_s1 + $0x8] sm:$0xff]   ;;  %v753_v30 = vld [vmem:[%s957_s1] sm:$0xff]   ;;  %v26_v6 = vld [vmem:[#allocation2 + $0x10] sm:$0xff] }
   0xc   :  { %653 = vmatpush3.bf16.msra.mxu0 %v733_v10  ;;  %v750_v27 = vld [vmem:[%s957_s1 + $0x88] sm:$0xff]   ;;  %v754_v31 = vld [vmem:[%s957_s1 + $0x80] sm:$0xff]  }
   0xd   :  { %681 = vmatpush3.bf16.msra.mxu1 %v734_v11  ;;  %654 = vmatprep.subr.bf16.mxu0 %v735_v12  ;;  %v755_v32 = vld [vmem:[%s958_s0] ss:$20 sps:$4 sm:$0xff]   ;;  %v757_v33 = vld [vmem:[%s958_s0 + $0x4] ss:$20 sps:$4 sm:$0xff]   ;;  %v758_v34 = vld [vmem:[%s958_s0 + $0x8] ss:$20 sps:$4 sm:$0xff]  }
   0xe   :  { %682 = vmatprep.subr.bf16.mxu1 %v736_v13  ;;  %v760_v35 = vld [vmem:[%s958_s0 + $0xc] ss:$20 sps:$4 sm:$0xff]   ;;  %417 = vmatprep.mubr.bf16.mxu0 %v757_v33  ;;  %v765_v39 = vld [vmem:[%s958_s0 + $0x34] ss:$20 sps:$4 sm:$0xff]   ;;  %v768_v42 = vld [vmem:[%s958_s0 + $0x30] ss:$20 sps:$4 sm:$0xff]  }
   0xf   :  { %466 = vmatprep.mubr.bf16.mxu1 %v760_v35  ;;  %v763_v38 = vld [vmem:[%s958_s0 + $0x2c] ss:$20 sps:$4 sm:$0xff]   ;;  %v767_v40 = vld [vmem:[%s958_s0 + $0x28] ss:$20 sps:$4 sm:$0xff]   ;;  %v771_v43 = vld [vmem:[%s958_s0 + $0x10] ss:$20 sps:$4 sm:$0xff]  }
  0x10   :  { %655 = vmatpush3.bf16.msra.mxu0 %v737_v14  ;;  %v769_v41 = vld [vmem:[%s957_s1 + $0x108] sm:$0xff]   ;;  %v770_v44 = vld [vmem:[%s957_s1 + $0x100] sm:$0xff]  }
  0x11   :  { %683 = vmatpush3.bf16.msra.mxu1 %v738_v15  ;;  %656 = vmatprep.subr.bf16.mxu0 %v739_v16  ;;  %v772_v45 = vld [vmem:[%s958_s0 + $0x38] ss:$20 sps:$4 sm:$0xff]   ;;  %v24_v12 = vld [vmem:[#allocation2] sm:$0xff] }
  0x12   :  { %684 = vmatprep.subr.bf16.mxu1 %v740_v17  ;;  %v27_v17 = vld [vmem:[#allocation2 + $0x18] sm:$0xff] }
  0x14   :  { %657 = vmatpush3.bf16.msra.mxu0 %v741_v18 }
  0x15   :  { %685 = vmatpush3.bf16.msra.mxu1 %v742_v19  ;;  %658 = vmatprep.subr.bf16.mxu0 %v743_v20 }
  0x16   :  { %686 = vmatprep.subr.bf16.mxu1 %v744_v21 }
  0x18   :  { %659 = vmatpush3.bf16.msra.mxu0 %v745_v22  ;;  %v25_v22 = vld [vmem:[#allocation2 + $0x8] sm:$0xff] }
  0x19   :  { %687 = vmatpush3.bf16.msra.mxu1 %v746_v23  ;;  %660 = vmatprep.subr.bf16.mxu0 %v747_v24 }
  0x1a   :  { %688 = vmatprep.subr.bf16.mxu1 %v748_v25 }
  0x1c   :  { %661 = vmatpush3.bf16.msra.mxu0 %v749_v26 }
  0x1d   :  { %689 = vmatpush3.bf16.msra.mxu1 %v750_v27  ;;  %662 = vmatprep.subr.bf16.mxu0 %v751_v28  ;;  %v639_v27 = vld [vmem:[%s959_s2] ss:$0 sm:$0xff] }
  0x1e   :  { %690 = vmatprep.subr.bf16.mxu1 %v752_v29 }
  0x20   :  { %663 = vmatpush3.bf16.msra.mxu0 %v753_v30 }
  0x21   :  { %691 = vmatpush3.bf16.msra.mxu1 %v754_v31  ;;  %710 = vmatprep.subr.bf16.mxu0 %v761_v36 }
  0x23   :  { %418 = vmatmul.mubr.bf16.vlgmr.msra.gmra.mxu0 %v755_v32 }
  0x24   :  { %467 = vmatmul.mubr.bf16.vlgmr.msra.gmra.mxu1 %v758_v34  ;;  %711 = vmatpush3.bf16.msra.mxu0 %v761_v36 }
  0x25   :  { %712 = vmatprep.subr.bf16.mxu0 %v762_v37  ;;  %425 = vmatprep.mubr.bf16.mxu0 %v763_v38 }
  0x26   :  { %474 = vmatprep.mubr.bf16.mxu1 %v765_v39 }
  0x28   :  { %713 = vmatpush3.bf16.msra.mxu0 %v762_v37 }
  0x29   :  { %714 = vmatprep.subr.bf16.mxu0 %v769_v41 }
  0x2b   :  { %426 = vmatmul.mubr.bf16.gmra.mxu0 %v767_v40 }
  0x2c   :  { %475 = vmatmul.mubr.bf16.gmra.mxu1 %v768_v42  ;;  %718 = vmatprep.mubr.msk.bf16.mxu0 %vm19_vm0, %v771_v43 }
  0x2d   :  { %715 = vmatpush3.bf16.msra.mxu0 %v769_v41 }
  0x2e   :  { %716 = vmatprep.subr.bf16.mxu0 %v770_v44 }
  0x31   :  { %717 = vmatpush3.bf16.msra.mxu0 %v770_v44 }
  0x34   :  { %719 = vmatmul.mubr.msk.bf16.vlgmr.msra.gmra.mxu0 %vm19_vm0, %v772_v45 }
  0xe3   :  { %v664_v47 = vpop.f32.mrf.mxu0 }
  0xe4   :  { %v692_v48 = vpop.f32.mrf.mxu1 }
  0xe5   :  { %v665_v49 = vpop.f32.mrf.mxu0 }
  0xe6   :  { %v693_v50 = vpop.f32.mrf.mxu1  ;;  %v666_v63 = vadd.f32 %v665_v49, %v664_v47 }
  0xe7   :  { %v667_v51 = vpop.f32.mrf.mxu0  ;;  %v694_v0 = vadd.f32 %v693_v50, %v692_v48 }
  0xe8   :  { %v695_v52 = vpop.f32.mrf.mxu1 }
  0xe9   :  { %v668_v53 = vpop.f32.mrf.mxu0  ;;  %v469_v11 = vadd.f32 %v694_v0, %v666_v63 }
  0xea   :  { %v696_v54 = vpop.f32.mrf.mxu1  ;;  %v669_v8 = vadd.f32 %v668_v53, %v667_v51 }
  0xeb   :  { %v670_v55 = vpop.f32.mrf.mxu0  ;;  %v697_v9 = vadd.f32 %v696_v54, %v695_v52 }
  0xec   :  { %v698_v56 = vpop.f32.mrf.mxu1 }
  0xed   :  { %v671_v57 = vpop.f32.mrf.mxu0  ;;  %v472_v21 = vadd.f32 %v697_v9, %v669_v8 }
  0xee   :  { %v699_v58 = vpop.f32.mrf.mxu1  ;;  %v672_v59 = vadd.f32 %v671_v57, %v670_v55 }
  0xef   :  { %v700_v60 = vadd.f32 %v699_v58, %v698_v56  ;;  %v673_v61 = vpop.f32.mrf.mxu0 }
  0xf0   :  { %v701_v62 = vpop.f32.mrf.mxu1 }
  0xf1   :  { %v674_v1 = vpop.f32.mrf.mxu0  ;;  %v477_v5 = vadd.f32 %v700_v60, %v672_v59 }
  0xf2   :  { %v702_v2 = vpop.f32.mrf.mxu1  ;;  %v675_v3 = vadd.f32 %v674_v1, %v673_v61 }
  0xf3   :  { %v703_v4 = vadd.f32 %v702_v2, %v701_v62 }
  0xf4   :  { %v720_v7 = vpop.f32.mrf.mxu0 }
  0xf5   :  { %v526_v10 = vadd.f32 %v720_v7, %v477_v5  ;;  %v480_v16 = vadd.f32 %v703_v4, %v675_v3 }
  0xf6   :  { %v517_v13 = vpop.f32.mrf.mxu0 }
  0xf7   :  { %v534_v14 = vadd.f32 %v526_v10, %v26_v6  ;;  %v518_v15 = vadd.f32 %v517_v13, %v469_v11 }
  0xf8   :  { %v721_v18 = vpop.f32.mrf.mxu0 }
  0xf9   :  { %538 = vst.msk [vmem:[#allocation2 + $0x10] sm:$0xff] %vm19_vm0, %v534_v14  ;;  %v532_v19 = vadd.f32 %v518_v15, %v24_v12  ;;  %v529_v20 = vadd.f32 %v721_v18, %v480_v16 }
  0xfa   :  { %v520_v23 = vpop.f32.mrf.mxu0 }
  0xfb   :  { %536 = vst.msk [vmem:[#allocation2] sm:$0xff] %vm19_vm0, %v532_v19  ;;  %v535_v24 = vadd.f32 %v529_v20, %v27_v17  ;;  %v521_v25 = vadd.f32 %v520_v23, %v472_v21 }
  0xfd   :  { %539 = vst.msk [vmem:[#allocation2 + $0x18] sm:$0xff] %vm19_vm0, %v535_v24  ;;  %v533_v26 = vadd.f32 %v521_v25, %v25_v22 }
  0xff   :  { %537 = vst.msk [vmem:[#allocation2 + $0x8] sm:$0xff] %vm19_vm0, %v533_v26 }
 0x100   :  { %v545_v28 = vld [vmem:[#allocation2 + $0x10] sm:$0xff] }
 0x101   :  { %v556_v29 = vadd.f32 %v639_v27, %v545_v28 }
 0x102   :  { %v543_v30 = vld [vmem:[#allocation2] sm:$0xff] }
 0x103   :  { %v560_v31 = vmul.f32 0.2, %v556_v29  ;;  %v554_v32 = vadd.f32 %v639_v27, %v543_v30 }
 0x104   :  { %v546_v33 = vld [vmem:[#allocation2 + $0x18] sm:$0xff] }
 0x105   :  { %v564_v34 = vmax.f32 %v556_v29, %v560_v31  ;;  %v558_v35 = vmul.f32 0.2, %v554_v32  ;;  %v557_v36 = vadd.f32 %v639_v27, %v546_v33 }
 0x106   :  { %v544_v37 = vld [vmem:[#allocation2 + $0x8] sm:$0xff] }
 0x107   :  { %v646_v38 = vpack.c.bf16 %v564_v34, %v564_v34  ;;  %v562_v39 = vmax.f32 %v554_v32, %v558_v35  ;;  %v561_v40 = vmul.f32 0.2, %v557_v36  ;;  %v555_v41 = vadd.f32 %v639_v27, %v544_v37 }
 0x109   :  { %585 = vst.msk [vmem:[%s960_s3 + $0x8] sm:$0xf] %vm582_vm1, %v646_v38  ;;  %v644_v42 = vpack.c.bf16 %v562_v39, %v562_v39  ;;  %v565_v43 = vmax.f32 %v557_v36, %v561_v40  ;;  %v559_v44 = vmul.f32 0.2, %v555_v41 }
 0x10b   :  { %583 = vst.msk [vmem:[%s960_s3] sm:$0xf] %vm582_vm1, %v644_v42  ;;  %v647_v45 = vpack.c.bf16 %v565_v43, %v565_v43  ;;  %v563_v46 = vmax.f32 %v555_v41, %v559_v44 }
 0x10d   :  { %586 = vst.msk [vmem:[%s960_s3 + $0xc] sm:$0xf] %vm582_vm1, %v647_v45  ;;  %v645_v47 = vpack.c.bf16 %v563_v46, %v563_v46 }
 0x10f   :  { %584 = vst.msk [vmem:[%s960_s3 + $0x4] sm:$0xf] %vm582_vm1, %v645_v47 }

// kernel: discriminator_forward.17
= control target key start
LH: loop header
LB: loop body
LE: loop exit
PB: predicated region body
PF: predicated region fallthrough
CT: control target
= control target key end

     0   :  { %vm19_vm0 = vcmask 523264   ;;  %v765_v46 = vmov 0.0   ;;  %vm574_vm1 = vcmask 519168   ;;  %s949_s1 = inlined_call_operand.vmem [shape: bf16[576,64], index: 1, kind: input, shape index: {}]   ;;  %s950_s0 = inlined_call_operand.vmem [shape: bf16[32,576], index: 0, kind: input, shape index: {}]   ;;  %s951_s2 = inlined_call_operand.vmem [shape: f32[1,64], index: 2, kind: input, shape index: {}]   ;;  %s952_s3 = inlined_call_operand.vmem [shape: bf16[32,64], index: 3, kind: output, shape index: {}]  }
   0x1   :  { %v715_v0 = vld [vmem:[%s949_s1 + $0x78] sm:$0xff]   ;;  %v719_v4 = vld [vmem:[%s949_s1 + $0x70] sm:$0xff]   ;;  %v723_v8 = vld [vmem:[%s949_s1 + $0x68] sm:$0xff]   ;;  %22 = vst.msk [vmem:[#allocation2 + $0x10] sm:$0xff] %vm19_vm0, %v765_v46 }
   0x2   :  { %v716_v1 = vld [vmem:[%s949_s1 + $0xf8] sm:$0xff]   ;;  %640 = vmatprep.subr.bf16.mxu0 %v715_v0  ;;  %v720_v5 = vld [vmem:[%s949_s1 + $0xf0] sm:$0xff]   ;;  %v724_v9 = vld [vmem:[%s949_s1 + $0xe8] sm:$0xff]   ;;  %20 = vst.msk [vmem:[#allocation2] sm:$0xff] %vm19_vm0, %v765_v46 }
   0x3   :  { %v717_v2 = vld [vmem:[%s949_s1 + $0x38] sm:$0xff]   ;;  %668 = vmatprep.subr.bf16.mxu1 %v716_v1  ;;  %v721_v6 = vld [vmem:[%s949_s1 + $0x30] sm:$0xff]   ;;  %v725_v10 = vld [vmem:[%s949_s1 + $0x28] sm:$0xff]   ;;  %21 = vst.msk [vmem:[#allocation2 + $0x8] sm:$0xff] %vm19_vm0, %v765_v46 }
   0x4   :  { %v718_v3 = vld [vmem:[%s949_s1 + $0xb8] sm:$0xff]   ;;  %641 = vmatpush3.bf16.msra.mxu0 %v717_v2  ;;  %v722_v7 = vld [vmem:[%s949_s1 + $0xb0] sm:$0xff]   ;;  %v726_v11 = vld [vmem:[%s949_s1 + $0xa8] sm:$0xff]   ;;  %23 = vst.msk [vmem:[#allocation2 + $0x18] sm:$0xff] %vm19_vm0, %v765_v46 }
   0x5   :  { %669 = vmatpush3.bf16.msra.mxu1 %v718_v3  ;;  %642 = vmatprep.subr.bf16.mxu0 %v719_v4  ;;  %v727_v12 = vld [vmem:[%s949_s1 + $0x60] sm:$0xff]   ;;  %v731_v16 = vld [vmem:[%s949_s1 + $0x58] sm:$0xff]   ;;  %v735_v20 = vld [vmem:[%s949_s1 + $0x50] sm:$0xff]  }
   0x6   :  { %670 = vmatprep.subr.bf16.mxu1 %v720_v5  ;;  %v728_v13 = vld [vmem:[%s949_s1 + $0xe0] sm:$0xff]   ;;  %v732_v17 = vld [vmem:[%s949_s1 + $0xd8] sm:$0xff]   ;;  %v736_v21 = vld [vmem:[%s949_s1 + $0xd0] sm:$0xff]  }
   0x7   :  { %v729_v14 = vld [vmem:[%s949_s1 + $0x20] sm:$0xff]   ;;  %v733_v18 = vld [vmem:[%s949_s1 + $0x18] sm:$0xff]   ;;  %v737_v22 = vld [vmem:[%s949_s1 + $0x10] sm:$0xff]  }
   0x8   :  { %643 = vmatpush3.bf16.msra.mxu0 %v721_v6  ;;  %v730_v15 = vld [vmem:[%s949_s1 + $0xa0] sm:$0xff]   ;;  %v734_v19 = vld [vmem:[%s949_s1 + $0x98] sm:$0xff]   ;;  %v738_v23 = vld [vmem:[%s949_s1 + $0x90] sm:$0xff]  }
   0x9   :  { %671 = vmatpush3.bf16.msra.mxu1 %v722_v7  ;;  %644 = vmatprep.subr.bf16.mxu0 %v723_v8  ;;  %v739_v24 = vld [vmem:[%s949_s1 + $0x48] sm:$0xff]   ;;  %v743_v28 = vld [vmem:[%s949_s1 + $0x40] sm:$0xff]   ;;  %v753_v36 = vld [vmem:[%s949_s1 + $0x118] sm:$0xff]  }
   0xa   :  { %672 = vmatprep.subr.bf16.mxu1 %v724_v9  ;;  %v740_v25 = vld [vmem:[%s949_s1 + $0xc8] sm:$0xff]   ;;  %v744_v29 = vld [vmem:[%s949_s1 + $0xc0] sm:$0xff]   ;;  %v754_v37 = vld [vmem:[%s949_s1 + $0x110] sm:$0xff]  }
   0xb   :  { %v741_v26 = vld [vmem:[%s949_s1 + $0x8] sm:$0xff]   ;;  %v745_v30 = vld [vmem:[%s949_s1] sm:$0xff]   ;;  %v26_v6 = vld [vmem:[#allocation2 + $0x10] sm:$0xff] }
   0xc   :  { %645 = vmatpush3.bf16.msra.mxu0 %v725_v10  ;;  %v742_v27 = vld [vmem:[%s949_s1 + $0x88] sm:$0xff]   ;;  %v746_v31 = vld [vmem:[%s949_s1 + $0x80] sm:$0xff]  }
   0xd   :  { %673 = vmatpush3.bf16.msra.mxu1 %v726_v11  ;;  %646 = vmatprep.subr.bf16.mxu0 %v727_v12  ;;  %v747_v32 = vld [vmem:[%s950_s0] ss:$20 sps:$4 sm:$0xff]   ;;  %v749_v33 = vld [vmem:[%s950_s0 + $0x4] ss:$20 sps:$4 sm:$0xff]   ;;  %v750_v34 = vld [vmem:[%s950_s0 + $0x8] ss:$20 sps:$4 sm:$0xff]  }
   0xe   :  { %674 = vmatprep.subr.bf16.mxu1 %v728_v13  ;;  %v752_v35 = vld [vmem:[%s950_s0 + $0xc] ss:$20 sps:$4 sm:$0xff]   ;;  %417 = vmatprep.mubr.bf16.mxu0 %v749_v33  ;;  %v757_v39 = vld [vmem:[%s950_s0 + $0x34] ss:$20 sps:$4 sm:$0xff]   ;;  %v760_v42 = vld [vmem:[%s950_s0 + $0x30] ss:$20 sps:$4 sm:$0xff]  }
   0xf   :  { %466 = vmatprep.mubr.bf16.mxu1 %v752_v35  ;;  %v755_v38 = vld [vmem:[%s950_s0 + $0x2c] ss:$20 sps:$4 sm:$0xff]   ;;  %v759_v40 = vld [vmem:[%s950_s0 + $0x28] ss:$20 sps:$4 sm:$0xff]   ;;  %v763_v43 = vld [vmem:[%s950_s0 + $0x10] ss:$20 sps:$4 sm:$0xff]  }
  0x10   :  { %647 = vmatpush3.bf16.msra.mxu0 %v729_v14  ;;  %v761_v41 = vld [vmem:[%s949_s1 + $0x108] sm:$0xff]   ;;  %v762_v44 = vld [vmem:[%s949_s1 + $0x100] sm:$0xff]  }
  0x11   :  { %675 = vmatpush3.bf16.msra.mxu1 %v730_v15  ;;  %648 = vmatprep.subr.bf16.mxu0 %v731_v16  ;;  %v764_v45 = vld [vmem:[%s950_s0 + $0x38] ss:$20 sps:$4 sm:$0xff]   ;;  %v24_v12 = vld [vmem:[#allocation2] sm:$0xff] }
  0x12   :  { %676 = vmatprep.subr.bf16.mxu1 %v732_v17  ;;  %v27_v17 = vld [vmem:[#allocation2 + $0x18] sm:$0xff] }
  0x14   :  { %649 = vmatpush3.bf16.msra.mxu0 %v733_v18 }
  0x15   :  { %677 = vmatpush3.bf16.msra.mxu1 %v734_v19  ;;  %650 = vmatprep.subr.bf16.mxu0 %v735_v20 }
  0x16   :  { %678 = vmatprep.subr.bf16.mxu1 %v736_v21 }
  0x18   :  { %651 = vmatpush3.bf16.msra.mxu0 %v737_v22  ;;  %v25_v22 = vld [vmem:[#allocation2 + $0x8] sm:$0xff] }
  0x19   :  { %679 = vmatpush3.bf16.msra.mxu1 %v738_v23  ;;  %652 = vmatprep.subr.bf16.mxu0 %v739_v24 }
  0x1a   :  { %680 = vmatprep.subr.bf16.mxu1 %v740_v25 }
  0x1c   :  { %653 = vmatpush3.bf16.msra.mxu0 %v741_v26 }
  0x1d   :  { %681 = vmatpush3.bf16.msra.mxu1 %v742_v27  ;;  %654 = vmatprep.subr.bf16.mxu0 %v743_v28  ;;  %v631_v27 = vld [vmem:[%s951_s2] ss:$0 sm:$0xff] }
  0x1e   :  { %682 = vmatprep.subr.bf16.mxu1 %v744_v29 }
  0x20   :  { %655 = vmatpush3.bf16.msra.mxu0 %v745_v30 }
  0x21   :  { %683 = vmatpush3.bf16.msra.mxu1 %v746_v31  ;;  %702 = vmatprep.subr.bf16.mxu0 %v753_v36 }
  0x23   :  { %418 = vmatmul.mubr.bf16.vlgmr.msra.gmra.mxu0 %v747_v32 }
  0x24   :  { %467 = vmatmul.mubr.bf16.vlgmr.msra.gmra.mxu1 %v750_v34  ;;  %703 = vmatpush3.bf16.msra.mxu0 %v753_v36 }
  0x25   :  { %704 = vmatprep.subr.bf16.mxu0 %v754_v37  ;;  %425 = vmatprep.mubr.bf16.mxu0 %v755_v38 }
  0x26   :  { %474 = vmatprep.mubr.bf16.mxu1 %v757_v39 }
  0x28   :  { %705 = vmatpush3.bf16.msra.mxu0 %v754_v37 }
  0x29   :  { %706 = vmatprep.subr.bf16.mxu0 %v761_v41 }
  0x2b   :  { %426 = vmatmul.mubr.bf16.gmra.mxu0 %v759_v40 }
  0x2c   :  { %475 = vmatmul.mubr.bf16.gmra.mxu1 %v760_v42  ;;  %710 = vmatprep.mubr.msk.bf16.mxu0 %vm19_vm0, %v763_v43 }
  0x2d   :  { %707 = vmatpush3.bf16.msra.mxu0 %v761_v41 }
  0x2e   :  { %708 = vmatprep.subr.bf16.mxu0 %v762_v44 }
  0x31   :  { %709 = vmatpush3.bf16.msra.mxu0 %v762_v44 }
  0x34   :  { %711 = vmatmul.mubr.msk.bf16.vlgmr.msra.gmra.mxu0 %vm19_vm0, %v764_v45 }
  0xe3   :  { %v656_v47 = vpop.f32.mrf.mxu0 }
  0xe4   :  { %v684_v48 = vpop.f32.mrf.mxu1 }
  0xe5   :  { %v657_v49 = vpop.f32.mrf.mxu0 }
  0xe6   :  { %v685_v50 = vpop.f32.mrf.mxu1  ;;  %v658_v63 = vadd.f32 %v657_v49, %v656_v47 }
  0xe7   :  { %v659_v51 = vpop.f32.mrf.mxu0  ;;  %v686_v0 = vadd.f32 %v685_v50, %v684_v48 }
  0xe8   :  { %v687_v52 = vpop.f32.mrf.mxu1 }
  0xe9   :  { %v660_v53 = vpop.f32.mrf.mxu0  ;;  %v469_v11 = vadd.f32 %v686_v0, %v658_v63 }
  0xea   :  { %v688_v54 = vpop.f32.mrf.mxu1  ;;  %v661_v8 = vadd.f32 %v660_v53, %v659_v51 }
  0xeb   :  { %v662_v55 = vpop.f32.mrf.mxu0  ;;  %v689_v9 = vadd.f32 %v688_v54, %v687_v52 }
  0xec   :  { %v690_v56 = vpop.f32.mrf.mxu1 }
  0xed   :  { %v663_v57 = vpop.f32.mrf.mxu0  ;;  %v472_v21 = vadd.f32 %v689_v9, %v661_v8 }
  0xee   :  { %v691_v58 = vpop.f32.mrf.mxu1  ;;  %v664_v59 = vadd.f32 %v663_v57, %v662_v55 }
  0xef   :  { %v692_v60 = vadd.f32 %v691_v58, %v690_v56  ;;  %v665_v61 = vpop.f32.mrf.mxu0 }
  0xf0   :  { %v693_v62 = vpop.f32.mrf.mxu1 }
  0xf1   :  { %v666_v1 = vpop.f32.mrf.mxu0  ;;  %v477_v5 = vadd.f32 %v692_v60, %v664_v59 }
  0xf2   :  { %v694_v2 = vpop.f32.mrf.mxu1  ;;  %v667_v3 = vadd.f32 %v666_v1, %v665_v61 }
  0xf3   :  { %v695_v4 = vadd.f32 %v694_v2, %v693_v62 }
  0xf4   :  { %v712_v7 = vpop.f32.mrf.mxu0 }
  0xf5   :  { %v526_v10 = vadd.f32 %v712_v7, %v477_v5  ;;  %v480_v16 = vadd.f32 %v695_v4, %v667_v3 }
  0xf6   :  { %v517_v13 = vpop.f32.mrf.mxu0 }
  0xf7   :  { %v534_v14 = vadd.f32 %v526_v10, %v26_v6  ;;  %v518_v15 = vadd.f32 %v517_v13, %v469_v11 }
  0xf8   :  { %v713_v18 = vpop.f32.mrf.mxu0 }
  0xf9   :  { %538 = vst.msk [vmem:[#allocation2 + $0x10] sm:$0xff] %vm19_vm0, %v534_v14  ;;  %v532_v19 = vadd.f32 %v518_v15, %v24_v12  ;;  %v529_v20 = vadd.f32 %v713_v18, %v480_v16 }
  0xfa   :  { %v520_v23 = vpop.f32.mrf.mxu0 }
  0xfb   :  { %536 = vst.msk [vmem:[#allocation2] sm:$0xff] %vm19_vm0, %v532_v19  ;;  %v535_v24 = vadd.f32 %v529_v20, %v27_v17  ;;  %v521_v25 = vadd.f32 %v520_v23, %v472_v21 }
  0xfd   :  { %539 = vst.msk [vmem:[#allocation2 + $0x18] sm:$0xff] %vm19_vm0, %v535_v24  ;;  %v533_v26 = vadd.f32 %v521_v25, %v25_v22 }
  0xff   :  { %537 = vst.msk [vmem:[#allocation2 + $0x8] sm:$0xff] %vm19_vm0, %v533_v26 }
 0x100   :  { %v545_v28 = vld [vmem:[#allocation2 + $0x10] sm:$0xff] }
 0x101   :  { %v556_v29 = vadd.f32 %v631_v27, %v545_v28 }
 0x102   :  { %v543_v30 = vld [vmem:[#allocation2] sm:$0xff] }
 0x103   :  { %v638_v31 = vpack.c.bf16 %v556_v29, %v556_v29  ;;  %v554_v32 = vadd.f32 %v631_v27, %v543_v30 }
 0x104   :  { %v546_v33 = vld [vmem:[#allocation2 + $0x18] sm:$0xff] }
 0x105   :  { %577 = vst.msk [vmem:[%s952_s3 + $0x8] sm:$0xf] %vm574_vm1, %v638_v31  ;;  %v636_v34 = vpack.c.bf16 %v554_v32, %v554_v32  ;;  %v557_v35 = vadd.f32 %v631_v27, %v546_v33 }
 0x106   :  { %v544_v36 = vld [vmem:[#allocation2 + $0x8] sm:$0xff] }
 0x107   :  { %575 = vst.msk [vmem:[%s952_s3] sm:$0xf] %vm574_vm1, %v636_v34  ;;  %v639_v37 = vpack.c.bf16 %v557_v35, %v557_v35  ;;  %v555_v38 = vadd.f32 %v631_v27, %v544_v36 }
 0x109   :  { %578 = vst.msk [vmem:[%s952_s3 + $0xc] sm:$0xf] %vm574_vm1, %v639_v37  ;;  %v637_v39 = vpack.c.bf16 %v555_v38, %v555_v38 }
 0x10b   :  { %576 = vst.msk [vmem:[%s952_s3 + $0x4] sm:$0xf] %vm574_vm1, %v637_v39 }

// kernel: discriminator_forward.19
= control target key start
LH: loop header
LB: loop body
LE: loop exit
PB: predicated region body
PF: predicated region fallthrough
CT: control target
= control target key end

     0   :  { %vm21_vm0 = vcmask 1024   ;;  %v150_v0 = vmov 0.0   ;;  %vm151_vm1 = vmmov 0   ;;  %vm57_vm2 = vcmask 523264   ;;  %s196_s1 = inlined_call_operand.vmem [shape: bf16[64,1], index: 1, kind: input, shape index: {}]   ;;  %s197_s2 = inlined_call_operand.<no memory space> [shape: f32[1,1], index: 2, kind: input, shape index: {}]   ;;  %s198_s0 = inlined_call_operand.vmem [shape: bf16[2,64], index: 0, kind: input, shape index: {}]   ;;  %s199_s3 = inlined_call_operand.vmem [shape: f32[2,1], index: 3, kind: output, shape index: {}]  }
   0x1   :  { %132 = vmatprep.subr.bf16.mxu0 %v150_v0  ;;  %v146_v1 = vld [vmem:[%s196_s1 + $0x18] sm:$0xff]   ;;  %140 = vmatprep.mubr.msk.bf16.mxu0 %vm151_vm1, %v150_v0  ;;  %v8_v2 = vstv %s197_s2  ;;  %22 = vst.msk [vmem:[#allocation2] sm:$0x3] %vm21_vm0, %v150_v0  ;;  %v147_v3 = vld [vmem:[%s196_s1 + $0x10] sm:$0xff]   ;;  %v148_v4 = vld [vmem:[%s196_s1 + $0x8] sm:$0xff]  }
   0x2   :  { %9 = vst [vmem:[#allocation3] sm:$0x1] %v8_v2  ;;  %133 = vmatpush3.bf16.msra.mxu0 %v146_v1  ;;  %v149_v5 = vld [vmem:[%s196_s1] sm:$0xff]  }
   0x3   :  { %134 = vmatprep.subr.bf16.mxu0 %v150_v0  ;;  %v24_v6 = vld [vmem:[%s198_s0] sm:$0x1] }
   0x6   :  { %135 = vmatpush3.bf16.msra.mxu0 %v147_v3 }
   0x7   :  { %136 = vmatprep.subr.bf16.mxu0 %v150_v0 }
   0x8   :  { %v23_v7 = vld [vmem:[#allocation2] sm:$0x3] }
   0x9   :  { %v126_v13 = vld [vmem:[#allocation3] ss:$0 sm:$0xff] }
   0xa   :  { %137 = vmatpush3.bf16.msra.mxu0 %v148_v4 }
   0xb   :  { %138 = vmatprep.subr.bf16.mxu0 %v150_v0 }
   0xe   :  { %139 = vmatpush3.bf16.msra.mxu0 %v149_v5 }
  0x11   :  { %141 = vmatmul.mubr.msk.bf16.vlgmr.msra.gmra.mxu0 %vm57_vm2, %v24_v6 }
  0xd1   :  { %v95_v8 = vpop.f32.mrf.mxu0 }
  0xd2   :  { %v101_v9 = vadd.f32 %v95_v8, %v23_v7 }
  0xd3   :  { %v142_v10 = vpop.f32.mrf.mxu0 }
  0xd4   :  { %103 = vst.msk [vmem:[#allocation2] sm:$0x3] %vm21_vm0, %v101_v9 }
  0xd5   :  { %v98_v11 = vpop.f32.mrf.mxu0 }
  0xd7   :  { %v143_v12 = vpop.f32.mrf.mxu0 }
  0xdb   :  { %v107_v14 = vld [vmem:[#allocation2] sm:$0x3] }
  0xdc   :  { %v115_v15 = vadd.f32 %v126_v13, %v107_v14 }
  0xde   :  { %116 = vst.msk [vmem:[%s199_s3] sm:$0x3] %vm21_vm0, %v115_v15 }

</bundles_post_ra>
